<compile_context>
chip_gen: v7x
topology: tpu7x:2x2x1
jax: 0.10.0
libtpu: 0.0.40
codegen_flags: <defaults>
</compile_context>

<pallas_src>
import jax
import jax.numpy as jnp
from jax.experimental import pallas as pl
from jax.experimental.pallas import tpu as pltpu

LANE = 128
_VMEM_LIMIT = 32 * 1024 * 1024  # safe on v7x (64 MiB phys / 32 MiB scoped default)


def _round_up(n, m):
    return ((n + m - 1) // m) * m


# ----------------------------------------------------------------------------
# Pallas kernels
# ----------------------------------------------------------------------------
def _conv1_pool_kernel(c00_ref, c01_ref, c10_ref, c11_ref, w_ref, b_ref, o_ref):
    """conv1 (4 stride-2 phase matmuls) + bias + fused 2x2 max-pool + ReLU.

    c_ab: (BT, 196, 25) bf16 phase im2col, w: (25, 6) bf16, b: (1, 1, 6) f32.
    Output: (BT, 196, 6) f32 == pool1(relu(conv1(x))), rows ordered (hp, wp).
    """
    bt = c00_ref.shape[0]
    wb = jnp.broadcast_to(w_ref[...][None, :, :], (bt,) + tuple(w_ref.shape))

    def phase(c_ref):
        return jnp.einsum("bmk,bkn->bmn", c_ref[...], wb,
                          preferred_element_type=jnp.float32)

    z = jnp.maximum(jnp.maximum(phase(c00_ref), phase(c01_ref)),
                    jnp.maximum(phase(c10_ref), phase(c11_ref)))
    # max/bias/relu commute: max_p(z_p + b) == max_p(z_p) + b; relu(max)=max(relu).
    o_ref[...] = jnp.maximum(z + b_ref[...], 0.0).astype(o_ref.dtype)


def _conv2_pool_fc_kernel(c00_ref, c01_ref, c10_ref, c11_ref, w2_ref, b2_ref,
                          w1f_ref, b1f_ref, w2f_ref, b2f_ref, w3f_ref, b3f_ref,
                          o_ref):
    """conv2 + 2x2 max-pool + ReLU + fc1 + ReLU + fc2 + ReLU + fc3, fused.

    c_ab: (BT, 25, 150) bf16 phase im2col of the pool1 output; w2: (150,16) bf16.
    w1f: (25, 16, 128) f32 fc1 weights split per spatial position, so the
    flatten never needs an in-kernel lane-dim-changing reshape.
    Output: (BT, 128) f32 (first output_dim lanes valid).
    """
    bt = c00_ref.shape[0]
    w2b = jnp.broadcast_to(w2_ref[...][None, :, :], (bt,) + tuple(w2_ref.shape))

    def phase(c_ref):
        return jnp.einsum("bmk,bkn->bmn", c_ref[...], w2b,
                          preferred_element_type=jnp.float32)

    z = jnp.maximum(jnp.maximum(phase(c00_ref), phase(c01_ref)),
                    jnp.maximum(phase(c10_ref), phase(c11_ref)))
    a2 = jnp.maximum(z + b2_ref[...], 0.0)               # (bt, 25, 16) f32

    # fc1 as 25 accumulated (bt,16)@(16,128) matmuls over the 5x5 spatial
    # positions: equivalent to flatten -> (bt,400)@(400,128) without the
    # lane-dim reshape.  Intermediates never leave VMEM/vregs.
    h = jnp.zeros((bt, w1f_ref.shape[2]), jnp.float32)
    for s in range(25):
        h = h + jnp.dot(a2[:, s, :], w1f_ref[s],
                        preferred_element_type=jnp.float32)
    h = jnp.maximum(h + b1f_ref[...], 0.0)
    h = jnp.maximum(
        jnp.dot(h, w2f_ref[...], preferred_element_type=jnp.float32)
        + b2f_ref[...], 0.0)
    y = jnp.dot(h, w3f_ref[...], preferred_element_type=jnp.float32) + b3f_ref[...]
    o_ref[...] = y.astype(o_ref.dtype)


# ----------------------------------------------------------------------------
# Wrappers
# ----------------------------------------------------------------------------
def _conv1_pool1(x_nhw, params, bt):
    """x_nhw: (Bp, 28, 28) f32 -> pool1(relu(conv1(x))) as (Bp, 14, 14, 6) f32."""
    Bp = x_nhw.shape[0]
    xp = jnp.pad(x_nhw, ((0, 0), (2, 2), (2, 2)))                # conv1 padding=2

    def phase_cols(a, b):
        slabs = [xp[:, a + i:a + i + 27:2, b + j:b + j + 27:2]
                 for i in range(5) for j in range(5)]            # each (Bp,14,14)
        cols = jnp.stack(slabs, axis=-1)                         # K ordered (i, j)
        return cols.reshape(Bp, 196, 25).astype(jnp.bfloat16)

    cols = [phase_cols(a, b) for a in (0, 1) for b in (0, 1)]
    w = params["conv1_w"].transpose(2, 3, 1, 0).reshape(25, 6).astype(jnp.bfloat16)
    bias = params["conv1_b"].reshape(1, 1, 6).astype(jnp.float32)

    flops = 4 * 2 * Bp * 196 * 25 * 6 + 4 * Bp * 196 * 6
    bytes_accessed = (4 * Bp * 196 * 25 * 2 + 25 * 6 * 2 + 6 * 4
                      + Bp * 196 * 6 * 4)

    out = pl.pallas_call(
        _conv1_pool_kernel,
        out_shape=jax.ShapeDtypeStruct((Bp, 196, 6), jnp.float32),
        grid=(Bp // bt,),
        in_specs=[pl.BlockSpec((bt, 196, 25), lambda i: (i, 0, 0))] * 4 + [
            pl.BlockSpec((25, 6), lambda i: (0, 0)),             # resident weight
            pl.BlockSpec((1, 1, 6), lambda i: (0, 0, 0)),        # resident bias
        ],
        out_specs=pl.BlockSpec((bt, 196, 6), lambda i: (i, 0, 0)),
        compiler_params=pltpu.CompilerParams(
            dimension_semantics=("parallel",),
            vmem_limit_bytes=_VMEM_LIMIT),
        cost_estimate=pl.CostEstimate(
            flops=flops, transcendentals=0, bytes_accessed=bytes_accessed),
    )(*cols, w, bias)
    return out.reshape(Bp, 14, 14, 6)


def _conv2_pool2_fc(a1, params, bt, output_dim):
    """a1: (Bp, 14, 14, 6) f32 -> logits (Bp, output_dim) f32 (fully fused)."""
    Bp = a1.shape[0]

    def phase_cols(a, b):
        slabs = [a1[:, a + i:a + i + 9:2, b + j:b + j + 9:2, :]
                 for i in range(5) for j in range(5)]            # each (Bp,5,5,6)
        cols = jnp.concatenate(slabs, axis=-1)                   # K ordered (i,j,c)
        return cols.reshape(Bp, 25, 150).astype(jnp.bfloat16)

    cols = [phase_cols(a, b) for a in (0, 1) for b in (0, 1)]

    h1, h2 = 120, 84
    n1p, n2p = _round_up(h1, LANE), _round_up(h2, LANE)
    nop = _round_up(output_dim, LANE)

    w2 = params["conv2_w"].transpose(2, 3, 1, 0).reshape(150, 16).astype(jnp.bfloat16)
    b2 = params["conv2_b"].reshape(1, 1, 16).astype(jnp.float32)
    # fc1 columns are (c,h,w)-ordered in PyTorch; reorder to (h,w,c) and split
    # per spatial position s=(h,w) so the kernel contracts without a flatten.
    w1f = params["fc1_w"].reshape(h1, 16, 5, 5).transpose(2, 3, 1, 0)
    w1f = jnp.pad(w1f.reshape(25, 16, h1), ((0, 0), (0, 0), (0, n1p - h1)))
    b1f = jnp.pad(params["fc1_b"], (0, n1p - h1)).reshape(1, n1p)
    w2f = jnp.pad(params["fc2_w"].T, ((0, n1p - h1), (0, n2p - h2)))
    b2f = jnp.pad(params["fc2_b"], (0, n2p - h2)).reshape(1, n2p)
    w3f = jnp.pad(params["fc3_w"].T, ((0, n2p - h2), (0, nop - output_dim)))
    b3f = jnp.pad(params["fc3_b"], (0, nop - output_dim)).reshape(1, nop)

    flops = (4 * 2 * Bp * 25 * 150 * 16
             + 2 * Bp * (400 * h1 + h1 * h2 + h2 * output_dim)
             + 8 * Bp * 25 * 16)
    bytes_accessed = (4 * Bp * 25 * 150 * 2 + 150 * 16 * 2
                      + 4 * (25 * 16 * n1p + n1p * n2p + n2p * nop
                             + 16 + n1p + n2p + nop)
                      + Bp * nop * 4)

    out = pl.pallas_call(
        _conv2_pool_fc_kernel,
        out_shape=jax.ShapeDtypeStruct((Bp, nop), jnp.float32),
        grid=(Bp // bt,),
        in_specs=[pl.BlockSpec((bt, 25, 150), lambda i: (i, 0, 0))] * 4 + [
            pl.BlockSpec((150, 16), lambda i: (0, 0)),
            pl.BlockSpec((1, 1, 16), lambda i: (0, 0, 0)),
            pl.BlockSpec((25, 16, n1p), lambda i: (0, 0, 0)),
            pl.BlockSpec((1, n1p), lambda i: (0, 0)),
            pl.BlockSpec((n1p, n2p), lambda i: (0, 0)),
            pl.BlockSpec((1, n2p), lambda i: (0, 0)),
            pl.BlockSpec((n2p, nop), lambda i: (0, 0)),
            pl.BlockSpec((1, nop), lambda i: (0, 0)),
        ],
        out_specs=pl.BlockSpec((bt, nop), lambda i: (i, 0)),
        compiler_params=pltpu.CompilerParams(
            dimension_semantics=("parallel",),
            vmem_limit_bytes=_VMEM_LIMIT),
        cost_estimate=pl.CostEstimate(
            flops=flops, transcendentals=0, bytes_accessed=bytes_accessed),
    )(*cols, w2, b2,
      w1f.astype(jnp.float32), b1f.astype(jnp.float32),
      w2f.astype(jnp.float32), b2f.astype(jnp.float32),
      w3f.astype(jnp.float32), b3f.astype(jnp.float32))
    return out[:, :output_dim]


# ----------------------------------------------------------------------------
# LeNet forward
# ----------------------------------------------------------------------------
def init_lenet_params(key, output_dim):
    ks = jax.random.split(key, 10)

    def u(k, shape, fan_in):
        bound = 1.0 / jnp.sqrt(fan_in)
        return jax.random.uniform(k, shape, jnp.float32, -bound, bound)

    return dict(
        conv1_w=u(ks[0], (6, 1, 5, 5), 1 * 5 * 5),
        conv1_b=u(ks[1], (6,), 1 * 5 * 5),
        conv2_w=u(ks[2], (16, 6, 5, 5), 6 * 5 * 5),
        conv2_b=u(ks[3], (16,), 6 * 5 * 5),
        fc1_w=u(ks[4], (120, 400), 400),
        fc1_b=u(ks[5], (120,), 400),
        fc2_w=u(ks[6], (84, 120), 120),
        fc2_b=u(ks[7], (84,), 120),
        fc3_w=u(ks[8], (output_dim, 84), 84),
        fc3_b=u(ks[9], (output_dim,), 84),
    )


@jax.jit
def lenet_forward(params, x):
    # x: (B, 1, 28, 28) NCHW f32 (PyTorch interface; spatial must be 28x28 so
    # fc1 sees 16*5*5 features, per the LeNet spec).
    assert x.shape[1:] == (1, 28, 28), x.shape
    B = x.shape[0]
    output_dim = params["fc3_w"].shape[0]
    bt = B if B <= 32 else 32                     # images per grid step
    Bp = _round_up(B, bt)
    xs = x[:, 0, :, :]                            # single input channel
    if Bp > B:
        xs = jnp.pad(xs, ((0, Bp - B), (0, 0), (0, 0)))
    a1 = _conv1_pool1(xs, params, bt)             # (Bp, 14, 14, 6), compact
    out = _conv2_pool2_fc(a1, params, bt, output_dim)
    return out[:B]


def lenet_reference(params, x):
    """Pure-JAX reference (NCHW, mirrors the PyTorch module) for checking."""
    def conv(x, w, b, pad):
        y = jax.lax.conv_general_dilated(
            x, w, window_strides=(1, 1), padding=[(pad, pad), (pad, pad)],
            dimension_numbers=("NCHW", "OIHW", "NCHW"))
        return jax.nn.relu(y + b[None, :, None, None])

    def pool(x):
        B, C, H, W = x.shape
        return x.reshape(B, C, H // 2, 2, W // 2, 2).max(axis=(3, 5))

    x = pool(conv(x, params["conv1_w"], params["conv1_b"], 2))
    x = pool(conv(x, params["conv2_w"], params["conv2_b"], 0))
    x = x.reshape(x.shape[0], -1)
    x = jax.nn.relu(x @ params["fc1_w"].T + params["fc1_b"])
    x = jax.nn.relu(x @ params["fc2_w"].T + params["fc2_b"])
    return x @ params["fc3_w"].T + params["fc3_b"]


if __name__ == "__main__":
    OUTPUT_DIM = 10
    B = 2  # spatial must be 28x28 so fc1 sees 16*5*5 features (LeNet spec).

    key = jax.random.PRNGKey(0)
    k_x, k_p = jax.random.split(key)
    x = jax.random.normal(k_x, (B, 1, 28, 28), dtype=jnp.float32)
    params = init_lenet_params(k_p, OUTPUT_DIM)

    out = jax.block_until_ready(lenet_forward(params, x))
    assert out.shape == (B, OUTPUT_DIM), out.shape

    ref = lenet_reference(params, x)
    assert jnp.allclose(out, ref, rtol=3e-2, atol=3e-2), (
        "mismatch vs reference", jnp.max(jnp.abs(out - ref)))

    print("KERNEL_OK")
</pallas_src>

<mosaic_0001>
module attributes {stable_mosaic.version = 11 : i64} {
  func.func @_conv1_pool_kernel(%arg0: i32, %arg1: memref<2x196x25xbf16, #tpu.memory_space<vmem>>, %arg2: memref<2x196x25xbf16, #tpu.memory_space<vmem>>, %arg3: memref<2x196x25xbf16, #tpu.memory_space<vmem>>, %arg4: memref<2x196x25xbf16, #tpu.memory_space<vmem>>, %arg5: memref<25x6xbf16, #tpu.memory_space<vmem>>, %arg6: memref<1x1x6xf32, #tpu.memory_space<vmem>>, %arg7: memref<2x196x6xf32, #tpu.memory_space<vmem>>) attributes {dimension_semantics = [#tpu.dimension_semantics<parallel>], iteration_bounds = array<i64: 1>, scalar_prefetch = 0 : i64, scratch_operands = 0 : i64, tpu.core_type = #tpu.core_type<tc>, window_params = [{transform_indices = @transform_0, window_bounds = array<i64: 2, 196, 25>}, {transform_indices = @transform_1, window_bounds = array<i64: 2, 196, 25>}, {transform_indices = @transform_2, window_bounds = array<i64: 2, 196, 25>}, {transform_indices = @transform_3, window_bounds = array<i64: 2, 196, 25>}, {pipeline_mode = #tpu.pipeline_mode<synchronous>, transform_indices = @transform_4, window_bounds = array<i64: 25, 6>}, {pipeline_mode = #tpu.pipeline_mode<synchronous>, transform_indices = @transform_5, window_bounds = array<i64: 1, 1, 6>}, {transform_indices = @transform_6, window_bounds = array<i64: 2, 196, 6>}]} {
    %c0 = arith.constant 0 : index
    %c0_0 = arith.constant 0 : index
    %0 = vector.load %arg5[%c0, %c0_0] : memref<25x6xbf16, #tpu.memory_space<vmem>>, vector<25x6xbf16>
    %1 = vector.shape_cast %0 : vector<25x6xbf16> to vector<1x25x6xbf16>
    %2 = vector.shape_cast %1 : vector<1x25x6xbf16> to vector<1x25x6xbf16>
    %3 = vector.broadcast %2 : vector<1x25x6xbf16> to vector<2x25x6xbf16>
    %c0_1 = arith.constant 0 : index
    %c0_2 = arith.constant 0 : index
    %c0_3 = arith.constant 0 : index
    %4 = vector.load %arg1[%c0_1, %c0_2, %c0_3] : memref<2x196x25xbf16, #tpu.memory_space<vmem>>, vector<2x196x25xbf16>
    "tpu.trace_start"() <{level = 10 : i32, message = "bmk,bkn->bmn"}> : () -> ()
    %cst = arith.constant dense<0.000000e+00> : vector<2x196x6xf32>
    %5 = tpu.matmul %4, %3, %cst {dimension_numbers = #tpu.dot_dimension_numbers<[2], [1], [1], [2], [0, 0, 0, 1, 1, 2], [0], [0]>} : vector<2x196x25xbf16>, vector<2x25x6xbf16>, vector<2x196x6xf32> -> vector<2x196x6xf32>
    "tpu.trace_stop"() : () -> ()
    %c0_4 = arith.constant 0 : index
    %c0_5 = arith.constant 0 : index
    %c0_6 = arith.constant 0 : index
    %6 = vector.load %arg2[%c0_4, %c0_5, %c0_6] : memref<2x196x25xbf16, #tpu.memory_space<vmem>>, vector<2x196x25xbf16>
    "tpu.trace_start"() <{level = 10 : i32, message = "bmk,bkn->bmn"}> : () -> ()
    %cst_7 = arith.constant dense<0.000000e+00> : vector<2x196x6xf32>
    %7 = tpu.matmul %6, %3, %cst_7 {dimension_numbers = #tpu.dot_dimension_numbers<[2], [1], [1], [2], [0, 0, 0, 1, 1, 2], [0], [0]>} : vector<2x196x25xbf16>, vector<2x25x6xbf16>, vector<2x196x6xf32> -> vector<2x196x6xf32>
    "tpu.trace_stop"() : () -> ()
    %8 = arith.maximumf %5, %7 : vector<2x196x6xf32>
    %c0_8 = arith.constant 0 : index
    %c0_9 = arith.constant 0 : index
    %c0_10 = arith.constant 0 : index
    %9 = vector.load %arg3[%c0_8, %c0_9, %c0_10] : memref<2x196x25xbf16, #tpu.memory_space<vmem>>, vector<2x196x25xbf16>
    "tpu.trace_start"() <{level = 10 : i32, message = "bmk,bkn->bmn"}> : () -> ()
    %cst_11 = arith.constant dense<0.000000e+00> : vector<2x196x6xf32>
    %10 = tpu.matmul %9, %3, %cst_11 {dimension_numbers = #tpu.dot_dimension_numbers<[2], [1], [1], [2], [0, 0, 0, 1, 1, 2], [0], [0]>} : vector<2x196x25xbf16>, vector<2x25x6xbf16>, vector<2x196x6xf32> -> vector<2x196x6xf32>
    "tpu.trace_stop"() : () -> ()
    %c0_12 = arith.constant 0 : index
    %c0_13 = arith.constant 0 : index
    %c0_14 = arith.constant 0 : index
    %11 = vector.load %arg4[%c0_12, %c0_13, %c0_14] : memref<2x196x25xbf16, #tpu.memory_space<vmem>>, vector<2x196x25xbf16>
    "tpu.trace_start"() <{level = 10 : i32, message = "bmk,bkn->bmn"}> : () -> ()
    %cst_15 = arith.constant dense<0.000000e+00> : vector<2x196x6xf32>
    %12 = tpu.matmul %11, %3, %cst_15 {dimension_numbers = #tpu.dot_dimension_numbers<[2], [1], [1], [2], [0, 0, 0, 1, 1, 2], [0], [0]>} : vector<2x196x25xbf16>, vector<2x25x6xbf16>, vector<2x196x6xf32> -> vector<2x196x6xf32>
    "tpu.trace_stop"() : () -> ()
    %13 = arith.maximumf %10, %12 : vector<2x196x6xf32>
    %14 = arith.maximumf %8, %13 : vector<2x196x6xf32>
    %c0_16 = arith.constant 0 : index
    %c0_17 = arith.constant 0 : index
    %c0_18 = arith.constant 0 : index
    %15 = vector.load %arg6[%c0_16, %c0_17, %c0_18] : memref<1x1x6xf32, #tpu.memory_space<vmem>>, vector<1x1x6xf32>
    %16 = vector.broadcast %15 : vector<1x1x6xf32> to vector<2x196x6xf32>
    %17 = arith.addf %14, %16 : vector<2x196x6xf32>
    %cst_19 = arith.constant 0.000000e+00 : f32
    %18 = vector.broadcast %cst_19 : f32 to vector<2x196x6xf32>
    %19 = arith.maximumf %17, %18 : vector<2x196x6xf32>
    %c0_20 = arith.constant 0 : index
    %c0_21 = arith.constant 0 : index
    %c0_22 = arith.constant 0 : index
    %20 = vector.load %arg7[%c0_20, %c0_21, %c0_22] : memref<2x196x6xf32, #tpu.memory_space<vmem>>, vector<2x196x6xf32>
    tpu.vector_store %arg7[%c0_20, %c0_21, %c0_22], %19 {strides = array<i32>} : memref<2x196x6xf32, #tpu.memory_space<vmem>>, vector<2x196x6xf32>,
    return
  }
  func.func @transform_0(%arg0: i32) -> (i32, i32, i32) {
    %c0_i32 = arith.constant 0 : i32
    %c0_i32_0 = arith.constant 0 : i32
    %c0_i32_1 = arith.constant 0 : i32
    return %arg0, %c0_i32, %c0_i32_0 : i32, i32, i32
  }
  func.func @transform_1(%arg0: i32) -> (i32, i32, i32) {
    %c0_i32 = arith.constant 0 : i32
    %c0_i32_0 = arith.constant 0 : i32
    %c0_i32_1 = arith.constant 0 : i32
    return %arg0, %c0_i32, %c0_i32_0 : i32, i32, i32
  }
  func.func @transform_2(%arg0: i32) -> (i32, i32, i32) {
    %c0_i32 = arith.constant 0 : i32
    %c0_i32_0 = arith.constant 0 : i32
    %c0_i32_1 = arith.constant 0 : i32
    return %arg0, %c0_i32, %c0_i32_0 : i32, i32, i32
  }
  func.func @transform_3(%arg0: i32) -> (i32, i32, i32) {
    %c0_i32 = arith.constant 0 : i32
    %c0_i32_0 = arith.constant 0 : i32
    %c0_i32_1 = arith.constant 0 : i32
    return %arg0, %c0_i32, %c0_i32_0 : i32, i32, i32
  }
  func.func @transform_4(%arg0: i32) -> (i32, i32) {
    %c0_i32 = arith.constant 0 : i32
    %c0_i32_0 = arith.constant 0 : i32
    %c0_i32_1 = arith.constant 0 : i32
    return %c0_i32, %c0_i32_0 : i32, i32
  }
  func.func @transform_5(%arg0: i32) -> (i32, i32, i32) {
    %c0_i32 = arith.constant 0 : i32
    %c0_i32_0 = arith.constant 0 : i32
    %c0_i32_1 = arith.constant 0 : i32
    %c0_i32_2 = arith.constant 0 : i32
    return %c0_i32, %c0_i32_0, %c0_i32_1 : i32, i32, i32
  }
  func.func @transform_6(%arg0: i32) -> (i32, i32, i32) {
    %c0_i32 = arith.constant 0 : i32
    %c0_i32_0 = arith.constant 0 : i32
    %c0_i32_1 = arith.constant 0 : i32
    return %arg0, %c0_i32, %c0_i32_0 : i32, i32, i32
  }
}

module attributes {stable_mosaic.version = 11 : i64} {
  func.func @_conv2_pool_fc_kernel(%arg0: i32, %arg1: memref<2x25x150xbf16, #tpu.memory_space<vmem>>, %arg2: memref<2x25x150xbf16, #tpu.memory_space<vmem>>, %arg3: memref<2x25x150xbf16, #tpu.memory_space<vmem>>, %arg4: memref<2x25x150xbf16, #tpu.memory_space<vmem>>, %arg5: memref<150x16xbf16, #tpu.memory_space<vmem>>, %arg6: memref<1x1x16xf32, #tpu.memory_space<vmem>>, %arg7: memref<25x16x128xf32, #tpu.memory_space<vmem>>, %arg8: memref<1x128xf32, #tpu.memory_space<vmem>>, %arg9: memref<128x128xf32, #tpu.memory_space<vmem>>, %arg10: memref<1x128xf32, #tpu.memory_space<vmem>>, %arg11: memref<128x128xf32, #tpu.memory_space<vmem>>, %arg12: memref<1x128xf32, #tpu.memory_space<vmem>>, %arg13: memref<2x128xf32, #tpu.memory_space<vmem>>) attributes {dimension_semantics = [#tpu.dimension_semantics<parallel>], iteration_bounds = array<i64: 1>, scalar_prefetch = 0 : i64, scratch_operands = 0 : i64, tpu.core_type = #tpu.core_type<tc>, window_params = [{transform_indices = @transform_0, window_bounds = array<i64: 2, 25, 150>}, {transform_indices = @transform_1, window_bounds = array<i64: 2, 25, 150>}, {transform_indices = @transform_2, window_bounds = array<i64: 2, 25, 150>}, {transform_indices = @transform_3, window_bounds = array<i64: 2, 25, 150>}, {pipeline_mode = #tpu.pipeline_mode<synchronous>, transform_indices = @transform_4, window_bounds = array<i64: 150, 16>}, {pipeline_mode = #tpu.pipeline_mode<synchronous>, transform_indices = @transform_5, window_bounds = array<i64: 1, 1, 16>}, {pipeline_mode = #tpu.pipeline_mode<synchronous>, transform_indices = @transform_6, window_bounds = array<i64: 25, 16, 128>}, {pipeline_mode = #tpu.pipeline_mode<synchronous>, transform_indices = @transform_7, window_bounds = array<i64: 1, 128>}, {pipeline_mode = #tpu.pipeline_mode<synchronous>, transform_indices = @transform_8, window_bounds = array<i64: 128, 128>}, {pipeline_mode = #tpu.pipeline_mode<synchronous>, transform_indices = @transform_9, window_bounds = array<i64: 1, 128>}, {pipeline_mode = #tpu.pipeline_mode<synchronous>, transform_indices = @transform_10, window_bounds = array<i64: 128, 128>}, {pipeline_mode = #tpu.pipeline_mode<synchronous>, transform_indices = @transform_11, window_bounds = array<i64: 1, 128>}, {transform_indices = @transform_12, window_bounds = array<i64: 2, 128>}]} {
    %c0 = arith.constant 0 : index
    %c0_0 = arith.constant 0 : index
    %0 = vector.load %arg5[%c0, %c0_0] : memref<150x16xbf16, #tpu.memory_space<vmem>>, vector<150x16xbf16>
    %1 = vector.shape_cast %0 : vector<150x16xbf16> to vector<1x150x16xbf16>
    %2 = vector.shape_cast %1 : vector<1x150x16xbf16> to vector<1x150x16xbf16>
    %3 = vector.broadcast %2 : vector<1x150x16xbf16> to vector<2x150x16xbf16>
    %c0_1 = arith.constant 0 : index
    %c0_2 = arith.constant 0 : index
    %c0_3 = arith.constant 0 : index
    %4 = vector.load %arg1[%c0_1, %c0_2, %c0_3] : memref<2x25x150xbf16, #tpu.memory_space<vmem>>, vector<2x25x150xbf16>
    "tpu.trace_start"() <{level = 10 : i32, message = "bmk,bkn->bmn"}> : () -> ()
    %cst = arith.constant dense<0.000000e+00> : vector<2x25x16xf32>
    %5 = tpu.matmul %4, %3, %cst {dimension_numbers = #tpu.dot_dimension_numbers<[2], [1], [1], [2], [0, 0, 0, 1, 1, 2], [0], [0]>} : vector<2x25x150xbf16>, vector<2x150x16xbf16>, vector<2x25x16xf32> -> vector<2x25x16xf32>
    "tpu.trace_stop"() : () -> ()
    %c0_4 = arith.constant 0 : index
    %c0_5 = arith.constant 0 : index
    %c0_6 = arith.constant 0 : index
    %6 = vector.load %arg2[%c0_4, %c0_5, %c0_6] : memref<2x25x150xbf16, #tpu.memory_space<vmem>>, vector<2x25x150xbf16>
    "tpu.trace_start"() <{level = 10 : i32, message = "bmk,bkn->bmn"}> : () -> ()
    %cst_7 = arith.constant dense<0.000000e+00> : vector<2x25x16xf32>
    %7 = tpu.matmul %6, %3, %cst_7 {dimension_numbers = #tpu.dot_dimension_numbers<[2], [1], [1], [2], [0, 0, 0, 1, 1, 2], [0], [0]>} : vector<2x25x150xbf16>, vector<2x150x16xbf16>, vector<2x25x16xf32> -> vector<2x25x16xf32>
    "tpu.trace_stop"() : () -> ()
    %8 = arith.maximumf %5, %7 : vector<2x25x16xf32>
    %c0_8 = arith.constant 0 : index
    %c0_9 = arith.constant 0 : index
    %c0_10 = arith.constant 0 : index
    %9 = vector.load %arg3[%c0_8, %c0_9, %c0_10] : memref<2x25x150xbf16, #tpu.memory_space<vmem>>, vector<2x25x150xbf16>
    "tpu.trace_start"() <{level = 10 : i32, message = "bmk,bkn->bmn"}> : () -> ()
    %cst_11 = arith.constant dense<0.000000e+00> : vector<2x25x16xf32>
    %10 = tpu.matmul %9, %3, %cst_11 {dimension_numbers = #tpu.dot_dimension_numbers<[2], [1], [1], [2], [0, 0, 0, 1, 1, 2], [0], [0]>} : vector<2x25x150xbf16>, vector<2x150x16xbf16>, vector<2x25x16xf32> -> vector<2x25x16xf32>
    "tpu.trace_stop"() : () -> ()
    %c0_12 = arith.constant 0 : index
    %c0_13 = arith.constant 0 : index
    %c0_14 = arith.constant 0 : index
    %11 = vector.load %arg4[%c0_12, %c0_13, %c0_14] : memref<2x25x150xbf16, #tpu.memory_space<vmem>>, vector<2x25x150xbf16>
    "tpu.trace_start"() <{level = 10 : i32, message = "bmk,bkn->bmn"}> : () -> ()
    %cst_15 = arith.constant dense<0.000000e+00> : vector<2x25x16xf32>
    %12 = tpu.matmul %11, %3, %cst_15 {dimension_numbers = #tpu.dot_dimension_numbers<[2], [1], [1], [2], [0, 0, 0, 1, 1, 2], [0], [0]>} : vector<2x25x150xbf16>, vector<2x150x16xbf16>, vector<2x25x16xf32> -> vector<2x25x16xf32>
    "tpu.trace_stop"() : () -> ()
    %13 = arith.maximumf %10, %12 : vector<2x25x16xf32>
    %14 = arith.maximumf %8, %13 : vector<2x25x16xf32>
    %c0_16 = arith.constant 0 : index
    %c0_17 = arith.constant 0 : index
    %c0_18 = arith.constant 0 : index
    %15 = vector.load %arg6[%c0_16, %c0_17, %c0_18] : memref<1x1x16xf32, #tpu.memory_space<vmem>>, vector<1x1x16xf32>
    %16 = vector.broadcast %15 : vector<1x1x16xf32> to vector<2x25x16xf32>
    %17 = arith.addf %14, %16 : vector<2x25x16xf32>
    %cst_19 = arith.constant 0.000000e+00 : f32
    %18 = vector.broadcast %cst_19 : f32 to vector<2x25x16xf32>
    %19 = arith.maximumf %17, %18 : vector<2x25x16xf32>
    %cst_20 = arith.constant 0.000000e+00 : f32
    %20 = vector.broadcast %cst_20 : f32 to vector<2x128xf32>
    %21 = vector.extract_strided_slice %19 {offsets = [0, 0, 0], sizes = [2, 1, 16], strides = [1, 1, 1]} : vector<2x25x16xf32> to vector<2x1x16xf32>
    %22 = vector.shape_cast %21 : vector<2x1x16xf32> to vector<2x16xf32>
    %c0_21 = arith.constant 0 : index
    %c0_22 = arith.constant 0 : index
    %c0_23 = arith.constant 0 : index
    %23 = vector.load %arg7[%c0_21, %c0_22, %c0_23] : memref<25x16x128xf32, #tpu.memory_space<vmem>>, vector<1x16x128xf32>
    %24 = vector.shape_cast %23 : vector<1x16x128xf32> to vector<16x128xf32>
    %cst_24 = arith.constant dense<0.000000e+00> : vector<2x128xf32>
    %25 = tpu.matmul %22, %24, %cst_24 {dimension_numbers = #tpu.dot_dimension_numbers<[1], [0], [0], [1], [0, 0, 1, 1], [], []>} : vector<2x16xf32>, vector<16x128xf32>, vector<2x128xf32> -> vector<2x128xf32>
    %26 = arith.addf %20, %25 : vector<2x128xf32>
    %27 = vector.extract_strided_slice %19 {offsets = [0, 1, 0], sizes = [2, 1, 16], strides = [1, 1, 1]} : vector<2x25x16xf32> to vector<2x1x16xf32>
    %28 = vector.shape_cast %27 : vector<2x1x16xf32> to vector<2x16xf32>
    %c1 = arith.constant 1 : index
    %c0_25 = arith.constant 0 : index
    %c0_26 = arith.constant 0 : index
    %29 = vector.load %arg7[%c1, %c0_25, %c0_26] : memref<25x16x128xf32, #tpu.memory_space<vmem>>, vector<1x16x128xf32>
    %30 = vector.shape_cast %29 : vector<1x16x128xf32> to vector<16x128xf32>
    %cst_27 = arith.constant dense<0.000000e+00> : vector<2x128xf32>
    %31 = tpu.matmul %28, %30, %cst_27 {dimension_numbers = #tpu.dot_dimension_numbers<[1], [0], [0], [1], [0, 0, 1, 1], [], []>} : vector<2x16xf32>, vector<16x128xf32>, vector<2x128xf32> -> vector<2x128xf32>
    %32 = arith.addf %26, %31 : vector<2x128xf32>
    %33 = vector.extract_strided_slice %19 {offsets = [0, 2, 0], sizes = [2, 1, 16], strides = [1, 1, 1]} : vector<2x25x16xf32> to vector<2x1x16xf32>
    %34 = vector.shape_cast %33 : vector<2x1x16xf32> to vector<2x16xf32>
    %c2 = arith.constant 2 : index
    %c0_28 = arith.constant 0 : index
    %c0_29 = arith.constant 0 : index
    %35 = vector.load %arg7[%c2, %c0_28, %c0_29] : memref<25x16x128xf32, #tpu.memory_space<vmem>>, vector<1x16x128xf32>
    %36 = vector.shape_cast %35 : vector<1x16x128xf32> to vector<16x128xf32>
    %cst_30 = arith.constant dense<0.000000e+00> : vector<2x128xf32>
    %37 = tpu.matmul %34, %36, %cst_30 {dimension_numbers = #tpu.dot_dimension_numbers<[1], [0], [0], [1], [0, 0, 1, 1], [], []>} : vector<2x16xf32>, vector<16x128xf32>, vector<2x128xf32> -> vector<2x128xf32>
    %38 = arith.addf %32, %37 : vector<2x128xf32>
    %39 = vector.extract_strided_slice %19 {offsets = [0, 3, 0], sizes = [2, 1, 16], strides = [1, 1, 1]} : vector<2x25x16xf32> to vector<2x1x16xf32>
    %40 = vector.shape_cast %39 : vector<2x1x16xf32> to vector<2x16xf32>
    %c3 = arith.constant 3 : index
    %c0_31 = arith.constant 0 : index
    %c0_32 = arith.constant 0 : index
    %41 = vector.load %arg7[%c3, %c0_31, %c0_32] : memref<25x16x128xf32, #tpu.memory_space<vmem>>, vector<1x16x128xf32>
    %42 = vector.shape_cast %41 : vector<1x16x128xf32> to vector<16x128xf32>
    %cst_33 = arith.constant dense<0.000000e+00> : vector<2x128xf32>
    %43 = tpu.matmul %40, %42, %cst_33 {dimension_numbers = #tpu.dot_dimension_numbers<[1], [0], [0], [1], [0, 0, 1, 1], [], []>} : vector<2x16xf32>, vector<16x128xf32>, vector<2x128xf32> -> vector<2x128xf32>
    %44 = arith.addf %38, %43 : vector<2x128xf32>
    %45 = vector.extract_strided_slice %19 {offsets = [0, 4, 0], sizes = [2, 1, 16], strides = [1, 1, 1]} : vector<2x25x16xf32> to vector<2x1x16xf32>
    %46 = vector.shape_cast %45 : vector<2x1x16xf32> to vector<2x16xf32>
    %c4 = arith.constant 4 : index
    %c0_34 = arith.constant 0 : index
    %c0_35 = arith.constant 0 : index
    %47 = vector.load %arg7[%c4, %c0_34, %c0_35] : memref<25x16x128xf32, #tpu.memory_space<vmem>>, vector<1x16x128xf32>
    %48 = vector.shape_cast %47 : vector<1x16x128xf32> to vector<16x128xf32>
    %cst_36 = arith.constant dense<0.000000e+00> : vector<2x128xf32>
    %49 = tpu.matmul %46, %48, %cst_36 {dimension_numbers = #tpu.dot_dimension_numbers<[1], [0], [0], [1], [0, 0, 1, 1], [], []>} : vector<2x16xf32>, vector<16x128xf32>, vector<2x128xf32> -> vector<2x128xf32>
    %50 = arith.addf %44, %49 : vector<2x128xf32>
    %51 = vector.extract_strided_slice %19 {offsets = [0, 5, 0], sizes = [2, 1, 16], strides = [1, 1, 1]} : vector<2x25x16xf32> to vector<2x1x16xf32>
    %52 = vector.shape_cast %51 : vector<2x1x16xf32> to vector<2x16xf32>
    %c5 = arith.constant 5 : index
    %c0_37 = arith.constant 0 : index
    %c0_38 = arith.constant 0 : index
    %53 = vector.load %arg7[%c5, %c0_37, %c0_38] : memref<25x16x128xf32, #tpu.memory_space<vmem>>, vector<1x16x128xf32>
    %54 = vector.shape_cast %53 : vector<1x16x128xf32> to vector<16x128xf32>
    %cst_39 = arith.constant dense<0.000000e+00> : vector<2x128xf32>
    %55 = tpu.matmul %52, %54, %cst_39 {dimension_numbers = #tpu.dot_dimension_numbers<[1], [0], [0], [1], [0, 0, 1, 1], [], []>} : vector<2x16xf32>, vector<16x128xf32>, vector<2x128xf32> -> vector<2x128xf32>
    %56 = arith.addf %50, %55 : vector<2x128xf32>
    %57 = vector.extract_strided_slice %19 {offsets = [0, 6, 0], sizes = [2, 1, 16], strides = [1, 1, 1]} : vector<2x25x16xf32> to vector<2x1x16xf32>
    %58 = vector.shape_cast %57 : vector<2x1x16xf32> to vector<2x16xf32>
    %c6 = arith.constant 6 : index
    %c0_40 = arith.constant 0 : index
    %c0_41 = arith.constant 0 : index
    %59 = vector.load %arg7[%c6, %c0_40, %c0_41] : memref<25x16x128xf32, #tpu.memory_space<vmem>>, vector<1x16x128xf32>
    %60 = vector.shape_cast %59 : vector<1x16x128xf32> to vector<16x128xf32>
    %cst_42 = arith.constant dense<0.000000e+00> : vector<2x128xf32>
    %61 = tpu.matmul %58, %60, %cst_42 {dimension_numbers = #tpu.dot_dimension_numbers<[1], [0], [0], [1], [0, 0, 1, 1], [], []>} : vector<2x16xf32>, vector<16x128xf32>, vector<2x128xf32> -> vector<2x128xf32>
    %62 = arith.addf %56, %61 : vector<2x128xf32>
    %63 = vector.extract_strided_slice %19 {offsets = [0, 7, 0], sizes = [2, 1, 16], strides = [1, 1, 1]} : vector<2x25x16xf32> to vector<2x1x16xf32>
    %64 = vector.shape_cast %63 : vector<2x1x16xf32> to vector<2x16xf32>
    %c7 = arith.constant 7 : index
    %c0_43 = arith.constant 0 : index
    %c0_44 = arith.constant 0 : index
    %65 = vector.load %arg7[%c7, %c0_43, %c0_44] : memref<25x16x128xf32, #tpu.memory_space<vmem>>, vector<1x16x128xf32>
    %66 = vector.shape_cast %65 : vector<1x16x128xf32> to vector<16x128xf32>
    %cst_45 = arith.constant dense<0.000000e+00> : vector<2x128xf32>
    %67 = tpu.matmul %64, %66, %cst_45 {dimension_numbers = #tpu.dot_dimension_numbers<[1], [0], [0], [1], [0, 0, 1, 1], [], []>} : vector<2x16xf32>, vector<16x128xf32>, vector<2x128xf32> -> vector<2x128xf32>
    %68 = arith.addf %62, %67 : vector<2x128xf32>
    %69 = vector.extract_strided_slice %19 {offsets = [0, 8, 0], sizes = [2, 1, 16], strides = [1, 1, 1]} : vector<2x25x16xf32> to vector<2x1x16xf32>
    %70 = vector.shape_cast %69 : vector<2x1x16xf32> to vector<2x16xf32>
    %c8 = arith.constant 8 : index
    %c0_46 = arith.constant 0 : index
    %c0_47 = arith.constant 0 : index
    %71 = vector.load %arg7[%c8, %c0_46, %c0_47] : memref<25x16x128xf32, #tpu.memory_space<vmem>>, vector<1x16x128xf32>
    %72 = vector.shape_cast %71 : vector<1x16x128xf32> to vector<16x128xf32>
    %cst_48 = arith.constant dense<0.000000e+00> : vector<2x128xf32>
    %73 = tpu.matmul %70, %72, %cst_48 {dimension_numbers = #tpu.dot_dimension_numbers<[1], [0], [0], [1], [0, 0, 1, 1], [], []>} : vector<2x16xf32>, vector<16x128xf32>, vector<2x128xf32> -> vector<2x128xf32>
    %74 = arith.addf %68, %73 : vector<2x128xf32>
    %75 = vector.extract_strided_slice %19 {offsets = [0, 9, 0], sizes = [2, 1, 16], strides = [1, 1, 1]} : vector<2x25x16xf32> to vector<2x1x16xf32>
    %76 = vector.shape_cast %75 : vector<2x1x16xf32> to vector<2x16xf32>
    %c9 = arith.constant 9 : index
    %c0_49 = arith.constant 0 : index
    %c0_50 = arith.constant 0 : index
    %77 = vector.load %arg7[%c9, %c0_49, %c0_50] : memref<25x16x128xf32, #tpu.memory_space<vmem>>, vector<1x16x128xf32>
    %78 = vector.shape_cast %77 : vector<1x16x128xf32> to vector<16x128xf32>
    %cst_51 = arith.constant dense<0.000000e+00> : vector<2x128xf32>
    %79 = tpu.matmul %76, %78, %cst_51 {dimension_numbers = #tpu.dot_dimension_numbers<[1], [0], [0], [1], [0, 0, 1, 1], [], []>} : vector<2x16xf32>, vector<16x128xf32>, vector<2x128xf32> -> vector<2x128xf32>
    %80 = arith.addf %74, %79 : vector<2x128xf32>
    %81 = vector.extract_strided_slice %19 {offsets = [0, 10, 0], sizes = [2, 1, 16], strides = [1, 1, 1]} : vector<2x25x16xf32> to vector<2x1x16xf32>
    %82 = vector.shape_cast %81 : vector<2x1x16xf32> to vector<2x16xf32>
    %c10 = arith.constant 10 : index
    %c0_52 = arith.constant 0 : index
    %c0_53 = arith.constant 0 : index
    %83 = vector.load %arg7[%c10, %c0_52, %c0_53] : memref<25x16x128xf32, #tpu.memory_space<vmem>>, vector<1x16x128xf32>
    %84 = vector.shape_cast %83 : vector<1x16x128xf32> to vector<16x128xf32>
    %cst_54 = arith.constant dense<0.000000e+00> : vector<2x128xf32>
    %85 = tpu.matmul %82, %84, %cst_54 {dimension_numbers = #tpu.dot_dimension_numbers<[1], [0], [0], [1], [0, 0, 1, 1], [], []>} : vector<2x16xf32>, vector<16x128xf32>, vector<2x128xf32> -> vector<2x128xf32>
    %86 = arith.addf %80, %85 : vector<2x128xf32>
    %87 = vector.extract_strided_slice %19 {offsets = [0, 11, 0], sizes = [2, 1, 16], strides = [1, 1, 1]} : vector<2x25x16xf32> to vector<2x1x16xf32>
    %88 = vector.shape_cast %87 : vector<2x1x16xf32> to vector<2x16xf32>
    %c11 = arith.constant 11 : index
    %c0_55 = arith.constant 0 : index
    %c0_56 = arith.constant 0 : index
    %89 = vector.load %arg7[%c11, %c0_55, %c0_56] : memref<25x16x128xf32, #tpu.memory_space<vmem>>, vector<1x16x128xf32>
    %90 = vector.shape_cast %89 : vector<1x16x128xf32> to vector<16x128xf32>
    %cst_57 = arith.constant dense<0.000000e+00> : vector<2x128xf32>
    %91 = tpu.matmul %88, %90, %cst_57 {dimension_numbers = #tpu.dot_dimension_numbers<[1], [0], [0], [1], [0, 0, 1, 1], [], []>} : vector<2x16xf32>, vector<16x128xf32>, vector<2x128xf32> -> vector<2x128xf32>
    %92 = arith.addf %86, %91 : vector<2x128xf32>
    %93 = vector.extract_strided_slice %19 {offsets = [0, 12, 0], sizes = [2, 1, 16], strides = [1, 1, 1]} : vector<2x25x16xf32> to vector<2x1x16xf32>
    %94 = vector.shape_cast %93 : vector<2x1x16xf32> to vector<2x16xf32>
    %c12 = arith.constant 12 : index
    %c0_58 = arith.constant 0 : index
    %c0_59 = arith.constant 0 : index
    %95 = vector.load %arg7[%c12, %c0_58, %c0_59] : memref<25x16x128xf32, #tpu.memory_space<vmem>>, vector<1x16x128xf32>
    %96 = vector.shape_cast %95 : vector<1x16x128xf32> to vector<16x128xf32>
    %cst_60 = arith.constant dense<0.000000e+00> : vector<2x128xf32>
    %97 = tpu.matmul %94, %96, %cst_60 {dimension_numbers = #tpu.dot_dimension_numbers<[1], [0], [0], [1], [0, 0, 1, 1], [], []>} : vector<2x16xf32>, vector<16x128xf32>, vector<2x128xf32> -> vector<2x128xf32>
    %98 = arith.addf %92, %97 : vector<2x128xf32>
    %99 = vector.extract_strided_slice %19 {offsets = [0, 13, 0], sizes = [2, 1, 16], strides = [1, 1, 1]} : vector<2x25x16xf32> to vector<2x1x16xf32>
    %100 = vector.shape_cast %99 : vector<2x1x16xf32> to vector<2x16xf32>
    %c13 = arith.constant 13 : index
    %c0_61 = arith.constant 0 : index
    %c0_62 = arith.constant 0 : index
    %101 = vector.load %arg7[%c13, %c0_61, %c0_62] : memref<25x16x128xf32, #tpu.memory_space<vmem>>, vector<1x16x128xf32>
    %102 = vector.shape_cast %101 : vector<1x16x128xf32> to vector<16x128xf32>
    %cst_63 = arith.constant dense<0.000000e+00> : vector<2x128xf32>
    %103 = tpu.matmul %100, %102, %cst_63 {dimension_numbers = #tpu.dot_dimension_numbers<[1], [0], [0], [1], [0, 0, 1, 1], [], []>} : vector<2x16xf32>, vector<16x128xf32>, vector<2x128xf32> -> vector<2x128xf32>
    %104 = arith.addf %98, %103 : vector<2x128xf32>
    %105 = vector.extract_strided_slice %19 {offsets = [0, 14, 0], sizes = [2, 1, 16], strides = [1, 1, 1]} : vector<2x25x16xf32> to vector<2x1x16xf32>
    %106 = vector.shape_cast %105 : vector<2x1x16xf32> to vector<2x16xf32>
    %c14 = arith.constant 14 : index
    %c0_64 = arith.constant 0 : index
    %c0_65 = arith.constant 0 : index
    %107 = vector.load %arg7[%c14, %c0_64, %c0_65] : memref<25x16x128xf32, #tpu.memory_space<vmem>>, vector<1x16x128xf32>
    %108 = vector.shape_cast %107 : vector<1x16x128xf32> to vector<16x128xf32>
    %cst_66 = arith.constant dense<0.000000e+00> : vector<2x128xf32>
    %109 = tpu.matmul %106, %108, %cst_66 {dimension_numbers = #tpu.dot_dimension_numbers<[1], [0], [0], [1], [0, 0, 1, 1], [], []>} : vector<2x16xf32>, vector<16x128xf32>, vector<2x128xf32> -> vector<2x128xf32>
    %110 = arith.addf %104, %109 : vector<2x128xf32>
    %111 = vector.extract_strided_slice %19 {offsets = [0, 15, 0], sizes = [2, 1, 16], strides = [1, 1, 1]} : vector<2x25x16xf32> to vector<2x1x16xf32>
    %112 = vector.shape_cast %111 : vector<2x1x16xf32> to vector<2x16xf32>
    %c15 = arith.constant 15 : index
    %c0_67 = arith.constant 0 : index
    %c0_68 = arith.constant 0 : index
    %113 = vector.load %arg7[%c15, %c0_67, %c0_68] : memref<25x16x128xf32, #tpu.memory_space<vmem>>, vector<1x16x128xf32>
    %114 = vector.shape_cast %113 : vector<1x16x128xf32> to vector<16x128xf32>
    %cst_69 = arith.constant dense<0.000000e+00> : vector<2x128xf32>
    %115 = tpu.matmul %112, %114, %cst_69 {dimension_numbers = #tpu.dot_dimension_numbers<[1], [0], [0], [1], [0, 0, 1, 1], [], []>} : vector<2x16xf32>, vector<16x128xf32>, vector<2x128xf32> -> vector<2x128xf32>
    %116 = arith.addf %110, %115 : vector<2x128xf32>
    %117 = vector.extract_strided_slice %19 {offsets = [0, 16, 0], sizes = [2, 1, 16], strides = [1, 1, 1]} : vector<2x25x16xf32> to vector<2x1x16xf32>
    %118 = vector.shape_cast %117 : vector<2x1x16xf32> to vector<2x16xf32>
    %c16 = arith.constant 16 : index
    %c0_70 = arith.constant 0 : index
    %c0_71 = arith.constant 0 : index
    %119 = vector.load %arg7[%c16, %c0_70, %c0_71] : memref<25x16x128xf32, #tpu.memory_space<vmem>>, vector<1x16x128xf32>
    %120 = vector.shape_cast %119 : vector<1x16x128xf32> to vector<16x128xf32>
    %cst_72 = arith.constant dense<0.000000e+00> : vector<2x128xf32>
    %121 = tpu.matmul %118, %120, %cst_72 {dimension_numbers = #tpu.dot_dimension_numbers<[1], [0], [0], [1], [0, 0, 1, 1], [], []>} : vector<2x16xf32>, vector<16x128xf32>, vector<2x128xf32> -> vector<2x128xf32>
    %122 = arith.addf %116, %121 : vector<2x128xf32>
    %123 = vector.extract_strided_slice %19 {offsets = [0, 17, 0], sizes = [2, 1, 16], strides = [1, 1, 1]} : vector<2x25x16xf32> to vector<2x1x16xf32>
    %124 = vector.shape_cast %123 : vector<2x1x16xf32> to vector<2x16xf32>
    %c17 = arith.constant 17 : index
    %c0_73 = arith.constant 0 : index
    %c0_74 = arith.constant 0 : index
    %125 = vector.load %arg7[%c17, %c0_73, %c0_74] : memref<25x16x128xf32, #tpu.memory_space<vmem>>, vector<1x16x128xf32>
    %126 = vector.shape_cast %125 : vector<1x16x128xf32> to vector<16x128xf32>
    %cst_75 = arith.constant dense<0.000000e+00> : vector<2x128xf32>
    %127 = tpu.matmul %124, %126, %cst_75 {dimension_numbers = #tpu.dot_dimension_numbers<[1], [0], [0], [1], [0, 0, 1, 1], [], []>} : vector<2x16xf32>, vector<16x128xf32>, vector<2x128xf32> -> vector<2x128xf32>
    %128 = arith.addf %122, %127 : vector<2x128xf32>
    %129 = vector.extract_strided_slice %19 {offsets = [0, 18, 0], sizes = [2, 1, 16], strides = [1, 1, 1]} : vector<2x25x16xf32> to vector<2x1x16xf32>
    %130 = vector.shape_cast %129 : vector<2x1x16xf32> to vector<2x16xf32>
    %c18 = arith.constant 18 : index
    %c0_76 = arith.constant 0 : index
    %c0_77 = arith.constant 0 : index
    %131 = vector.load %arg7[%c18, %c0_76, %c0_77] : memref<25x16x128xf32, #tpu.memory_space<vmem>>, vector<1x16x128xf32>
    %132 = vector.shape_cast %131 : vector<1x16x128xf32> to vector<16x128xf32>
    %cst_78 = arith.constant dense<0.000000e+00> : vector<2x128xf32>
    %133 = tpu.matmul %130, %132, %cst_78 {dimension_numbers = #tpu.dot_dimension_numbers<[1], [0], [0], [1], [0, 0, 1, 1], [], []>} : vector<2x16xf32>, vector<16x128xf32>, vector<2x128xf32> -> vector<2x128xf32>
    %134 = arith.addf %128, %133 : vector<2x128xf32>
    %135 = vector.extract_strided_slice %19 {offsets = [0, 19, 0], sizes = [2, 1, 16], strides = [1, 1, 1]} : vector<2x25x16xf32> to vector<2x1x16xf32>
    %136 = vector.shape_cast %135 : vector<2x1x16xf32> to vector<2x16xf32>
    %c19 = arith.constant 19 : index
    %c0_79 = arith.constant 0 : index
    %c0_80 = arith.constant 0 : index
    %137 = vector.load %arg7[%c19, %c0_79, %c0_80] : memref<25x16x128xf32, #tpu.memory_space<vmem>>, vector<1x16x128xf32>
    %138 = vector.shape_cast %137 : vector<1x16x128xf32> to vector<16x128xf32>
    %cst_81 = arith.constant dense<0.000000e+00> : vector<2x128xf32>
    %139 = tpu.matmul %136, %138, %cst_81 {dimension_numbers = #tpu.dot_dimension_numbers<[1], [0], [0], [1], [0, 0, 1, 1], [], []>} : vector<2x16xf32>, vector<16x128xf32>, vector<2x128xf32> -> vector<2x128xf32>
    %140 = arith.addf %134, %139 : vector<2x128xf32>
    %141 = vector.extract_strided_slice %19 {offsets = [0, 20, 0], sizes = [2, 1, 16], strides = [1, 1, 1]} : vector<2x25x16xf32> to vector<2x1x16xf32>
    %142 = vector.shape_cast %141 : vector<2x1x16xf32> to vector<2x16xf32>
    %c20 = arith.constant 20 : index
    %c0_82 = arith.constant 0 : index
    %c0_83 = arith.constant 0 : index
    %143 = vector.load %arg7[%c20, %c0_82, %c0_83] : memref<25x16x128xf32, #tpu.memory_space<vmem>>, vector<1x16x128xf32>
    %144 = vector.shape_cast %143 : vector<1x16x128xf32> to vector<16x128xf32>
    %cst_84 = arith.constant dense<0.000000e+00> : vector<2x128xf32>
    %145 = tpu.matmul %142, %144, %cst_84 {dimension_numbers = #tpu.dot_dimension_numbers<[1], [0], [0], [1], [0, 0, 1, 1], [], []>} : vector<2x16xf32>, vector<16x128xf32>, vector<2x128xf32> -> vector<2x128xf32>
    %146 = arith.addf %140, %145 : vector<2x128xf32>
    %147 = vector.extract_strided_slice %19 {offsets = [0, 21, 0], sizes = [2, 1, 16], strides = [1, 1, 1]} : vector<2x25x16xf32> to vector<2x1x16xf32>
    %148 = vector.shape_cast %147 : vector<2x1x16xf32> to vector<2x16xf32>
    %c21 = arith.constant 21 : index
    %c0_85 = arith.constant 0 : index
    %c0_86 = arith.constant 0 : index
    %149 = vector.load %arg7[%c21, %c0_85, %c0_86] : memref<25x16x128xf32, #tpu.memory_space<vmem>>, vector<1x16x128xf32>
    %150 = vector.shape_cast %149 : vector<1x16x128xf32> to vector<16x128xf32>
    %cst_87 = arith.constant dense<0.000000e+00> : vector<2x128xf32>
    %151 = tpu.matmul %148, %150, %cst_87 {dimension_numbers = #tpu.dot_dimension_numbers<[1], [0], [0], [1], [0, 0, 1, 1], [], []>} : vector<2x16xf32>, vector<16x128xf32>, vector<2x128xf32> -> vector<2x128xf32>
    %152 = arith.addf %146, %151 : vector<2x128xf32>
    %153 = vector.extract_strided_slice %19 {offsets = [0, 22, 0], sizes = [2, 1, 16], strides = [1, 1, 1]} : vector<2x25x16xf32> to vector<2x1x16xf32>
    %154 = vector.shape_cast %153 : vector<2x1x16xf32> to vector<2x16xf32>
    %c22 = arith.constant 22 : index
    %c0_88 = arith.constant 0 : index
    %c0_89 = arith.constant 0 : index
    %155 = vector.load %arg7[%c22, %c0_88, %c0_89] : memref<25x16x128xf32, #tpu.memory_space<vmem>>, vector<1x16x128xf32>
    %156 = vector.shape_cast %155 : vector<1x16x128xf32> to vector<16x128xf32>
    %cst_90 = arith.constant dense<0.000000e+00> : vector<2x128xf32>
    %157 = tpu.matmul %154, %156, %cst_90 {dimension_numbers = #tpu.dot_dimension_numbers<[1], [0], [0], [1], [0, 0, 1, 1], [], []>} : vector<2x16xf32>, vector<16x128xf32>, vector<2x128xf32> -> vector<2x128xf32>
    %158 = arith.addf %152, %157 : vector<2x128xf32>
    %159 = vector.extract_strided_slice %19 {offsets = [0, 23, 0], sizes = [2, 1, 16], strides = [1, 1, 1]} : vector<2x25x16xf32> to vector<2x1x16xf32>
    %160 = vector.shape_cast %159 : vector<2x1x16xf32> to vector<2x16xf32>
    %c23 = arith.constant 23 : index
    %c0_91 = arith.constant 0 : index
    %c0_92 = arith.constant 0 : index
    %161 = vector.load %arg7[%c23, %c0_91, %c0_92] : memref<25x16x128xf32, #tpu.memory_space<vmem>>, vector<1x16x128xf32>
    %162 = vector.shape_cast %161 : vector<1x16x128xf32> to vector<16x128xf32>
    %cst_93 = arith.constant dense<0.000000e+00> : vector<2x128xf32>
    %163 = tpu.matmul %160, %162, %cst_93 {dimension_numbers = #tpu.dot_dimension_numbers<[1], [0], [0], [1], [0, 0, 1, 1], [], []>} : vector<2x16xf32>, vector<16x128xf32>, vector<2x128xf32> -> vector<2x128xf32>
    %164 = arith.addf %158, %163 : vector<2x128xf32>
    %165 = vector.extract_strided_slice %19 {offsets = [0, 24, 0], sizes = [2, 1, 16], strides = [1, 1, 1]} : vector<2x25x16xf32> to vector<2x1x16xf32>
    %166 = vector.shape_cast %165 : vector<2x1x16xf32> to vector<2x16xf32>
    %c24 = arith.constant 24 : index
    %c0_94 = arith.constant 0 : index
    %c0_95 = arith.constant 0 : index
    %167 = vector.load %arg7[%c24, %c0_94, %c0_95] : memref<25x16x128xf32, #tpu.memory_space<vmem>>, vector<1x16x128xf32>
    %168 = vector.shape_cast %167 : vector<1x16x128xf32> to vector<16x128xf32>
    %cst_96 = arith.constant dense<0.000000e+00> : vector<2x128xf32>
    %169 = tpu.matmul %166, %168, %cst_96 {dimension_numbers = #tpu.dot_dimension_numbers<[1], [0], [0], [1], [0, 0, 1, 1], [], []>} : vector<2x16xf32>, vector<16x128xf32>, vector<2x128xf32> -> vector<2x128xf32>
    %170 = arith.addf %164, %169 : vector<2x128xf32>
    %c0_97 = arith.constant 0 : index
    %c0_98 = arith.constant 0 : index
    %171 = vector.load %arg8[%c0_97, %c0_98] : memref<1x128xf32, #tpu.memory_space<vmem>>, vector<1x128xf32>
    %172 = vector.broadcast %171 : vector<1x128xf32> to vector<2x128xf32>
    %173 = arith.addf %170, %172 : vector<2x128xf32>
    %cst_99 = arith.constant 0.000000e+00 : f32
    %174 = vector.broadcast %cst_99 : f32 to vector<2x128xf32>
    %175 = arith.maximumf %173, %174 : vector<2x128xf32>
    %c0_100 = arith.constant 0 : index
    %c0_101 = arith.constant 0 : index
    %176 = vector.load %arg9[%c0_100, %c0_101] : memref<128x128xf32, #tpu.memory_space<vmem>>, vector<128x128xf32>
    %cst_102 = arith.constant dense<0.000000e+00> : vector<2x128xf32>
    %177 = tpu.matmul %175, %176, %cst_102 {dimension_numbers = #tpu.dot_dimension_numbers<[1], [0], [0], [1], [0, 0, 1, 1], [], []>} : vector<2x128xf32>, vector<128x128xf32>, vector<2x128xf32> -> vector<2x128xf32>
    %c0_103 = arith.constant 0 : index
    %c0_104 = arith.constant 0 : index
    %178 = vector.load %arg10[%c0_103, %c0_104] : memref<1x128xf32, #tpu.memory_space<vmem>>, vector<1x128xf32>
    %179 = vector.broadcast %178 : vector<1x128xf32> to vector<2x128xf32>
    %180 = arith.addf %177, %179 : vector<2x128xf32>
    %cst_105 = arith.constant 0.000000e+00 : f32
    %181 = vector.broadcast %cst_105 : f32 to vector<2x128xf32>
    %182 = arith.maximumf %180, %181 : vector<2x128xf32>
    %c0_106 = arith.constant 0 : index
    %c0_107 = arith.constant 0 : index
    %183 = vector.load %arg11[%c0_106, %c0_107] : memref<128x128xf32, #tpu.memory_space<vmem>>, vector<128x128xf32>
    %cst_108 = arith.constant dense<0.000000e+00> : vector<2x128xf32>
    %184 = tpu.matmul %182, %183, %cst_108 {dimension_numbers = #tpu.dot_dimension_numbers<[1], [0], [0], [1], [0, 0, 1, 1], [], []>} : vector<2x128xf32>, vector<128x128xf32>, vector<2x128xf32> -> vector<2x128xf32>
    %c0_109 = arith.constant 0 : index
    %c0_110 = arith.constant 0 : index
    %185 = vector.load %arg12[%c0_109, %c0_110] : memref<1x128xf32, #tpu.memory_space<vmem>>, vector<1x128xf32>
    %186 = vector.broadcast %185 : vector<1x128xf32> to vector<2x128xf32>
    %187 = arith.addf %184, %186 : vector<2x128xf32>
    %c0_111 = arith.constant 0 : index
    %c0_112 = arith.constant 0 : index
    %188 = vector.load %arg13[%c0_111, %c0_112] : memref<2x128xf32, #tpu.memory_space<vmem>>, vector<2x128xf32>
    tpu.vector_store %arg13[%c0_111, %c0_112], %187 {strides = array<i32>} : memref<2x128xf32, #tpu.memory_space<vmem>>, vector<2x128xf32>,
    return
  }
  func.func @transform_0(%arg0: i32) -> (i32, i32, i32) {
    %c0_i32 = arith.constant 0 : i32
    %c0_i32_0 = arith.constant 0 : i32
    %c0_i32_1 = arith.constant 0 : i32
    return %arg0, %c0_i32, %c0_i32_0 : i32, i32, i32
  }
  func.func @transform_1(%arg0: i32) -> (i32, i32, i32) {
    %c0_i32 = arith.constant 0 : i32
    %c0_i32_0 = arith.constant 0 : i32
    %c0_i32_1 = arith.constant 0 : i32
    return %arg0, %c0_i32, %c0_i32_0 : i32, i32, i32
  }
  func.func @transform_2(%arg0: i32) -> (i32, i32, i32) {
    %c0_i32 = arith.constant 0 : i32
    %c0_i32_0 = arith.constant 0 : i32
    %c0_i32_1 = arith.constant 0 : i32
    return %arg0, %c0_i32, %c0_i32_0 : i32, i32, i32
  }
  func.func @transform_3(%arg0: i32) -> (i32, i32, i32) {
    %c0_i32 = arith.constant 0 : i32
    %c0_i32_0 = arith.constant 0 : i32
    %c0_i32_1 = arith.constant 0 : i32
    return %arg0, %c0_i32, %c0_i32_0 : i32, i32, i32
  }
  func.func @transform_4(%arg0: i32) -> (i32, i32) {
    %c0_i32 = arith.constant 0 : i32
    %c0_i32_0 = arith.constant 0 : i32
    %c0_i32_1 = arith.constant 0 : i32
    return %c0_i32, %c0_i32_0 : i32, i32
  }
  func.func @transform_5(%arg0: i32) -> (i32, i32, i32) {
    %c0_i32 = arith.constant 0 : i32
    %c0_i32_0 = arith.constant 0 : i32
    %c0_i32_1 = arith.constant 0 : i32
    %c0_i32_2 = arith.constant 0 : i32
    return %c0_i32, %c0_i32_0, %c0_i32_1 : i32, i32, i32
  }
  func.func @transform_6(%arg0: i32) -> (i32, i32, i32) {
    %c0_i32 = arith.constant 0 : i32
    %c0_i32_0 = arith.constant 0 : i32
    %c0_i32_1 = arith.constant 0 : i32
    %c0_i32_2 = arith.constant 0 : i32
    return %c0_i32, %c0_i32_0, %c0_i32_1 : i32, i32, i32
  }
  func.func @transform_7(%arg0: i32) -> (i32, i32) {
    %c0_i32 = arith.constant 0 : i32
    %c0_i32_0 = arith.constant 0 : i32
    %c0_i32_1 = arith.constant 0 : i32
    return %c0_i32, %c0_i32_0 : i32, i32
  }
  func.func @transform_8(%arg0: i32) -> (i32, i32) {
    %c0_i32 = arith.constant 0 : i32
    %c0_i32_0 = arith.constant 0 : i32
    %c0_i32_1 = arith.constant 0 : i32
    return %c0_i32, %c0_i32_0 : i32, i32
  }
  func.func @transform_9(%arg0: i32) -> (i32, i32) {
    %c0_i32 = arith.constant 0 : i32
    %c0_i32_0 = arith.constant 0 : i32
    %c0_i32_1 = arith.constant 0 : i32
    return %c0_i32, %c0_i32_0 : i32, i32
  }
  func.func @transform_10(%arg0: i32) -> (i32, i32) {
    %c0_i32 = arith.constant 0 : i32
    %c0_i32_0 = arith.constant 0 : i32
    %c0_i32_1 = arith.constant 0 : i32
    return %c0_i32, %c0_i32_0 : i32, i32
  }
  func.func @transform_11(%arg0: i32) -> (i32, i32) {
    %c0_i32 = arith.constant 0 : i32
    %c0_i32_0 = arith.constant 0 : i32
    %c0_i32_1 = arith.constant 0 : i32
    return %c0_i32, %c0_i32_0 : i32, i32
  }
  func.func @transform_12(%arg0: i32) -> (i32, i32) {
    %c0_i32 = arith.constant 0 : i32
    %c0_i32_0 = arith.constant 0 : i32
    return %arg0, %c0_i32 : i32, i32
  }
}

</mosaic_0001>

<bundles_post_ra>
// kernel: lenet_forward.2
= control target key start
LH: loop header
LB: loop body
LE: loop exit
PB: predicated region body
PF: predicated region fallthrough
CT: control target
= control target key end

     0   :  { %vm192_vm0 = vcmask 1043456   ;;  %vm193_vm1 = vcmask 1044480   ;;  %v4916_v0 = vmov 0.0   ;;  %v3353_v2 = vmov 65535   ;;  %s4909_s4 = inlined_call_operand.vmem [shape: bf16[25,6], index: 4, kind: input, shape index: {}]   ;;  %s4910_s0 = inlined_call_operand.vmem [shape: bf16[2,196,25], index: 0, kind: input, shape index: {}]   ;;  %s4911_s1 = inlined_call_operand.vmem [shape: bf16[2,196,25], index: 1, kind: input, shape index: {}]   ;;  %s4912_s2 = inlined_call_operand.vmem [shape: bf16[2,196,25], index: 2, kind: input, shape index: {}]   ;;  %s4913_s3 = inlined_call_operand.vmem [shape: bf16[2,196,25], index: 3, kind: input, shape index: {}]   ;;  %s4914_s5 = inlined_call_operand.vmem [shape: f32[1,1,6], index: 5, kind: input, shape index: {}]   ;;  %s4915_s6 = inlined_call_operand.vmem [shape: f32[2,196,6], index: 6, kind: output, shape index: {}]  }
   0x1   :  { %2795 = vmatprep.subr.bf16.mxu0 %v4916_v0  ;;  %2851 = vmatprep.subr.bf16.mxu1 %v4916_v0  ;;  %v3395_v1 = vld [vmem:[%s4909_s4] sm:$0xff]   ;;  %v194_v3 = vsel %vm192_vm0, 4294967295, %v3353_v2  ;;  %v3247_v4 = vld [vmem:[%s4909_s4 + $0x8] sm:$0x1f]   ;;  %vm3354_vm2 = vmmov 0   ;;  %vm152_vm3 = vcmask 203776  }
   0x2   :  { %2796 = vmatpush3.bf16.msra.mxu0 %v3395_v1  ;;  %2852 = vmatpush3.bf16.msra.mxu1 %v3395_v1  ;;  %v195_v5 = vsel %vm193_vm1, %v194_v3, 0  ;;  %v3248_v7 = vld [vmem:[%s4910_s0] sm:$0xff]   ;;  %v3250_v9 = vld [vmem:[%s4910_s0 + $0x8] sm:$0xff]   ;;  %v3252_v11 = vld [vmem:[%s4910_s0 + $0x10] sm:$0xff]   ;;  %vm2408_vm4 = vcmask 48128   ;;  %vm2433_vm5 = vcmask 44032  }
   0x3   :  { %2797 = vmatprep.subr.bf16.mxu0 %v4916_v0  ;;  %2853 = vmatprep.subr.bf16.mxu1 %v4916_v0  ;;  %v3404_v6 = vand.u32 %v3247_v4, %v195_v5  ;;  %v3249_v8 = vld [vmem:[%s4910_s0 + $0x64] sm:$0xff]   ;;  %v3251_v10 = vld [vmem:[%s4910_s0 + $0x6c] sm:$0xff]   ;;  %v3253_v12 = vld [vmem:[%s4910_s0 + $0x74] sm:$0xff]  }
   0x4   :  { %2799 = vmatprep.mubr.msk.bf16.mxu0 %vm3354_vm2, %v4916_v0  ;;  %2855 = vmatprep.mubr.msk.bf16.mxu1 %vm3354_vm2, %v4916_v0  ;;  %v3254_v13 = vld [vmem:[%s4910_s0 + $0x18] sm:$0xff]   ;;  %v3256_v15 = vld [vmem:[%s4910_s0 + $0x20] sm:$0xff]   ;;  %v3258_v17 = vld [vmem:[%s4910_s0 + $0x28] sm:$0xff]  }
   0x5   :  { %v3255_v14 = vld [vmem:[%s4910_s0 + $0x7c] sm:$0xff]   ;;  %v3257_v16 = vld [vmem:[%s4910_s0 + $0x84] sm:$0xff]   ;;  %v3259_v18 = vld [vmem:[%s4910_s0 + $0x8c] sm:$0xff]  }
   0x6   :  { %2798 = vmatpush3.bf16.msra.mxu0 %v3404_v6  ;;  %2854 = vmatpush3.bf16.msra.mxu1 %v3404_v6  ;;  %v3260_v19 = vld [vmem:[%s4910_s0 + $0x30] sm:$0xff]   ;;  %v3262_v21 = vld [vmem:[%s4910_s0 + $0x38] sm:$0xff]   ;;  %v3264_v23 = vld [vmem:[%s4910_s0 + $0x40] sm:$0xff]  }
   0x7   :  { %2907 = vmatprep.subr.bf16.mxu0 %v4916_v0  ;;  %2963 = vmatprep.subr.bf16.mxu1 %v4916_v0  ;;  %v3261_v20 = vld [vmem:[%s4910_s0 + $0x94] sm:$0xff]   ;;  %v3263_v22 = vld [vmem:[%s4910_s0 + $0x9c] sm:$0xff]   ;;  %v3265_v24 = vld [vmem:[%s4910_s0 + $0xa4] sm:$0xff]  }
   0x8   :  { %v3266_v25 = vld [vmem:[%s4910_s0 + $0x48] sm:$0xff]   ;;  %v3268_v27 = vld [vmem:[%s4910_s0 + $0x50] sm:$0xff]   ;;  %v3270_v29 = vld [vmem:[%s4910_s0 + $0x58] sm:$0xff]  }
   0x9   :  { %2800 = vmatmul.mubr.msk.bf16.vlgmr.msra.gmra.mrb[0].mxu0 %vm152_vm3, %v3248_v7  ;;  %2856 = vmatmul.mubr.msk.bf16.vlgmr.msra.gmra.mrb[0].mxu1 %vm152_vm3, %v3249_v8  ;;  %v3267_v26 = vld [vmem:[%s4910_s0 + $0xac] sm:$0xff]   ;;  %v3269_v28 = vld [vmem:[%s4910_s0 + $0xb4] sm:$0xff]   ;;  %v3271_v30 = vld [vmem:[%s4910_s0 + $0xbc] sm:$0xff]  }
   0xa   :  { %2908 = vmatpush3.bf16.msra.mxu0 %v3395_v1  ;;  %2964 = vmatpush3.bf16.msra.mxu1 %v3395_v1  ;;  %v3272_v31 = vld [vmem:[%s4910_s0 + $0x60] ss:$0 sps:$4 sm:$0x33]   ;;  %v3273_v32 = vld [vmem:[%s4910_s0 + $0xc4] ss:$0 sps:$4 sm:$0x33]  }
   0xb   :  { %2803 = vmatprep.mubr.msk.bf16.mxu0 %vm3354_vm2, %v4916_v0  ;;  %2859 = vmatprep.mubr.msk.bf16.mxu1 %vm3354_vm2, %v4916_v0  ;;  %v3274_v33 = vld [vmem:[%s4911_s1] sm:$0xff]   ;;  %v3276_v35 = vld [vmem:[%s4911_s1 + $0x8] sm:$0xff]   ;;  %v3278_v37 = vld [vmem:[%s4911_s1 + $0x10] sm:$0xff]  }
   0xc   :  { %2909 = vmatprep.subr.bf16.mxu0 %v4916_v0  ;;  %2965 = vmatprep.subr.bf16.mxu1 %v4916_v0  ;;  %v3275_v34 = vld [vmem:[%s4911_s1 + $0x64] sm:$0xff]   ;;  %v3277_v36 = vld [vmem:[%s4911_s1 + $0x6c] sm:$0xff]   ;;  %v3279_v38 = vld [vmem:[%s4911_s1 + $0x74] sm:$0xff]  }
   0xd   :  { %v3280_v39 = vld [vmem:[%s4911_s1 + $0x18] sm:$0xff]   ;;  %v3282_v41 = vld [vmem:[%s4911_s1 + $0x20] sm:$0xff]   ;;  %v3284_v43 = vld [vmem:[%s4911_s1 + $0x28] sm:$0xff]  }
   0xe   :  { %2910 = vmatpush3.bf16.msra.mxu0 %v3404_v6  ;;  %2966 = vmatpush3.bf16.msra.mxu1 %v3404_v6  ;;  %v3281_v40 = vld [vmem:[%s4911_s1 + $0x7c] sm:$0xff]   ;;  %v3283_v42 = vld [vmem:[%s4911_s1 + $0x84] sm:$0xff]   ;;  %v3285_v44 = vld [vmem:[%s4911_s1 + $0x8c] sm:$0xff]  }
   0xf   :  { %3019 = vmatprep.subr.bf16.mxu0 %v4916_v0  ;;  %3075 = vmatprep.subr.bf16.mxu1 %v4916_v0  ;;  %v3286_v45 = vld [vmem:[%s4911_s1 + $0x30] sm:$0xff]   ;;  %v3288_v47 = vld [vmem:[%s4911_s1 + $0x38] sm:$0xff]   ;;  %v3290_v49 = vld [vmem:[%s4911_s1 + $0x40] sm:$0xff]  }
  0x10   :  { %v3287_v46 = vld [vmem:[%s4911_s1 + $0x94] sm:$0xff]   ;;  %v3289_v48 = vld [vmem:[%s4911_s1 + $0x9c] sm:$0xff]   ;;  %v3291_v50 = vld [vmem:[%s4911_s1 + $0xa4] sm:$0xff]  }
  0x11   :  { %2804 = vmatmul.mubr.msk.bf16.gmra.mrb[4].mxu0 %vm152_vm3, %v3250_v9  ;;  %2860 = vmatmul.mubr.msk.bf16.gmra.mrb[4].mxu1 %vm152_vm3, %v3251_v10  ;;  %v3292_v51 = vld [vmem:[%s4911_s1 + $0x48] sm:$0xff]   ;;  %v3294_v53 = vld [vmem:[%s4911_s1 + $0x50] sm:$0xff]   ;;  %v3296_v55 = vld [vmem:[%s4911_s1 + $0x58] sm:$0xff]  }
  0x12   :  { %2807 = vmatprep.mubr.msk.bf16.mxu0 %vm3354_vm2, %v4916_v0  ;;  %2863 = vmatprep.mubr.msk.bf16.mxu1 %vm3354_vm2, %v4916_v0  ;;  %v3293_v52 = vld [vmem:[%s4911_s1 + $0xac] sm:$0xff]   ;;  %v3295_v54 = vld [vmem:[%s4911_s1 + $0xb4] sm:$0xff]   ;;  %v3297_v56 = vld [vmem:[%s4911_s1 + $0xbc] sm:$0xff]  }
  0x13   :  { %v3298_v57 = vld [vmem:[%s4911_s1 + $0x60] ss:$0 sps:$4 sm:$0x33]   ;;  %v3299_v58 = vld [vmem:[%s4911_s1 + $0xc4] ss:$0 sps:$4 sm:$0x33]  }
  0x14   :  { %v3300_v59 = vld [vmem:[%s4912_s2] sm:$0xff]   ;;  %v3303_v3 = vld [vmem:[%s4912_s2 + $0x6c] sm:$0xff]  }
  0x15   :  { %v3301_v60 = vld [vmem:[%s4912_s2 + $0x64] sm:$0xff]  }
  0x19   :  { %2808 = vmatmul.mubr.msk.bf16.gmra.mrb[8].mxu0 %vm152_vm3, %v3252_v11  ;;  %2864 = vmatmul.mubr.msk.bf16.gmra.mrb[8].mxu1 %vm152_vm3, %v3253_v12 }
  0x1a   :  { %2811 = vmatprep.mubr.msk.bf16.mxu0 %vm3354_vm2, %v4916_v0  ;;  %2867 = vmatprep.mubr.msk.bf16.mxu1 %vm3354_vm2, %v4916_v0 }
  0x21   :  { %2812 = vmatmul.mubr.msk.bf16.gmra.mrb[12].mxu0 %vm152_vm3, %v3254_v13  ;;  %2868 = vmatmul.mubr.msk.bf16.gmra.mrb[12].mxu1 %vm152_vm3, %v3255_v14  ;;  %v3305_v13 = vld [vmem:[%s4912_s2 + $0x74] sm:$0xff]  }
  0x22   :  { %2815 = vmatprep.mubr.msk.bf16.mxu0 %vm3354_vm2, %v4916_v0  ;;  %2871 = vmatprep.mubr.msk.bf16.mxu1 %vm3354_vm2, %v4916_v0 }
  0x29   :  { %2816 = vmatmul.mubr.msk.bf16.gmra.mrb[16].mxu0 %vm152_vm3, %v3256_v15  ;;  %2872 = vmatmul.mubr.msk.bf16.gmra.mrb[16].mxu1 %vm152_vm3, %v3257_v16 }
  0x2a   :  { %2819 = vmatprep.mubr.msk.bf16.mxu0 %vm3354_vm2, %v4916_v0  ;;  %2875 = vmatprep.mubr.msk.bf16.mxu1 %vm3354_vm2, %v4916_v0 }
  0x31   :  { %2820 = vmatmul.mubr.msk.bf16.gmra.mrb[20].mxu0 %vm152_vm3, %v3258_v17  ;;  %2876 = vmatmul.mubr.msk.bf16.gmra.mrb[20].mxu1 %vm152_vm3, %v3259_v18 }
  0x32   :  { %2823 = vmatprep.mubr.msk.bf16.mxu0 %vm3354_vm2, %v4916_v0  ;;  %2879 = vmatprep.mubr.msk.bf16.mxu1 %vm3354_vm2, %v4916_v0 }
  0x39   :  { %2824 = vmatmul.mubr.msk.bf16.gmra.mrb[24].mxu0 %vm152_vm3, %v3260_v19  ;;  %2880 = vmatmul.mubr.msk.bf16.gmra.mrb[24].mxu1 %vm152_vm3, %v3261_v20 }
  0x3a   :  { %2827 = vmatprep.mubr.msk.bf16.mxu0 %vm3354_vm2, %v4916_v0  ;;  %2883 = vmatprep.mubr.msk.bf16.mxu1 %vm3354_vm2, %v4916_v0 }
  0x41   :  { %2828 = vmatmul.mubr.msk.bf16.gmra.mrb[28].mxu0 %vm152_vm3, %v3262_v21  ;;  %2884 = vmatmul.mubr.msk.bf16.gmra.mrb[28].mxu1 %vm152_vm3, %v3263_v22  ;;  %v3306_v22 = vld [vmem:[%s4912_s2 + $0x18] sm:$0xff]  }
  0x42   :  { %2831 = vmatprep.mubr.msk.bf16.mxu0 %vm3354_vm2, %v4916_v0  ;;  %2887 = vmatprep.mubr.msk.bf16.mxu1 %vm3354_vm2, %v4916_v0 }
  0x49   :  { %2832 = vmatmul.mubr.msk.bf16.gmra.mrb[32].mxu0 %vm152_vm3, %v3264_v23  ;;  %2888 = vmatmul.mubr.msk.bf16.gmra.mrb[32].mxu1 %vm152_vm3, %v3265_v24  ;;  %v3307_v23 = vld [vmem:[%s4912_s2 + $0x7c] sm:$0xff]  }
  0x4a   :  { %2835 = vmatprep.mubr.msk.bf16.mxu0 %vm3354_vm2, %v4916_v0  ;;  %2891 = vmatprep.mubr.msk.bf16.mxu1 %vm3354_vm2, %v4916_v0 }
  0x51   :  { %2836 = vmatmul.mubr.msk.bf16.gmra.mrb[36].mxu0 %vm152_vm3, %v3266_v25  ;;  %2892 = vmatmul.mubr.msk.bf16.gmra.mrb[36].mxu1 %vm152_vm3, %v3267_v26 }
  0x52   :  { %2839 = vmatprep.mubr.msk.bf16.mxu0 %vm3354_vm2, %v4916_v0  ;;  %2895 = vmatprep.mubr.msk.bf16.mxu1 %vm3354_vm2, %v4916_v0 }
  0x59   :  { %2840 = vmatmul.mubr.msk.bf16.gmra.mrb[40].mxu0 %vm152_vm3, %v3268_v27  ;;  %2896 = vmatmul.mubr.msk.bf16.gmra.mrb[40].mxu1 %vm152_vm3, %v3269_v28 }
  0x5a   :  { %2843 = vmatprep.mubr.msk.bf16.mxu0 %vm3354_vm2, %v4916_v0  ;;  %2899 = vmatprep.mubr.msk.bf16.mxu1 %vm3354_vm2, %v4916_v0 }
  0x61   :  { %2844 = vmatmul.mubr.msk.bf16.gmra.mrb[44].mxu0 %vm152_vm3, %v3270_v29  ;;  %2900 = vmatmul.mubr.msk.bf16.gmra.mrb[44].mxu1 %vm152_vm3, %v3271_v30 }
  0x62   :  { %2847 = vmatprep.mubr.msk.bf16.mxu0 %vm3354_vm2, %v4916_v0  ;;  %2903 = vmatprep.mubr.msk.bf16.mxu1 %vm3354_vm2, %v4916_v0 }
  0x69   :  { %2848 = vmatmul.mubr.msk.bf16.gmra.mrb[48].mxu0 %vm152_vm3, %v3272_v31  ;;  %2904 = vmatmul.mubr.msk.bf16.gmra.mrb[48].mxu1 %vm152_vm3, %v3273_v32  ;;  %v3308_v32 = vld [vmem:[%s4912_s2 + $0x20] sm:$0xff]  }
  0x6a   :  { %2911 = vmatprep.mubr.msk.bf16.mxu0 %vm3354_vm2, %v4916_v0  ;;  %2967 = vmatprep.mubr.msk.bf16.mxu1 %vm3354_vm2, %v4916_v0 }
  0x71   :  { %2912 = vmatmul.mubr.msk.bf16.vlgmr.msra.gmra.mrb[52].mxu0 %vm152_vm3, %v3274_v33  ;;  %2968 = vmatmul.mubr.msk.bf16.vlgmr.msra.gmra.mrb[52].mxu1 %vm152_vm3, %v3275_v34  ;;  %v3309_v33 = vld [vmem:[%s4912_s2 + $0x84] sm:$0xff]  }
  0x72   :  { %3020 = vmatpush3.bf16.msra.mxu0 %v3395_v1  ;;  %3076 = vmatpush3.bf16.msra.mxu1 %v3395_v1 }
  0x73   :  { %2915 = vmatprep.mubr.msk.bf16.mxu0 %vm3354_vm2, %v4916_v0  ;;  %2971 = vmatprep.mubr.msk.bf16.mxu1 %vm3354_vm2, %v4916_v0 }
  0x74   :  { %3021 = vmatprep.subr.bf16.mxu0 %v4916_v0  ;;  %3077 = vmatprep.subr.bf16.mxu1 %v4916_v0 }
  0x76   :  { %3022 = vmatpush3.bf16.msra.mxu0 %v3404_v6  ;;  %3078 = vmatpush3.bf16.msra.mxu1 %v3404_v6 }
  0x77   :  { %3131 = vmatprep.subr.bf16.mxu0 %v4916_v0  ;;  %3187 = vmatprep.subr.bf16.mxu1 %v4916_v0 }
  0x79   :  { %2916 = vmatmul.mubr.msk.bf16.gmra.mrb[56].mxu0 %vm152_vm3, %v3276_v35  ;;  %2972 = vmatmul.mubr.msk.bf16.gmra.mrb[56].mxu1 %vm152_vm3, %v3277_v36 }
  0x7a   :  { %2919 = vmatprep.mubr.msk.bf16.mxu0 %vm3354_vm2, %v4916_v0  ;;  %2975 = vmatprep.mubr.msk.bf16.mxu1 %vm3354_vm2, %v4916_v0 }
  0x81   :  { %2920 = vmatmul.mubr.msk.bf16.gmra.mrb[60].mxu0 %vm152_vm3, %v3278_v37  ;;  %2976 = vmatmul.mubr.msk.bf16.gmra.mrb[60].mxu1 %vm152_vm3, %v3279_v38 }
  0x82   :  { %2923 = vmatprep.mubr.msk.bf16.mxu0 %vm3354_vm2, %v4916_v0  ;;  %2979 = vmatprep.mubr.msk.bf16.mxu1 %vm3354_vm2, %v4916_v0 }
  0x89   :  { %2924 = vmatmul.mubr.msk.bf16.gmra.mrb[64].mxu0 %vm152_vm3, %v3280_v39  ;;  %2980 = vmatmul.mubr.msk.bf16.gmra.mrb[64].mxu1 %vm152_vm3, %v3281_v40 }
  0x8a   :  { %2927 = vmatprep.mubr.msk.bf16.mxu0 %vm3354_vm2, %v4916_v0  ;;  %2983 = vmatprep.mubr.msk.bf16.mxu1 %vm3354_vm2, %v4916_v0 }
  0x91   :  { %2928 = vmatmul.mubr.msk.bf16.gmra.mrb[68].mxu0 %vm152_vm3, %v3282_v41  ;;  %2984 = vmatmul.mubr.msk.bf16.gmra.mrb[68].mxu1 %vm152_vm3, %v3283_v42  ;;  %v3310_v42 = vld [vmem:[%s4912_s2 + $0x28] sm:$0xff]  }
  0x92   :  { %2931 = vmatprep.mubr.msk.bf16.mxu0 %vm3354_vm2, %v4916_v0  ;;  %2987 = vmatprep.mubr.msk.bf16.mxu1 %vm3354_vm2, %v4916_v0 }
  0x99   :  { %2932 = vmatmul.mubr.msk.bf16.gmra.mrb[72].mxu0 %vm152_vm3, %v3284_v43  ;;  %2988 = vmatmul.mubr.msk.bf16.gmra.mrb[72].mxu1 %vm152_vm3, %v3285_v44  ;;  %v3311_v43 = vld [vmem:[%s4912_s2 + $0x8c] sm:$0xff]  }
  0x9a   :  { %2935 = vmatprep.mubr.msk.bf16.mxu0 %vm3354_vm2, %v4916_v0  ;;  %2991 = vmatprep.mubr.msk.bf16.mxu1 %vm3354_vm2, %v4916_v0 }
  0xa1   :  { %2936 = vmatmul.mubr.msk.bf16.gmra.mrb[76].mxu0 %vm152_vm3, %v3286_v45  ;;  %2992 = vmatmul.mubr.msk.bf16.gmra.mrb[76].mxu1 %vm152_vm3, %v3287_v46 }
  0xa2   :  { %2939 = vmatprep.mubr.msk.bf16.mxu0 %vm3354_vm2, %v4916_v0  ;;  %2995 = vmatprep.mubr.msk.bf16.mxu1 %vm3354_vm2, %v4916_v0 }
  0xa9   :  { %2940 = vmatmul.mubr.msk.bf16.gmra.mrb[80].mxu0 %vm152_vm3, %v3288_v47  ;;  %2996 = vmatmul.mubr.msk.bf16.gmra.mrb[80].mxu1 %vm152_vm3, %v3289_v48 }
  0xaa   :  { %2943 = vmatprep.mubr.msk.bf16.mxu0 %vm3354_vm2, %v4916_v0  ;;  %2999 = vmatprep.mubr.msk.bf16.mxu1 %vm3354_vm2, %v4916_v0 }
  0xb1   :  { %2944 = vmatmul.mubr.msk.bf16.gmra.mrb[84].mxu0 %vm152_vm3, %v3290_v49  ;;  %3000 = vmatmul.mubr.msk.bf16.gmra.mrb[84].mxu1 %vm152_vm3, %v3291_v50 }
  0xb2   :  { %2947 = vmatprep.mubr.msk.bf16.mxu0 %vm3354_vm2, %v4916_v0  ;;  %3003 = vmatprep.mubr.msk.bf16.mxu1 %vm3354_vm2, %v4916_v0 }
  0xb9   :  { %2948 = vmatmul.mubr.msk.bf16.gmra.mrb[88].mxu0 %vm152_vm3, %v3292_v51  ;;  %3004 = vmatmul.mubr.msk.bf16.gmra.mrb[88].mxu1 %vm152_vm3, %v3293_v52  ;;  %v3312_v52 = vld [vmem:[%s4912_s2 + $0x30] sm:$0xff]  }
  0xba   :  { %2951 = vmatprep.mubr.msk.bf16.mxu0 %vm3354_vm2, %v4916_v0  ;;  %3007 = vmatprep.mubr.msk.bf16.mxu1 %vm3354_vm2, %v4916_v0 }
  0xc1   :  { %2952 = vmatmul.mubr.msk.bf16.gmra.mrb[92].mxu0 %vm152_vm3, %v3294_v53  ;;  %3008 = vmatmul.mubr.msk.bf16.gmra.mrb[92].mxu1 %vm152_vm3, %v3295_v54  ;;  %v3313_v53 = vld [vmem:[%s4912_s2 + $0x94] sm:$0xff]  }
  0xc2   :  { %2955 = vmatprep.mubr.msk.bf16.mxu0 %vm3354_vm2, %v4916_v0  ;;  %3011 = vmatprep.mubr.msk.bf16.mxu1 %vm3354_vm2, %v4916_v0 }
  0xc9   :  { %2956 = vmatmul.mubr.msk.bf16.gmra.mrb[96].mxu0 %vm152_vm3, %v3296_v55  ;;  %3012 = vmatmul.mubr.msk.bf16.gmra.mrb[96].mxu1 %vm152_vm3, %v3297_v56 }
  0xca   :  { %2959 = vmatprep.mubr.msk.bf16.mxu0 %vm3354_vm2, %v4916_v0  ;;  %3015 = vmatprep.mubr.msk.bf16.mxu1 %vm3354_vm2, %v4916_v0 }
  0xd1   :  { %2960 = vmatmul.mubr.msk.bf16.gmra.mrb[100].mxu0 %vm152_vm3, %v3298_v57  ;;  %3016 = vmatmul.mubr.msk.bf16.gmra.mrb[100].mxu1 %vm152_vm3, %v3299_v58 }
  0xd2   :  { %3023 = vmatprep.mubr.msk.bf16.mxu0 %vm3354_vm2, %v4916_v0  ;;  %3079 = vmatprep.mubr.msk.bf16.mxu1 %vm3354_vm2, %v4916_v0 }
  0xd9   :  { %3024 = vmatmul.mubr.msk.bf16.vlgmr.msra.gmra.mrb[104].mxu0 %vm152_vm3, %v3300_v59  ;;  %3080 = vmatmul.mubr.msk.bf16.vlgmr.msra.gmra.mrb[104].mxu1 %vm152_vm3, %v3301_v60 }
  0xda   :  { %3132 = vmatpush3.bf16.msra.mxu0 %v3395_v1  ;;  %3188 = vmatpush3.bf16.msra.mxu1 %v3395_v1  ;;  %v3302_v1 = vld [vmem:[%s4912_s2 + $0x8] sm:$0xff]  }
  0xdb   :  { %3027 = vmatprep.mubr.msk.bf16.mxu0 %vm3354_vm2, %v4916_v0  ;;  %3083 = vmatprep.mubr.msk.bf16.mxu1 %vm3354_vm2, %v4916_v0 }
  0xdc   :  { %v3756_v61 = vpop.f32.mrb[0].mxu0  ;;  %v3758_v62 = vpop.f32.mrb[0].mxu1  ;;  %3133 = vmatprep.subr.bf16.mxu0 %v4916_v0  ;;  %3189 = vmatprep.subr.bf16.mxu1 %v4916_v0 }
  0xdd   :  { %v2801_v63 = vpop.f32.mrb[1].mxu0  ;;  %v2857_v2 = vpop.f32.mrb[1].mxu1 }
  0xde   :  { %v3768_v4 = vpop.f32.mrb[2].mxu0  ;;  %v3770_v5 = vpop.f32.mrb[2].mxu1  ;;  %3134 = vmatpush3.bf16.msra.mxu0 %v3404_v6  ;;  %3190 = vmatpush3.bf16.msra.mxu1 %v3404_v6  ;;  %v3304_v6 = vld [vmem:[%s4912_s2 + $0x10] sm:$0xff]   ;;  %v3314_v2 = vld [vmem:[%s4912_s2 + $0x38] sm:$0xff]  }
  0xdf   :  { %v2802_v7 = vpop.f32.mrb[3].mxu0  ;;  %v2858_v8 = vpop.f32.mrb[3].mxu1 }
  0xe1   :  { %3028 = vmatmul.mubr.msk.bf16.gmra.mrb[108].mxu0 %vm152_vm3, %v3302_v1  ;;  %3084 = vmatmul.mubr.msk.bf16.gmra.mrb[108].mxu1 %vm152_vm3, %v3303_v3  ;;  %v3315_v1 = vld [vmem:[%s4912_s2 + $0x9c] sm:$0xff]  }
  0xe2   :  { %3031 = vmatprep.mubr.msk.bf16.mxu0 %vm3354_vm2, %v4916_v0  ;;  %3087 = vmatprep.mubr.msk.bf16.mxu1 %vm3354_vm2, %v4916_v0 }
  0xe4   :  { %v3780_v9 = vpop.f32.mrb[4].mxu0  ;;  %v3782_v10 = vpop.f32.mrb[4].mxu1 }
  0xe5   :  { %4993 = vst [vmem:[#allocation2_spill] sm:$0xff] %v3782_v10  ;;  %v2805_v11 = vpop.f32.mrb[5].mxu0  ;;  %v2861_v12 = vpop.f32.mrb[5].mxu1 }
  0xe6   :  { %v3790_v14 = vpop.f32.mrb[6].mxu0  ;;  %v3792_v15 = vpop.f32.mrb[6].mxu1 }
  0xe7   :  { %4994 = vst [vmem:[#allocation3_spill] sm:$0xff] %v3792_v15  ;;  %v2806_v16 = vpop.f32.mrb[7].mxu0  ;;  %v2862_v17 = vpop.f32.mrb[7].mxu1 }
  0xe8   :  { %v3316_v17 = vld [vmem:[%s4912_s2 + $0x40] sm:$0xff]  }
  0xe9   :  { %3032 = vmatmul.mubr.msk.bf16.gmra.mrb[112].mxu0 %vm152_vm3, %v3304_v6  ;;  %3088 = vmatmul.mubr.msk.bf16.gmra.mrb[112].mxu1 %vm152_vm3, %v3305_v13 }
  0xea   :  { %3035 = vmatprep.mubr.msk.bf16.mxu0 %vm3354_vm2, %v4916_v0  ;;  %3091 = vmatprep.mubr.msk.bf16.mxu1 %vm3354_vm2, %v4916_v0 }
  0xec   :  { %v3800_v18 = vpop.f32.mrb[8].mxu0  ;;  %v3802_v19 = vpop.f32.mrb[8].mxu1 }
  0xed   :  { %4995 = vst [vmem:[#allocation4_spill] sm:$0xff] %v3802_v19  ;;  %v2809_v20 = vpop.f32.mrb[9].mxu0  ;;  %v2865_v21 = vpop.f32.mrb[9].mxu1 }
  0xee   :  { %v3810_v24 = vpop.f32.mrb[10].mxu0  ;;  %v3812_v25 = vpop.f32.mrb[10].mxu1  ;;  %v3317_v20 = vld [vmem:[%s4912_s2 + $0xa4] sm:$0xff]  }
  0xef   :  { %4996 = vst [vmem:[#allocation5_spill] sm:$0xff] %v3812_v25  ;;  %v2810_v26 = vpop.f32.mrb[11].mxu0  ;;  %v2866_v27 = vpop.f32.mrb[11].mxu1 }
  0xf1   :  { %3036 = vmatmul.mubr.msk.bf16.gmra.mrb[116].mxu0 %vm152_vm3, %v3306_v22  ;;  %3092 = vmatmul.mubr.msk.bf16.gmra.mrb[116].mxu1 %vm152_vm3, %v3307_v23 }
  0xf2   :  { %3039 = vmatprep.mubr.msk.bf16.mxu0 %vm3354_vm2, %v4916_v0  ;;  %3095 = vmatprep.mubr.msk.bf16.mxu1 %vm3354_vm2, %v4916_v0 }
  0xf4   :  { %v3820_v28 = vpop.f32.mrb[12].mxu0  ;;  %v3822_v29 = vpop.f32.mrb[12].mxu1 }
  0xf5   :  { %4997 = vst [vmem:[#allocation6_spill] sm:$0xff] %v3822_v29  ;;  %v2813_v30 = vpop.f32.mrb[13].mxu0  ;;  %v2869_v31 = vpop.f32.mrb[13].mxu1 }
  0xf6   :  { %v3830_v34 = vpop.f32.mrb[14].mxu0  ;;  %v3832_v35 = vpop.f32.mrb[14].mxu1 }
  0xf7   :  { %4998 = vst [vmem:[#allocation7_spill] sm:$0xff] %v3832_v35  ;;  %v2814_v36 = vpop.f32.mrb[15].mxu0  ;;  %v2870_v37 = vpop.f32.mrb[15].mxu1 }
  0xf8   :  { %v3319_v36 = vld [vmem:[%s4912_s2 + $0xac] sm:$0xff]  }
  0xf9   :  { %3040 = vmatmul.mubr.msk.bf16.gmra.mrb[120].mxu0 %vm152_vm3, %v3308_v32  ;;  %3096 = vmatmul.mubr.msk.bf16.gmra.mrb[120].mxu1 %vm152_vm3, %v3309_v33  ;;  %v3318_v33 = vld [vmem:[%s4912_s2 + $0x48] sm:$0xff]  }
  0xfa   :  { %3043 = vmatprep.mubr.msk.bf16.mxu0 %vm3354_vm2, %v4916_v0  ;;  %3099 = vmatprep.mubr.msk.bf16.mxu1 %vm3354_vm2, %v4916_v0 }
  0xfc   :  { %v3840_v38 = vpop.f32.mrb[16].mxu0  ;;  %v3842_v39 = vpop.f32.mrb[16].mxu1 }
  0xfd   :  { %4999 = vst [vmem:[#allocation8_spill] sm:$0xff] %v3842_v39  ;;  %v2817_v40 = vpop.f32.mrb[17].mxu0  ;;  %v2873_v41 = vpop.f32.mrb[17].mxu1 }
  0xfe   :  { %v3850_v44 = vpop.f32.mrb[18].mxu0  ;;  %v3852_v45 = vpop.f32.mrb[18].mxu1 }
  0xff   :  { %5000 = vst [vmem:[#allocation9_spill] sm:$0xff] %v3852_v45  ;;  %v2818_v46 = vpop.f32.mrb[19].mxu0  ;;  %v2874_v47 = vpop.f32.mrb[19].mxu1 }
 0x101   :  { %3044 = vmatmul.mubr.msk.bf16.gmra.mrb[124].mxu0 %vm152_vm3, %v3310_v42  ;;  %3100 = vmatmul.mubr.msk.bf16.gmra.mrb[124].mxu1 %vm152_vm3, %v3311_v43 }
 0x102   :  { %3047 = vmatprep.mubr.msk.bf16.mxu0 %vm3354_vm2, %v4916_v0  ;;  %3103 = vmatprep.mubr.msk.bf16.mxu1 %vm3354_vm2, %v4916_v0 }
 0x104   :  { %v3860_v48 = vpop.f32.mrb[20].mxu0  ;;  %v3862_v49 = vpop.f32.mrb[20].mxu1 }
 0x105   :  { %5001 = vst [vmem:[#allocation10_spill] sm:$0xff] %v3862_v49  ;;  %v2821_v50 = vpop.f32.mrb[21].mxu0  ;;  %v2877_v51 = vpop.f32.mrb[21].mxu1 }
 0x106   :  { %v3870_v54 = vpop.f32.mrb[22].mxu0  ;;  %v3872_v55 = vpop.f32.mrb[22].mxu1  ;;  %v3320_v51 = vld [vmem:[%s4912_s2 + $0x50] sm:$0xff]  }
 0x107   :  { %5002 = vst [vmem:[#allocation11_spill] sm:$0xff] %v3870_v54  ;;  %5003 = vst [vmem:[#allocation12_spill] sm:$0xff] %v3872_v55  ;;  %v2822_v56 = vpop.f32.mrb[23].mxu0  ;;  %v2878_v57 = vpop.f32.mrb[23].mxu1 }
 0x109   :  { %3048 = vmatmul.mubr.msk.bf16.gmra.mrb[128].mxu0 %vm152_vm3, %v3312_v52  ;;  %3104 = vmatmul.mubr.msk.bf16.gmra.mrb[128].mxu1 %vm152_vm3, %v3313_v53  ;;  %v3321_v52 = vld [vmem:[%s4912_s2 + $0xb4] sm:$0xff]  }
 0x10a   :  { %3051 = vmatprep.mubr.msk.bf16.mxu0 %vm3354_vm2, %v4916_v0  ;;  %3107 = vmatprep.mubr.msk.bf16.mxu1 %vm3354_vm2, %v4916_v0 }
 0x10c   :  { %v3880_v58 = vpop.f32.mrb[24].mxu0  ;;  %v3882_v59 = vpop.f32.mrb[24].mxu1 }
 0x10d   :  { %5004 = vst [vmem:[#allocation13_spill] sm:$0xff] %v3880_v58  ;;  %5005 = vst [vmem:[#allocation14_spill] sm:$0xff] %v3882_v59  ;;  %v2825_v60 = vpop.f32.mrb[25].mxu0  ;;  %v2881_v63 = vpop.f32.mrb[25].mxu1 }
 0x10e   :  { %v3890_v3 = vpop.f32.mrb[26].mxu0  ;;  %v3892_v7 = vpop.f32.mrb[26].mxu1 }
 0x10f   :  { %5006 = vst [vmem:[#allocation15_spill] sm:$0xff] %v3890_v3  ;;  %5007 = vst [vmem:[#allocation16_spill] sm:$0xff] %v3892_v7  ;;  %v2826_v8 = vpop.f32.mrb[27].mxu0  ;;  %v2882_v11 = vpop.f32.mrb[27].mxu1 }
 0x110   :  { %v3322_v11 = vld [vmem:[%s4912_s2 + $0x58] sm:$0xff]  }
 0x111   :  { %3052 = vmatmul.mubr.msk.bf16.gmra.mrb[132].mxu0 %vm152_vm3, %v3314_v2  ;;  %3108 = vmatmul.mubr.msk.bf16.gmra.mrb[132].mxu1 %vm152_vm3, %v3315_v1 }
 0x112   :  { %3055 = vmatprep.mubr.msk.bf16.mxu0 %vm3354_vm2, %v4916_v0  ;;  %3111 = vmatprep.mubr.msk.bf16.mxu1 %vm3354_vm2, %v4916_v0 }
 0x114   :  { %v3900_v12 = vpop.f32.mrb[28].mxu0  ;;  %v3902_v6 = vpop.f32.mrb[28].mxu1 }
 0x115   :  { %5008 = vst [vmem:[#allocation17_spill] sm:$0xff] %v3900_v12  ;;  %5009 = vst [vmem:[#allocation18_spill] sm:$0xff] %v3902_v6  ;;  %v2829_v13 = vpop.f32.mrb[29].mxu0  ;;  %v2885_v16 = vpop.f32.mrb[29].mxu1 }
 0x116   :  { %v3910_v21 = vpop.f32.mrb[30].mxu0  ;;  %v3912_v22 = vpop.f32.mrb[30].mxu1  ;;  %v3323_v13 = vld [vmem:[%s4912_s2 + $0xbc] sm:$0xff]  }
 0x117   :  { %5010 = vst [vmem:[#allocation19_spill] sm:$0xff] %v3910_v21  ;;  %5011 = vst [vmem:[#allocation20_spill] sm:$0xff] %v3912_v22  ;;  %v2830_v23 = vpop.f32.mrb[31].mxu0  ;;  %v2886_v26 = vpop.f32.mrb[31].mxu1 }
 0x119   :  { %3056 = vmatmul.mubr.msk.bf16.gmra.mrb[136].mxu0 %vm152_vm3, %v3316_v17  ;;  %3112 = vmatmul.mubr.msk.bf16.gmra.mrb[136].mxu1 %vm152_vm3, %v3317_v20 }
 0x11a   :  { %3059 = vmatprep.mubr.msk.bf16.mxu0 %vm3354_vm2, %v4916_v0  ;;  %3115 = vmatprep.mubr.msk.bf16.mxu1 %vm3354_vm2, %v4916_v0 }
 0x11c   :  { %v3920_v27 = vpop.f32.mrb[32].mxu0  ;;  %v3922_v30 = vpop.f32.mrb[32].mxu1 }
 0x11d   :  { %5012 = vst [vmem:[#allocation21_spill] sm:$0xff] %v3920_v27  ;;  %5013 = vst [vmem:[#allocation22_spill] sm:$0xff] %v3922_v30  ;;  %v2833_v31 = vpop.f32.mrb[33].mxu0  ;;  %v2889_v32 = vpop.f32.mrb[33].mxu1 }
 0x11e   :  { %v3930_v37 = vpop.f32.mrb[34].mxu0  ;;  %v3932_v40 = vpop.f32.mrb[34].mxu1  ;;  %v3324_v32 = vld [vmem:[%s4912_s2 + $0x60] ss:$0 sps:$4 sm:$0x33]  }
 0x11f   :  { %5014 = vst [vmem:[#allocation23_spill] sm:$0xff] %v3930_v37  ;;  %5015 = vst [vmem:[#allocation24_spill] sm:$0xff] %v3932_v40  ;;  %v2834_v41 = vpop.f32.mrb[35].mxu0  ;;  %v2890_v42 = vpop.f32.mrb[35].mxu1 }
 0x120   :  { %v3325_v41 = vld [vmem:[%s4912_s2 + $0xc4] ss:$0 sps:$4 sm:$0x33]  }
 0x121   :  { %3060 = vmatmul.mubr.msk.bf16.gmra.mrb[140].mxu0 %vm152_vm3, %v3318_v33  ;;  %3116 = vmatmul.mubr.msk.bf16.gmra.mrb[140].mxu1 %vm152_vm3, %v3319_v36 }
 0x122   :  { %3063 = vmatprep.mubr.msk.bf16.mxu0 %vm3354_vm2, %v4916_v0  ;;  %3119 = vmatprep.mubr.msk.bf16.mxu1 %vm3354_vm2, %v4916_v0 }
 0x124   :  { %v3940_v43 = vpop.f32.mrb[36].mxu0  ;;  %v3942_v46 = vpop.f32.mrb[36].mxu1 }
 0x125   :  { %5016 = vst [vmem:[#allocation25_spill] sm:$0xff] %v3940_v43  ;;  %5017 = vst [vmem:[#allocation26_spill] sm:$0xff] %v3942_v46  ;;  %v2837_v47 = vpop.f32.mrb[37].mxu0  ;;  %v2893_v50 = vpop.f32.mrb[37].mxu1 }
 0x126   :  { %v3950_v53 = vpop.f32.mrb[38].mxu0  ;;  %v3952_v56 = vpop.f32.mrb[38].mxu1 }
 0x127   :  { %5018 = vst [vmem:[#allocation27_spill] sm:$0xff] %v3950_v53  ;;  %5019 = vst [vmem:[#allocation28_spill] sm:$0xff] %v3952_v56  ;;  %v2838_v57 = vpop.f32.mrb[39].mxu0  ;;  %v2894_v60 = vpop.f32.mrb[39].mxu1 }
 0x129   :  { %3064 = vmatmul.mubr.msk.bf16.gmra.mrb[144].mxu0 %vm152_vm3, %v3320_v51  ;;  %3120 = vmatmul.mubr.msk.bf16.gmra.mrb[144].mxu1 %vm152_vm3, %v3321_v52 }
 0x12a   :  { %3067 = vmatprep.mubr.msk.bf16.mxu0 %vm3354_vm2, %v4916_v0  ;;  %3123 = vmatprep.mubr.msk.bf16.mxu1 %vm3354_vm2, %v4916_v0 }
 0x12c   :  { %v3960_v63 = vpop.f32.mrb[40].mxu0  ;;  %v3962_v2 = vpop.f32.mrb[40].mxu1 }
 0x12d   :  { %5020 = vst [vmem:[#allocation29_spill] sm:$0xff] %v3960_v63  ;;  %5021 = vst [vmem:[#allocation30_spill] sm:$0xff] %v3962_v2  ;;  %v2841_v1 = vpop.f32.mrb[41].mxu0  ;;  %v2897_v8 = vpop.f32.mrb[41].mxu1 }
 0x12e   :  { %v3970_v16 = vpop.f32.mrb[42].mxu0  ;;  %v3972_v17 = vpop.f32.mrb[42].mxu1  ;;  %v3326_v8 = vld [vmem:[%s4913_s3] sm:$0xff]  }
 0x12f   :  { %5022 = vst [vmem:[#allocation31_spill] sm:$0xff] %v3970_v16  ;;  %5023 = vst [vmem:[#allocation32_spill] sm:$0xff] %v3972_v17  ;;  %v2842_v20 = vpop.f32.mrb[43].mxu0  ;;  %v2898_v23 = vpop.f32.mrb[43].mxu1 }
 0x131   :  { %3068 = vmatmul.mubr.msk.bf16.gmra.mrb[148].mxu0 %vm152_vm3, %v3322_v11  ;;  %3124 = vmatmul.mubr.msk.bf16.gmra.mrb[148].mxu1 %vm152_vm3, %v3323_v13  ;;  %v3327_v11 = vld [vmem:[%s4913_s3 + $0x64] sm:$0xff]  }
 0x132   :  { %3071 = vmatprep.mubr.msk.bf16.mxu0 %vm3354_vm2, %v4916_v0  ;;  %3127 = vmatprep.mubr.msk.bf16.mxu1 %vm3354_vm2, %v4916_v0 }
 0x134   :  { %v3980_v26 = vpop.f32.mrb[44].mxu0  ;;  %v3982_v31 = vpop.f32.mrb[44].mxu1 }
 0x135   :  { %5024 = vst [vmem:[#allocation33_spill] sm:$0xff] %v3980_v26  ;;  %5025 = vst [vmem:[#allocation34_spill] sm:$0xff] %v3982_v31  ;;  %v2845_v33 = vpop.f32.mrb[45].mxu0  ;;  %v2901_v36 = vpop.f32.mrb[45].mxu1 }
 0x136   :  { %v3990_v42 = vpop.f32.mrb[46].mxu0  ;;  %v3992_v47 = vpop.f32.mrb[46].mxu1 }
 0x137   :  { %5026 = vst [vmem:[#allocation35_spill] sm:$0xff] %v3990_v42  ;;  %5027 = vst [vmem:[#allocation36_spill] sm:$0xff] %v3992_v47  ;;  %v2846_v50 = vpop.f32.mrb[47].mxu0  ;;  %v2902_v51 = vpop.f32.mrb[47].mxu1 }
 0x139   :  { %3072 = vmatmul.mubr.msk.bf16.gmra.mrb[152].mxu0 %vm152_vm3, %v3324_v32  ;;  %3128 = vmatmul.mubr.msk.bf16.gmra.mrb[152].mxu1 %vm152_vm3, %v3325_v41 }
 0x13a   :  { %3135 = vmatprep.mubr.msk.bf16.mxu0 %vm3354_vm2, %v4916_v0  ;;  %3191 = vmatprep.mubr.msk.bf16.mxu1 %vm3354_vm2, %v4916_v0 }
 0x13c   :  { %v4000_v52 = vpop.f32.mrb[48].mxu0  ;;  %v4002_v57 = vpop.f32.mrb[48].mxu1 }
 0x13d   :  { %5028 = vst [vmem:[#allocation37_spill] sm:$0xff] %v4000_v52  ;;  %5029 = vst [vmem:[#allocation38_spill] sm:$0xff] %v4002_v57  ;;  %v2849_v60 = vpop.f32.mrb[49].mxu0  ;;  %v2905_v1 = vpop.f32.mrb[49].mxu1 }
 0x13e   :  { %v332_v13 = vpop.f32.mrb[50].mxu0  ;;  %v570_v20 = vpop.f32.mrb[50].mxu1  ;;  %v3328_v1 = vld [vmem:[%s4913_s3 + $0x8] sm:$0xff]  }
 0x13f   :  { %v2850_v23 = vpop.f32.mrb[51].mxu0  ;;  %v2906_v32 = vpop.f32.mrb[51].mxu1 }
 0x140   :  { %v3331_v23 = vld [vmem:[%s4913_s3 + $0x74] sm:$0xff]  }
 0x141   :  { %3136 = vmatmul.mubr.msk.bf16.vlgmr.msra.gmra.mrb[156].mxu0 %vm152_vm3, %v3326_v8  ;;  %3192 = vmatmul.mubr.msk.bf16.vlgmr.msra.gmra.mrb[156].mxu1 %vm152_vm3, %v3327_v11  ;;  %v3329_v8 = vld [vmem:[%s4913_s3 + $0x6c] sm:$0xff]  }
 0x142   :  { %3139 = vmatprep.mubr.msk.bf16.mxu0 %vm3354_vm2, %v4916_v0  ;;  %3195 = vmatprep.mubr.msk.bf16.mxu1 %vm3354_vm2, %v4916_v0 }
 0x144   :  { %v4016_v33 = vpop.f32.mrb[52].mxu0  ;;  %v4018_v36 = vpop.f32.mrb[52].mxu1 }
 0x145   :  { %v2913_v51 = vpop.f32.mrb[53].mxu0  ;;  %v2969_v60 = vpop.f32.mrb[53].mxu1 }
 0x146   :  { %v4030_v11 = vpop.f32.mrb[54].mxu0  ;;  %v4032_v13 = vpop.f32.mrb[54].mxu1 }
 0x147   :  { %v2914_v32 = vpop.f32.mrb[55].mxu0  ;;  %v2970_v51 = vpop.f32.mrb[55].mxu1 }
 0x148   :  { %v3333_v32 = vld [vmem:[%s4913_s3 + $0x7c] sm:$0xff]  }
 0x149   :  { %3140 = vmatmul.mubr.msk.bf16.gmra.mrb[160].mxu0 %vm152_vm3, %v3328_v1  ;;  %3196 = vmatmul.mubr.msk.bf16.gmra.mrb[160].mxu1 %vm152_vm3, %v3329_v8  ;;  %v3330_v8 = vld [vmem:[%s4913_s3 + $0x10] sm:$0xff]  }
 0x14a   :  { %3143 = vmatprep.mubr.msk.bf16.mxu0 %vm3354_vm2, %v4916_v0  ;;  %3199 = vmatprep.mubr.msk.bf16.mxu1 %vm3354_vm2, %v4916_v0 }
 0x14c   :  { %v4044_v60 = vpop.f32.mrb[56].mxu0  ;;  %v4046_v50 = vpop.f32.mrb[56].mxu1 }
 0x14d   :  { %5030 = vst [vmem:[#allocation39_spill] sm:$0xff] %v4044_v60  ;;  %5031 = vst [vmem:[#allocation40_spill] sm:$0xff] %v4046_v50  ;;  %v2917_v51 = vpop.f32.mrb[57].mxu0  ;;  %v2973_v1 = vpop.f32.mrb[57].mxu1  ;;  %v5033_v50 = vmov 0.0  }
 0x14e   :  { %v4058_v41 = vpop.f32.mrb[58].mxu0  ;;  %v4060_v0 = vpop.f32.mrb[58].mxu1 }
 0x14f   :  { %5032 = vst [vmem:[#allocation41_spill] sm:$0xff] %v4060_v0  ;;  %v2918_v51 = vpop.f32.mrb[59].mxu0  ;;  %v2974_v1 = vpop.f32.mrb[59].mxu1 }
 0x150   :  { %v3335_v51 = vld [vmem:[%s4913_s3 + $0x84] sm:$0xff]  }
 0x151   :  { %3144 = vmatmul.mubr.msk.bf16.gmra.mrb[164].mxu0 %vm152_vm3, %v3330_v8  ;;  %3200 = vmatmul.mubr.msk.bf16.gmra.mrb[164].mxu1 %vm152_vm3, %v3331_v23  ;;  %v3332_v23 = vld [vmem:[%s4913_s3 + $0x18] sm:$0xff]  }
 0x152   :  { %3147 = vmatprep.mubr.msk.bf16.mxu0 %vm3354_vm2, %v5033_v50  ;;  %3203 = vmatprep.mubr.msk.bf16.mxu1 %vm3354_vm2, %v5033_v50 }
 0x154   :  { %v4072_v10 = vpop.f32.mrb[60].mxu0  ;;  %v4074_v60 = vpop.f32.mrb[60].mxu1 }
 0x155   :  { %5034 = vst [vmem:[#allocation42_spill] sm:$0xff] %v4074_v60  ;;  %v2921_v1 = vpop.f32.mrb[61].mxu0  ;;  %v2977_v8 = vpop.f32.mrb[61].mxu1 }
 0x156   :  { %v4086_v0 = vpop.f32.mrb[62].mxu0  ;;  %v4088_v15 = vpop.f32.mrb[62].mxu1 }
 0x157   :  { %5035 = vst [vmem:[#allocation43_spill] sm:$0xff] %v4088_v15  ;;  %v2922_v1 = vpop.f32.mrb[63].mxu0  ;;  %v2978_v8 = vpop.f32.mrb[63].mxu1 }
 0x158   :  { %v3337_v1 = vld [vmem:[%s4913_s3 + $0x8c] sm:$0xff]  }
 0x159   :  { %3148 = vmatmul.mubr.msk.bf16.gmra.mrb[168].mxu0 %vm152_vm3, %v3332_v23  ;;  %3204 = vmatmul.mubr.msk.bf16.gmra.mrb[168].mxu1 %vm152_vm3, %v3333_v32  ;;  %v3334_v32 = vld [vmem:[%s4913_s3 + $0x20] sm:$0xff]  }
 0x15a   :  { %3151 = vmatprep.mubr.msk.bf16.mxu0 %vm3354_vm2, %v5033_v50  ;;  %3207 = vmatprep.mubr.msk.bf16.mxu1 %vm3354_vm2, %v5033_v50 }
 0x15c   :  { %v4100_v60 = vpop.f32.mrb[64].mxu0  ;;  %v4102_v19 = vpop.f32.mrb[64].mxu1 }
 0x15d   :  { %5036 = vst [vmem:[#allocation44_spill] sm:$0xff] %v4102_v19  ;;  %v2925_v8 = vpop.f32.mrb[65].mxu0  ;;  %v2981_v23 = vpop.f32.mrb[65].mxu1 }
 0x15e   :  { %v4114_v15 = vpop.f32.mrb[66].mxu0  ;;  %v4116_v25 = vpop.f32.mrb[66].mxu1 }
 0x15f   :  { %5037 = vst [vmem:[#allocation45_spill] sm:$0xff] %v4116_v25  ;;  %v2926_v8 = vpop.f32.mrb[67].mxu0  ;;  %v2982_v23 = vpop.f32.mrb[67].mxu1 }
 0x160   :  { %v3339_v8 = vld [vmem:[%s4913_s3 + $0x94] sm:$0xff]  }
 0x161   :  { %3152 = vmatmul.mubr.msk.bf16.gmra.mrb[172].mxu0 %vm152_vm3, %v3334_v32  ;;  %3208 = vmatmul.mubr.msk.bf16.gmra.mrb[172].mxu1 %vm152_vm3, %v3335_v51  ;;  %v3336_v51 = vld [vmem:[%s4913_s3 + $0x28] sm:$0xff]  }
 0x162   :  { %3155 = vmatprep.mubr.msk.bf16.mxu0 %vm3354_vm2, %v5033_v50  ;;  %3211 = vmatprep.mubr.msk.bf16.mxu1 %vm3354_vm2, %v5033_v50 }
 0x164   :  { %v4128_v19 = vpop.f32.mrb[68].mxu0  ;;  %v4130_v29 = vpop.f32.mrb[68].mxu1 }
 0x165   :  { %5038 = vst [vmem:[#allocation46_spill] sm:$0xff] %v4130_v29  ;;  %v2929_v23 = vpop.f32.mrb[69].mxu0  ;;  %v2985_v32 = vpop.f32.mrb[69].mxu1 }
 0x166   :  { %v4142_v25 = vpop.f32.mrb[70].mxu0  ;;  %v4144_v35 = vpop.f32.mrb[70].mxu1 }
 0x167   :  { %5039 = vst [vmem:[#allocation47_spill] sm:$0xff] %v4144_v35  ;;  %v2930_v23 = vpop.f32.mrb[71].mxu0  ;;  %v2986_v32 = vpop.f32.mrb[71].mxu1 }
 0x168   :  { %v3341_v23 = vld [vmem:[%s4913_s3 + $0x9c] sm:$0xff]  }
 0x169   :  { %3156 = vmatmul.mubr.msk.bf16.gmra.mrb[176].mxu0 %vm152_vm3, %v3336_v51  ;;  %3212 = vmatmul.mubr.msk.bf16.gmra.mrb[176].mxu1 %vm152_vm3, %v3337_v1  ;;  %v3338_v1 = vld [vmem:[%s4913_s3 + $0x30] sm:$0xff]  }
 0x16a   :  { %3159 = vmatprep.mubr.msk.bf16.mxu0 %vm3354_vm2, %v5033_v50  ;;  %3215 = vmatprep.mubr.msk.bf16.mxu1 %vm3354_vm2, %v5033_v50 }
 0x16c   :  { %v4156_v29 = vpop.f32.mrb[72].mxu0  ;;  %v4158_v39 = vpop.f32.mrb[72].mxu1 }
 0x16d   :  { %5040 = vst [vmem:[#allocation48_spill] sm:$0xff] %v4158_v39  ;;  %v2933_v32 = vpop.f32.mrb[73].mxu0  ;;  %v2989_v51 = vpop.f32.mrb[73].mxu1 }
 0x16e   :  { %v4170_v35 = vpop.f32.mrb[74].mxu0  ;;  %v4172_v45 = vpop.f32.mrb[74].mxu1 }
 0x16f   :  { %5041 = vst [vmem:[#allocation49_spill] sm:$0xff] %v4170_v35  ;;  %5042 = vst [vmem:[#allocation50_spill] sm:$0xff] %v4172_v45  ;;  %v2934_v32 = vpop.f32.mrb[75].mxu0  ;;  %v2990_v51 = vpop.f32.mrb[75].mxu1 }
 0x170   :  { %v3343_v32 = vld [vmem:[%s4913_s3 + $0xa4] sm:$0xff]  }
 0x171   :  { %3160 = vmatmul.mubr.msk.bf16.gmra.mrb[180].mxu0 %vm152_vm3, %v3338_v1  ;;  %3216 = vmatmul.mubr.msk.bf16.gmra.mrb[180].mxu1 %vm152_vm3, %v3339_v8  ;;  %v3340_v8 = vld [vmem:[%s4913_s3 + $0x38] sm:$0xff]  }
 0x172   :  { %3163 = vmatprep.mubr.msk.bf16.mxu0 %vm3354_vm2, %v5033_v50  ;;  %3219 = vmatprep.mubr.msk.bf16.mxu1 %vm3354_vm2, %v5033_v50 }
 0x174   :  { %v4184_v39 = vpop.f32.mrb[76].mxu0  ;;  %v4186_v49 = vpop.f32.mrb[76].mxu1 }
 0x175   :  { %5043 = vst [vmem:[#allocation51_spill] sm:$0xff] %v4184_v39  ;;  %5044 = vst [vmem:[#allocation52_spill] sm:$0xff] %v4186_v49  ;;  %v2937_v51 = vpop.f32.mrb[77].mxu0  ;;  %v2993_v1 = vpop.f32.mrb[77].mxu1 }
 0x176   :  { %v4198_v45 = vpop.f32.mrb[78].mxu0  ;;  %v4200_v55 = vpop.f32.mrb[78].mxu1 }
 0x177   :  { %5045 = vst [vmem:[#allocation53_spill] sm:$0xff] %v4198_v45  ;;  %5046 = vst [vmem:[#allocation54_spill] sm:$0xff] %v4200_v55  ;;  %v2938_v51 = vpop.f32.mrb[79].mxu0  ;;  %v2994_v1 = vpop.f32.mrb[79].mxu1 }
 0x178   :  { %v3345_v51 = vld [vmem:[%s4913_s3 + $0xac] sm:$0xff]  }
 0x179   :  { %3164 = vmatmul.mubr.msk.bf16.gmra.mrb[184].mxu0 %vm152_vm3, %v3340_v8  ;;  %3220 = vmatmul.mubr.msk.bf16.gmra.mrb[184].mxu1 %vm152_vm3, %v3341_v23  ;;  %v3342_v23 = vld [vmem:[%s4913_s3 + $0x40] sm:$0xff]  }
 0x17a   :  { %3167 = vmatprep.mubr.msk.bf16.mxu0 %vm3354_vm2, %v5033_v50  ;;  %3223 = vmatprep.mubr.msk.bf16.mxu1 %vm3354_vm2, %v5033_v50 }
 0x17c   :  { %v4212_v49 = vpop.f32.mrb[80].mxu0  ;;  %v4214_v59 = vpop.f32.mrb[80].mxu1 }
 0x17d   :  { %5047 = vst [vmem:[#allocation55_spill] sm:$0xff] %v4212_v49  ;;  %5048 = vst [vmem:[#allocation56_spill] sm:$0xff] %v4214_v59  ;;  %v2941_v1 = vpop.f32.mrb[81].mxu0  ;;  %v2997_v8 = vpop.f32.mrb[81].mxu1 }
 0x17e   :  { %v4226_v55 = vpop.f32.mrb[82].mxu0  ;;  %v4228_v7 = vpop.f32.mrb[82].mxu1 }
 0x17f   :  { %5049 = vst [vmem:[#allocation57_spill] sm:$0xff] %v4226_v55  ;;  %5050 = vst [vmem:[#allocation58_spill] sm:$0xff] %v4228_v7  ;;  %v2942_v1 = vpop.f32.mrb[83].mxu0  ;;  %v2998_v8 = vpop.f32.mrb[83].mxu1 }
 0x180   :  { %v3347_v1 = vld [vmem:[%s4913_s3 + $0xb4] sm:$0xff]  }
 0x181   :  { %3168 = vmatmul.mubr.msk.bf16.gmra.mrb[188].mxu0 %vm152_vm3, %v3342_v23  ;;  %3224 = vmatmul.mubr.msk.bf16.gmra.mrb[188].mxu1 %vm152_vm3, %v3343_v32  ;;  %v3344_v32 = vld [vmem:[%s4913_s3 + $0x48] sm:$0xff]  }
 0x182   :  { %3171 = vmatprep.mubr.msk.bf16.mxu0 %vm3354_vm2, %v5033_v50  ;;  %3227 = vmatprep.mubr.msk.bf16.mxu1 %vm3354_vm2, %v5033_v50 }
 0x184   :  { %v4240_v59 = vpop.f32.mrb[84].mxu0  ;;  %v4242_v6 = vpop.f32.mrb[84].mxu1 }
 0x185   :  { %5051 = vst [vmem:[#allocation59_spill] sm:$0xff] %v4240_v59  ;;  %5052 = vst [vmem:[#allocation60_spill] sm:$0xff] %v4242_v6  ;;  %v2945_v8 = vpop.f32.mrb[85].mxu0  ;;  %v3001_v23 = vpop.f32.mrb[85].mxu1 }
 0x186   :  { %v4254_v7 = vpop.f32.mrb[86].mxu0  ;;  %v4256_v22 = vpop.f32.mrb[86].mxu1 }
 0x187   :  { %5053 = vst [vmem:[#allocation61_spill] sm:$0xff] %v4254_v7  ;;  %5054 = vst [vmem:[#allocation62_spill] sm:$0xff] %v4256_v22  ;;  %v2946_v8 = vpop.f32.mrb[87].mxu0  ;;  %v3002_v23 = vpop.f32.mrb[87].mxu1 }
 0x188   :  { %v3349_v8 = vld [vmem:[%s4913_s3 + $0xbc] sm:$0xff]  }
 0x189   :  { %3172 = vmatmul.mubr.msk.bf16.gmra.mrb[192].mxu0 %vm152_vm3, %v3344_v32  ;;  %3228 = vmatmul.mubr.msk.bf16.gmra.mrb[192].mxu1 %vm152_vm3, %v3345_v51  ;;  %v3346_v51 = vld [vmem:[%s4913_s3 + $0x50] sm:$0xff]  }
 0x18a   :  { %3175 = vmatprep.mubr.msk.bf16.mxu0 %vm3354_vm2, %v5033_v50  ;;  %3231 = vmatprep.mubr.msk.bf16.mxu1 %vm3354_vm2, %v5033_v50 }
 0x18c   :  { %v4268_v6 = vpop.f32.mrb[88].mxu0  ;;  %v4270_v30 = vpop.f32.mrb[88].mxu1 }
 0x18d   :  { %5055 = vst [vmem:[#allocation63_spill] sm:$0xff] %v4268_v6  ;;  %5056 = vst [vmem:[#allocation64_spill] sm:$0xff] %v4270_v30  ;;  %v2949_v23 = vpop.f32.mrb[89].mxu0  ;;  %v3005_v32 = vpop.f32.mrb[89].mxu1 }
 0x18e   :  { %v4282_v22 = vpop.f32.mrb[90].mxu0  ;;  %v4284_v40 = vpop.f32.mrb[90].mxu1 }
 0x18f   :  { %5057 = vst [vmem:[#allocation65_spill] sm:$0xff] %v4282_v22  ;;  %5058 = vst [vmem:[#allocation66_spill] sm:$0xff] %v4284_v40  ;;  %v2950_v23 = vpop.f32.mrb[91].mxu0  ;;  %v3006_v32 = vpop.f32.mrb[91].mxu1 }
 0x190   :  { %v3350_v23 = vld [vmem:[%s4913_s3 + $0x60] ss:$0 sps:$4 sm:$0x33]  }
 0x191   :  { %3176 = vmatmul.mubr.msk.bf16.gmra.mrb[196].mxu0 %vm152_vm3, %v3346_v51  ;;  %3232 = vmatmul.mubr.msk.bf16.gmra.mrb[196].mxu1 %vm152_vm3, %v3347_v1  ;;  %v3348_v1 = vld [vmem:[%s4913_s3 + $0x58] sm:$0xff]  }
 0x192   :  { %3179 = vmatprep.mubr.msk.bf16.mxu0 %vm3354_vm2, %v5033_v50  ;;  %3235 = vmatprep.mubr.msk.bf16.mxu1 %vm3354_vm2, %v5033_v50 }
 0x194   :  { %v4296_v30 = vpop.f32.mrb[92].mxu0  ;;  %v4298_v46 = vpop.f32.mrb[92].mxu1 }
 0x195   :  { %5059 = vst [vmem:[#allocation67_spill] sm:$0xff] %v4296_v30  ;;  %5060 = vst [vmem:[#allocation68_spill] sm:$0xff] %v4298_v46  ;;  %v2953_v32 = vpop.f32.mrb[93].mxu0  ;;  %v3009_v51 = vpop.f32.mrb[93].mxu1 }
 0x196   :  { %v4310_v40 = vpop.f32.mrb[94].mxu0  ;;  %v4312_v56 = vpop.f32.mrb[94].mxu1 }
 0x197   :  { %5061 = vst [vmem:[#allocation69_spill] sm:$0xff] %v4310_v40  ;;  %5062 = vst [vmem:[#allocation70_spill] sm:$0xff] %v4312_v56  ;;  %v2954_v32 = vpop.f32.mrb[95].mxu0  ;;  %v3010_v51 = vpop.f32.mrb[95].mxu1 }
 0x199   :  { %3180 = vmatmul.mubr.msk.bf16.gmra.mrb[200].mxu0 %vm152_vm3, %v3348_v1  ;;  %3236 = vmatmul.mubr.msk.bf16.gmra.mrb[200].mxu1 %vm152_vm3, %v3349_v8 }
 0x19a   :  { %3183 = vmatprep.mubr.msk.bf16.mxu0 %vm3354_vm2, %v5033_v50  ;;  %3239 = vmatprep.mubr.msk.bf16.mxu1 %vm3354_vm2, %v5033_v50  ;;  %v3351_v50 = vld [vmem:[%s4913_s3 + $0xc4] ss:$0 sps:$4 sm:$0x33]  }
 0x19c   :  { %v4324_v46 = vpop.f32.mrb[96].mxu0  ;;  %v4326_v2 = vpop.f32.mrb[96].mxu1 }
 0x19d   :  { %5063 = vst [vmem:[#allocation71_spill] sm:$0xff] %v4324_v46  ;;  %5064 = vst [vmem:[#allocation72_spill] sm:$0xff] %v4326_v2  ;;  %v2957_v1 = vpop.f32.mrb[97].mxu0  ;;  %v3013_v51 = vpop.f32.mrb[97].mxu1 }
 0x19e   :  { %v4338_v20 = vpop.f32.mrb[98].mxu0  ;;  %v4340_v56 = vpop.f32.mrb[98].mxu1 }
 0x19f   :  { %5065 = vst [vmem:[#allocation73_spill] sm:$0xff] %v4338_v20  ;;  %5066 = vst [vmem:[#allocation74_spill] sm:$0xff] %v4340_v56  ;;  %v2958_v32 = vpop.f32.mrb[99].mxu0  ;;  %v3014_v46 = vpop.f32.mrb[99].mxu1 }
 0x1a1   :  { %3184 = vmatmul.mubr.msk.bf16.gmra.mrb[204].mxu0 %vm152_vm3, %v3350_v23  ;;  %3240 = vmatmul.mubr.msk.bf16.gmra.mrb[204].mxu1 %vm152_vm3, %v3351_v50 }
 0x1a4   :  { %v4348_v1 = vpop.f32.mrb[100].mxu0  ;;  %v4350_v51 = vpop.f32.mrb[100].mxu1 }
 0x1a5   :  { %5067 = vst [vmem:[#allocation75_spill] sm:$0xff] %v4348_v1  ;;  %5068 = vst [vmem:[#allocation76_spill] sm:$0xff] %v4350_v51  ;;  %v2961_v17 = vpop.f32.mrb[101].mxu0  ;;  %v3017_v20 = vpop.f32.mrb[101].mxu1 }
 0x1a6   :  { %v858_v42 = vpop.f32.mrb[102].mxu0  ;;  %v1096_v40 = vpop.f32.mrb[102].mxu1 }
 0x1a7   :  { %v2962_v32 = vpop.f32.mrb[103].mxu0  ;;  %v3018_v46 = vpop.f32.mrb[103].mxu1 }
 0x1ac   :  { %v4356_v56 = vpop.f32.mrb[104].mxu0  ;;  %v4358_v23 = vpop.f32.mrb[104].mxu1 }
 0x1ad   :  { %v3025_v50 = vpop.f32.mrb[105].mxu0  ;;  %v3081_v47 = vpop.f32.mrb[105].mxu1 }
 0x1ae   :  { %v4360_v31 = vpop.f32.mrb[106].mxu0  ;;  %v4362_v26 = vpop.f32.mrb[106].mxu1 }
 0x1af   :  { %v3026_v8 = vpop.f32.mrb[107].mxu0  ;;  %v3082_v1 = vpop.f32.mrb[107].mxu1 }
 0x1b4   :  { %v4364_v52 = vpop.f32.mrb[108].mxu0  ;;  %v4366_v17 = vpop.f32.mrb[108].mxu1 }
 0x1b5   :  { %v3029_v42 = vpop.f32.mrb[109].mxu0  ;;  %v3085_v40 = vpop.f32.mrb[109].mxu1 }
 0x1b6   :  { %v4368_v20 = vpop.f32.mrb[110].mxu0  ;;  %v4370_v32 = vpop.f32.mrb[110].mxu1 }
 0x1b7   :  { %v3030_v46 = vpop.f32.mrb[111].mxu0  ;;  %v3086_v2 = vpop.f32.mrb[111].mxu1 }
 0x1bc   :  { %v4372_v50 = vpop.f32.mrb[112].mxu0  ;;  %v4374_v47 = vpop.f32.mrb[112].mxu1 }
 0x1bd   :  { %v3033_v51 = vpop.f32.mrb[113].mxu0  ;;  %v3089_v57 = vpop.f32.mrb[113].mxu1 }
 0x1be   :  { %v4376_v8 = vpop.f32.mrb[114].mxu0  ;;  %v4378_v1 = vpop.f32.mrb[114].mxu1 }
 0x1bf   :  { %v3034_v16 = vpop.f32.mrb[115].mxu0  ;;  %v3090_v30 = vpop.f32.mrb[115].mxu1 }
 0x1c4   :  { %v4380_v42 = vpop.f32.mrb[116].mxu0  ;;  %v4382_v40 = vpop.f32.mrb[116].mxu1 }
 0x1c5   :  { %v3037_v63 = vpop.f32.mrb[117].mxu0  ;;  %v3093_v22 = vpop.f32.mrb[117].mxu1 }
 0x1c6   :  { %v4384_v46 = vpop.f32.mrb[118].mxu0  ;;  %v4386_v2 = vpop.f32.mrb[118].mxu1 }
 0x1c7   :  { %v3038_v53 = vpop.f32.mrb[119].mxu0  ;;  %v3094_v6 = vpop.f32.mrb[119].mxu1 }
 0x1cc   :  { %v4388_v51 = vpop.f32.mrb[120].mxu0  ;;  %v4390_v57 = vpop.f32.mrb[120].mxu1 }
 0x1cd   :  { %v3041_v43 = vpop.f32.mrb[121].mxu0  ;;  %v3097_v7 = vpop.f32.mrb[121].mxu1 }
 0x1ce   :  { %v4392_v16 = vpop.f32.mrb[122].mxu0  ;;  %v4394_v30 = vpop.f32.mrb[122].mxu1 }
 0x1cf   :  { %v3042_v37 = vpop.f32.mrb[123].mxu0  ;;  %v3098_v59 = vpop.f32.mrb[123].mxu1 }
 0x1d4   :  { %v4396_v63 = vpop.f32.mrb[124].mxu0  ;;  %v4398_v22 = vpop.f32.mrb[124].mxu1 }
 0x1d5   :  { %v3045_v27 = vpop.f32.mrb[125].mxu0  ;;  %v3101_v55 = vpop.f32.mrb[125].mxu1 }
 0x1d6   :  { %v4400_v53 = vpop.f32.mrb[126].mxu0  ;;  %v4402_v6 = vpop.f32.mrb[126].mxu1 }
 0x1d7   :  { %5069 = vst [vmem:[#allocation77_spill] sm:$0xff] %v4402_v6  ;;  %v3046_v21 = vpop.f32.mrb[127].mxu0  ;;  %v3102_v49 = vpop.f32.mrb[127].mxu1 }
 0x1dc   :  { %v4404_v43 = vpop.f32.mrb[128].mxu0  ;;  %v4406_v7 = vpop.f32.mrb[128].mxu1 }
 0x1dd   :  { %5070 = vst [vmem:[#allocation78_spill] sm:$0xff] %v4404_v43  ;;  %5071 = vst [vmem:[#allocation79_spill] sm:$0xff] %v4406_v7  ;;  %v3049_v12 = vpop.f32.mrb[129].mxu0  ;;  %v3105_v45 = vpop.f32.mrb[129].mxu1 }
 0x1de   :  { %v4408_v37 = vpop.f32.mrb[130].mxu0  ;;  %v4410_v59 = vpop.f32.mrb[130].mxu1 }
 0x1df   :  { %5072 = vst [vmem:[#allocation80_spill] sm:$0xff] %v4408_v37  ;;  %5073 = vst [vmem:[#allocation81_spill] sm:$0xff] %v4410_v59  ;;  %v3050_v3 = vpop.f32.mrb[131].mxu0  ;;  %v3106_v39 = vpop.f32.mrb[131].mxu1 }
 0x1e4   :  { %v4412_v27 = vpop.f32.mrb[132].mxu0  ;;  %v4414_v55 = vpop.f32.mrb[132].mxu1 }
 0x1e5   :  { %5074 = vst [vmem:[#allocation82_spill] sm:$0xff] %v4412_v27  ;;  %5075 = vst [vmem:[#allocation83_spill] sm:$0xff] %v4414_v55  ;;  %v3053_v58 = vpop.f32.mrb[133].mxu0  ;;  %v3109_v35 = vpop.f32.mrb[133].mxu1 }
 0x1e6   :  { %v4416_v21 = vpop.f32.mrb[134].mxu0  ;;  %v4418_v49 = vpop.f32.mrb[134].mxu1 }
 0x1e7   :  { %5076 = vst [vmem:[#allocation84_spill] sm:$0xff] %v4416_v21  ;;  %5077 = vst [vmem:[#allocation85_spill] sm:$0xff] %v4418_v49  ;;  %v3054_v43 = vpop.f32.mrb[135].mxu0  ;;  %v3110_v7 = vpop.f32.mrb[135].mxu1 }
 0x1ec   :  { %v4420_v12 = vpop.f32.mrb[136].mxu0  ;;  %v4422_v45 = vpop.f32.mrb[136].mxu1 }
 0x1ed   :  { %5078 = vst [vmem:[#allocation86_spill] sm:$0xff] %v4420_v12  ;;  %5079 = vst [vmem:[#allocation87_spill] sm:$0xff] %v4422_v45  ;;  %v3057_v37 = vpop.f32.mrb[137].mxu0  ;;  %v3113_v59 = vpop.f32.mrb[137].mxu1 }
 0x1ee   :  { %v4424_v3 = vpop.f32.mrb[138].mxu0  ;;  %v4426_v39 = vpop.f32.mrb[138].mxu1 }
 0x1ef   :  { %5080 = vst [vmem:[#allocation88_spill] sm:$0xff] %v4424_v3  ;;  %5081 = vst [vmem:[#allocation89_spill] sm:$0xff] %v4426_v39  ;;  %v3058_v27 = vpop.f32.mrb[139].mxu0  ;;  %v3114_v55 = vpop.f32.mrb[139].mxu1 }
 0x1f4   :  { %v4428_v58 = vpop.f32.mrb[140].mxu0  ;;  %v4430_v35 = vpop.f32.mrb[140].mxu1 }
 0x1f5   :  { %5082 = vst [vmem:[#allocation90_spill] sm:$0xff] %v4428_v58  ;;  %5083 = vst [vmem:[#allocation91_spill] sm:$0xff] %v4430_v35  ;;  %v3061_v21 = vpop.f32.mrb[141].mxu0  ;;  %v3117_v49 = vpop.f32.mrb[141].mxu1 }
 0x1f6   :  { %v4432_v43 = vpop.f32.mrb[142].mxu0  ;;  %v4434_v7 = vpop.f32.mrb[142].mxu1 }
 0x1f7   :  { %5084 = vst [vmem:[#allocation92_spill] sm:$0xff] %v4432_v43  ;;  %5085 = vst [vmem:[#allocation93_spill] sm:$0xff] %v4434_v7  ;;  %v3062_v12 = vpop.f32.mrb[143].mxu0  ;;  %v3118_v45 = vpop.f32.mrb[143].mxu1 }
 0x1fc   :  { %v4436_v37 = vpop.f32.mrb[144].mxu0  ;;  %v4438_v59 = vpop.f32.mrb[144].mxu1 }
 0x1fd   :  { %5086 = vst [vmem:[#allocation94_spill] sm:$0xff] %v4436_v37  ;;  %5087 = vst [vmem:[#allocation95_spill] sm:$0xff] %v4438_v59  ;;  %v3065_v3 = vpop.f32.mrb[145].mxu0  ;;  %v3121_v39 = vpop.f32.mrb[145].mxu1 }
 0x1fe   :  { %v4440_v27 = vpop.f32.mrb[146].mxu0  ;;  %v4442_v55 = vpop.f32.mrb[146].mxu1 }
 0x1ff   :  { %5088 = vst [vmem:[#allocation96_spill] sm:$0xff] %v4440_v27  ;;  %5089 = vst [vmem:[#allocation97_spill] sm:$0xff] %v4442_v55  ;;  %v3066_v58 = vpop.f32.mrb[147].mxu0  ;;  %v3122_v35 = vpop.f32.mrb[147].mxu1 }
 0x204   :  { %v4444_v21 = vpop.f32.mrb[148].mxu0  ;;  %v4446_v49 = vpop.f32.mrb[148].mxu1 }
 0x205   :  { %5090 = vst [vmem:[#allocation98_spill] sm:$0xff] %v4444_v21  ;;  %5091 = vst [vmem:[#allocation99_spill] sm:$0xff] %v4446_v49  ;;  %v3069_v43 = vpop.f32.mrb[149].mxu0  ;;  %v3125_v7 = vpop.f32.mrb[149].mxu1 }
 0x206   :  { %v4448_v12 = vpop.f32.mrb[150].mxu0  ;;  %v4450_v45 = vpop.f32.mrb[150].mxu1 }
 0x207   :  { %5092 = vst [vmem:[#allocation100_spill] sm:$0xff] %v4448_v12  ;;  %5093 = vst [vmem:[#allocation101_spill] sm:$0xff] %v4450_v45  ;;  %v3070_v37 = vpop.f32.mrb[151].mxu0  ;;  %v3126_v59 = vpop.f32.mrb[151].mxu1 }
 0x208   :  { %v4461_v37 = vld [vmem:[%s4914_s5] ss:$0 sm:$0xff] }
 0x20c   :  { %v4452_v3 = vpop.f32.mrb[152].mxu0  ;;  %v4454_v39 = vpop.f32.mrb[152].mxu1 }
 0x20d   :  { %5094 = vst [vmem:[#allocation102_spill] sm:$0xff] %v4454_v39  ;;  %v3073_v27 = vpop.f32.mrb[153].mxu0  ;;  %v3129_v55 = vpop.f32.mrb[153].mxu1 }
 0x20e   :  { %v1434_v58 = vpop.f32.mrb[154].mxu0  ;;  %v1672_v35 = vpop.f32.mrb[154].mxu1  ;;  %v5095_v55 = vmax.f32 %v3756_v61, %v4016_v33  ;;  %v5098_v61 = vmax.f32 %v3770_v5, %v4032_v13 }
 0x20f   :  { %v3074_v54 = vpop.f32.mrb[155].mxu0  ;;  %v3130_v21 = vpop.f32.mrb[155].mxu1  ;;  %v5097_v35 = vmax.f32 %v3768_v4, %v4030_v11 }
 0x210   :  { %v5096_v21 = vmax.f32 %v3758_v62, %v4018_v36 }
 0x214   :  { %v1861_v6 = vpop.f32.mrb[156].mxu0  ;;  %v2099_v49 = vpop.f32.mrb[156].mxu1 }
 0x215   :  { %v2201_v43 = vmax.f32 %v4356_v56, %v1861_v6  ;;  %v2226_v7 = vmax.f32 %v4358_v23, %v2099_v49  ;;  %v3137_v12 = vpop.f32.mrb[157].mxu0  ;;  %v3193_v45 = vpop.f32.mrb[157].mxu1 }
 0x216   :  { %v1864_v59 = vpop.f32.mrb[158].mxu0  ;;  %v2102_v27 = vpop.f32.mrb[158].mxu1 }
 0x217   :  { %v2251_v54 = vmax.f32 %v5095_v55, %v2201_v43  ;;  %v2276_v58 = vmax.f32 %v5096_v21, %v2226_v7  ;;  %v2202_v56 = vmax.f32 %v4360_v31, %v1864_v59  ;;  %v2227_v23 = vmax.f32 %v4362_v26, %v2102_v27  ;;  %v3138_v6 = vpop.f32.mrb[159].mxu0  ;;  %v3194_v49 = vpop.f32.mrb[159].mxu1 }
 0x219   :  { %v2308_v12 = vadd.f32 %v4461_v37, %v2251_v54  ;;  %v2333_v45 = vadd.f32 %v4461_v37, %v2276_v58  ;;  %v2252_v39 = vmax.f32 %v5097_v35, %v2202_v56  ;;  %v2277_v33 = vmax.f32 %v5098_v61, %v2227_v23  ;;  %v5099_v54 = vld [vmem:[#allocation39_spill] sm:$0xff]  ;;  %v5101_v58 = vld [vmem:[#allocation2_spill] sm:$0xff] }
 0x21a   :  { %v5100_v21 = vmax.f32 %v3780_v9, %v5099_v54  ;;  %v5105_v9 = vld [vmem:[#allocation3_spill] sm:$0xff]  ;;  %v5108_v54 = vmax.f32 %v3800_v18, %v4072_v10  ;;  %v5113_v10 = vld [vmem:[#allocation5_spill] sm:$0xff] }
 0x21b   :  { %v2358_v62 = vmax.f32 %v2308_v12, 0.0  ;;  %v2383_v36 = vmax.f32 %v2333_v45, 0.0  ;;  %v2309_v31 = vadd.f32 %v4461_v37, %v2252_v39  ;;  %v2334_v26 = vadd.f32 %v4461_v37, %v2277_v33  ;;  %v5114_v18 = vld [vmem:[#allocation43_spill] sm:$0xff] }
 0x21c   :  { %v1869_v43 = vpop.f32.mrb[160].mxu0  ;;  %v2107_v7 = vpop.f32.mrb[160].mxu1  ;;  %v5104_v33 = vmax.f32 %v3790_v14, %v4058_v41 }
 0x21d   :  { %2409 = vst.msk [vmem:[%s4915_s6] sm:$0xff] %vm2408_vm4, %v2358_v62  ;;  %2435 = vst.msk [vmem:[%s4915_s6 + $0xc8] sm:$0xff] %vm2408_vm4, %v2383_v36  ;;  %v2359_v4 = vmax.f32 %v2309_v31, 0.0  ;;  %v2384_v5 = vmax.f32 %v2334_v26, 0.0  ;;  %v2203_v11 = vmax.f32 %v4364_v52, %v1869_v43  ;;  %v2228_v13 = vmax.f32 %v4366_v17, %v2107_v7  ;;  %v3141_v39 = vpop.f32.mrb[161].mxu0  ;;  %v3197_v59 = vpop.f32.mrb[161].mxu1 }
 0x21e   :  { %v1872_v27 = vpop.f32.mrb[162].mxu0  ;;  %v2110_v55 = vpop.f32.mrb[162].mxu1  ;;  %v5102_v17 = vld [vmem:[#allocation40_spill] sm:$0xff]  ;;  %v5106_v36 = vld [vmem:[#allocation41_spill] sm:$0xff] }
 0x21f   :  { %2410 = vst.msk [vmem:[%s4915_s6 + $0x8] sm:$0xff] %vm2408_vm4, %v2359_v4  ;;  %2436 = vst.msk [vmem:[%s4915_s6 + $0xd0] sm:$0xff] %vm2408_vm4, %v2384_v5  ;;  %v2253_v52 = vmax.f32 %v5100_v21, %v2203_v11  ;;  %v5103_v56 = vmax.f32 %v5101_v58, %v5102_v17  ;;  %v2204_v6 = vmax.f32 %v4368_v20, %v1872_v27  ;;  %v3142_v12 = vpop.f32.mrb[163].mxu0  ;;  %v3198_v45 = vpop.f32.mrb[163].mxu1  ;;  %v5109_v21 = vld [vmem:[#allocation4_spill] sm:$0xff] }
 0x220   :  { %v2229_v49 = vmax.f32 %v4370_v32, %v2110_v55  ;;  %v5107_v31 = vmax.f32 %v5105_v9, %v5106_v36  ;;  %v5112_v45 = vmax.f32 %v3810_v24, %v4086_v0 }
 0x221   :  { %v2278_v23 = vmax.f32 %v5103_v56, %v2228_v13  ;;  %v2310_v35 = vadd.f32 %v4461_v37, %v2253_v52  ;;  %v2254_v62 = vmax.f32 %v5104_v33, %v2204_v6 }
 0x222   :  { %v2279_v26 = vmax.f32 %v5107_v31, %v2229_v49 }
 0x223   :  { %v2335_v61 = vadd.f32 %v4461_v37, %v2278_v23  ;;  %v2360_v43 = vmax.f32 %v2310_v35, 0.0  ;;  %v2311_v20 = vadd.f32 %v4461_v37, %v2254_v62 }
 0x224   :  { %v2336_v32 = vadd.f32 %v4461_v37, %v2279_v26  ;;  %v1877_v4 = vpop.f32.mrb[164].mxu0  ;;  %v2115_v5 = vpop.f32.mrb[164].mxu1 }
 0x225   :  { %v2385_v7 = vmax.f32 %v2335_v61, 0.0  ;;  %2411 = vst.msk [vmem:[%s4915_s6 + $0x10] sm:$0xff] %vm2408_vm4, %v2360_v43  ;;  %v2361_v14 = vmax.f32 %v2311_v20, 0.0  ;;  %v2205_v11 = vmax.f32 %v4372_v50, %v1877_v4  ;;  %v2230_v13 = vmax.f32 %v4374_v47, %v2115_v5  ;;  %v3145_v39 = vpop.f32.mrb[165].mxu0  ;;  %v3201_v59 = vpop.f32.mrb[165].mxu1  ;;  %v5110_v47 = vld [vmem:[#allocation42_spill] sm:$0xff] }
 0x226   :  { %v2386_v41 = vmax.f32 %v2336_v32, 0.0  ;;  %v1880_v27 = vpop.f32.mrb[166].mxu0  ;;  %v2118_v55 = vpop.f32.mrb[166].mxu1  ;;  %v5111_v52 = vmax.f32 %v5109_v21, %v5110_v47  ;;  %v5115_v61 = vmax.f32 %v5113_v10, %v5114_v18  ;;  %v5116_v5 = vmax.f32 %v3820_v28, %v4100_v60  ;;  %v5121_v28 = vld [vmem:[#allocation7_spill] sm:$0xff]  ;;  %v5122_v60 = vld [vmem:[#allocation45_spill] sm:$0xff] }
 0x227   :  { %2437 = vst.msk [vmem:[%s4915_s6 + $0xd8] sm:$0xff] %vm2408_vm4, %v2385_v7  ;;  %2412 = vst.msk [vmem:[%s4915_s6 + $0x18] sm:$0xff] %vm2408_vm4, %v2361_v14  ;;  %v2255_v50 = vmax.f32 %v5108_v54, %v2205_v11  ;;  %v2206_v17 = vmax.f32 %v4376_v8, %v1880_v27  ;;  %v2231_v56 = vmax.f32 %v4378_v1, %v2118_v55  ;;  %v3146_v23 = vpop.f32.mrb[167].mxu0  ;;  %v3202_v6 = vpop.f32.mrb[167].mxu1  ;;  %v5117_v14 = vld [vmem:[#allocation6_spill] sm:$0xff] }
 0x228   :  { %2438 = vst.msk [vmem:[%s4915_s6 + $0xe0] sm:$0xff] %vm2408_vm4, %v2386_v41  ;;  %v2280_v58 = vmax.f32 %v5111_v52, %v2230_v13  ;;  %v5123_v47 = vmax.f32 %v5121_v28, %v5122_v60  ;;  %v5124_v18 = vmax.f32 %v3840_v38, %v4128_v19  ;;  %v5129_v19 = vld [vmem:[#allocation9_spill] sm:$0xff]  ;;  %v5130_v38 = vld [vmem:[#allocation47_spill] sm:$0xff] }
 0x229   :  { %v2312_v49 = vadd.f32 %v4461_v37, %v2255_v50  ;;  %v2256_v35 = vmax.f32 %v5112_v45, %v2206_v17  ;;  %v2281_v33 = vmax.f32 %v5115_v61, %v2231_v56  ;;  %v5120_v50 = vmax.f32 %v3830_v34, %v4114_v15  ;;  %v5125_v61 = vld [vmem:[#allocation8_spill] sm:$0xff] }
 0x22a   :  { %v2337_v12 = vadd.f32 %v4461_v37, %v2280_v58 }
 0x22b   :  { %v2362_v62 = vmax.f32 %v2312_v49, 0.0  ;;  %v2313_v8 = vadd.f32 %v4461_v37, %v2256_v35  ;;  %v2338_v1 = vadd.f32 %v4461_v37, %v2281_v33 }
 0x22c   :  { %v2387_v9 = vmax.f32 %v2337_v12, 0.0  ;;  %v1885_v36 = vpop.f32.mrb[168].mxu0  ;;  %v2123_v31 = vpop.f32.mrb[168].mxu1 }
 0x22d   :  { %2413 = vst.msk [vmem:[%s4915_s6 + $0x20] sm:$0xff] %vm2408_vm4, %v2362_v62  ;;  %v2363_v0 = vmax.f32 %v2313_v8, 0.0  ;;  %v2388_v24 = vmax.f32 %v2338_v1, 0.0  ;;  %v2207_v26 = vmax.f32 %v4380_v42, %v1885_v36  ;;  %v2232_v43 = vmax.f32 %v4382_v40, %v2123_v31  ;;  %v3149_v7 = vpop.f32.mrb[169].mxu0  ;;  %v3205_v20 = vpop.f32.mrb[169].mxu1  ;;  %v5118_v40 = vld [vmem:[#allocation44_spill] sm:$0xff] }
 0x22e   :  { %2439 = vst.msk [vmem:[%s4915_s6 + $0xe8] sm:$0xff] %vm2408_vm4, %v2387_v9  ;;  %v1888_v32 = vpop.f32.mrb[170].mxu0  ;;  %v2126_v4 = vpop.f32.mrb[170].mxu1  ;;  %v5119_v41 = vmax.f32 %v5117_v14, %v5118_v40 }
 0x22f   :  { %2414 = vst.msk [vmem:[%s4915_s6 + $0x28] sm:$0xff] %vm2408_vm4, %v2363_v0  ;;  %2440 = vst.msk [vmem:[%s4915_s6 + $0xf0] sm:$0xff] %vm2408_vm4, %v2388_v24  ;;  %v2257_v42 = vmax.f32 %v5116_v5, %v2207_v26  ;;  %v2208_v13 = vmax.f32 %v4384_v46, %v1888_v32  ;;  %v2233_v39 = vmax.f32 %v4386_v2, %v2126_v4  ;;  %v3150_v59 = vpop.f32.mrb[171].mxu0  ;;  %v3206_v27 = vpop.f32.mrb[171].mxu1 }
 0x230   :  { %v2282_v11 = vmax.f32 %v5119_v41, %v2232_v43  ;;  %v5128_v24 = vmax.f32 %v3850_v44, %v4142_v25  ;;  %v5131_v43 = vmax.f32 %v5129_v19, %v5130_v38  ;;  %v5133_v59 = vld [vmem:[#allocation10_spill] sm:$0xff]  ;;  %v5151_v38 = vld [vmem:[#allocation80_spill] sm:$0xff] }
 0x231   :  { %v2314_v55 = vadd.f32 %v4461_v37, %v2257_v42  ;;  %v2258_v21 = vmax.f32 %v5120_v50, %v2208_v13  ;;  %v2283_v52 = vmax.f32 %v5123_v47, %v2233_v39  ;;  %v5132_v39 = vmax.f32 %v3860_v48, %v4156_v29  ;;  %v5136_v50 = vld [vmem:[#allocation77_spill] sm:$0xff]  ;;  %v5140_v29 = vld [vmem:[#allocation12_spill] sm:$0xff]  ;;  %v5141_v48 = vld [vmem:[#allocation50_spill] sm:$0xff] }
 0x232   :  { %v2339_v54 = vadd.f32 %v4461_v37, %v2282_v11 }
 0x233   :  { %v2364_v58 = vmax.f32 %v2314_v55, 0.0  ;;  %v2315_v46 = vadd.f32 %v4461_v37, %v2258_v21  ;;  %v2340_v2 = vadd.f32 %v4461_v37, %v2283_v52 }
 0x234   :  { %v2389_v17 = vmax.f32 %v2339_v54, 0.0  ;;  %v1893_v56 = vpop.f32.mrb[172].mxu0  ;;  %v2131_v23 = vpop.f32.mrb[172].mxu1 }
 0x235   :  { %2415 = vst.msk [vmem:[%s4915_s6 + $0x30] sm:$0xff] %vm2408_vm4, %v2364_v58  ;;  %v2365_v15 = vmax.f32 %v2315_v46, 0.0  ;;  %v2390_v34 = vmax.f32 %v2340_v2, 0.0  ;;  %v2209_v6 = vmax.f32 %v4388_v51, %v1893_v56  ;;  %v2234_v49 = vmax.f32 %v4390_v57, %v2131_v23  ;;  %v3153_v12 = vpop.f32.mrb[173].mxu0  ;;  %v3209_v45 = vpop.f32.mrb[173].mxu1  ;;  %v5126_v57 = vld [vmem:[#allocation46_spill] sm:$0xff] }
 0x236   :  { %2441 = vst.msk [vmem:[%s4915_s6 + $0xf8] sm:$0xff] %vm2408_vm4, %v2389_v17  ;;  %v1896_v35 = vpop.f32.mrb[174].mxu0  ;;  %v2134_v10 = vpop.f32.mrb[174].mxu1  ;;  %v5127_v33 = vmax.f32 %v5125_v61, %v5126_v57  ;;  %v5137_v58 = vld [vmem:[#allocation11_spill] sm:$0xff]  ;;  %v5138_v17 = vld [vmem:[#allocation49_spill] sm:$0xff]  ;;  %v5142_v56 = vmax.f32 %v5140_v29, %v5141_v48 }
 0x237   :  { %2416 = vst.msk [vmem:[%s4915_s6 + $0x38] sm:$0xff] %vm2408_vm4, %v2365_v15  ;;  %2442 = vst.msk [vmem:[%s4915_s6 + $0x100] sm:$0xff] %vm2408_vm4, %v2390_v34  ;;  %v2259_v51 = vmax.f32 %v5124_v18, %v2209_v6  ;;  %v2210_v9 = vmax.f32 %v4392_v16, %v1896_v35  ;;  %v2235_v8 = vmax.f32 %v4394_v30, %v2134_v10  ;;  %v3154_v1 = vpop.f32.mrb[175].mxu0  ;;  %v3210_v36 = vpop.f32.mrb[175].mxu1  ;;  %v5143_v10 = vld [vmem:[#allocation78_spill] sm:$0xff] }
 0x238   :  { %v2284_v62 = vmax.f32 %v5127_v33, %v2234_v49  ;;  %v5139_v46 = vmax.f32 %v5137_v58, %v5138_v17  ;;  %v5146_v1 = vld [vmem:[#allocation51_spill] sm:$0xff] }
 0x239   :  { %v2316_v31 = vadd.f32 %v4461_v37, %v2259_v51  ;;  %v2260_v26 = vmax.f32 %v5128_v24, %v2210_v9  ;;  %v2285_v7 = vmax.f32 %v5131_v43, %v2235_v8  ;;  %v5144_v51 = vld [vmem:[#allocation79_spill] sm:$0xff]  ;;  %v5145_v8 = vld [vmem:[#allocation13_spill] sm:$0xff]  ;;  %v5149_v24 = vld [vmem:[#allocation52_spill] sm:$0xff] }
 0x23a   :  { %v2341_v0 = vadd.f32 %v4461_v37, %v2284_v62  ;;  %v5147_v36 = vmax.f32 %v5145_v8, %v5146_v1 }
 0x23b   :  { %v2366_v20 = vmax.f32 %v2316_v31, 0.0  ;;  %v2317_v16 = vadd.f32 %v4461_v37, %v2260_v26  ;;  %v2342_v30 = vadd.f32 %v4461_v37, %v2285_v7  ;;  %v5152_v7 = vld [vmem:[#allocation81_spill] sm:$0xff] }
 0x23c   :  { %v2391_v32 = vmax.f32 %v2341_v0, 0.0  ;;  %v1901_v4 = vpop.f32.mrb[176].mxu0  ;;  %v2139_v5 = vpop.f32.mrb[176].mxu1  ;;  %v5148_v0 = vld [vmem:[#allocation14_spill] sm:$0xff] }
 0x23d   :  { %2417 = vst.msk [vmem:[%s4915_s6 + $0x40] sm:$0xff] %vm2408_vm4, %v2366_v20  ;;  %v2367_v25 = vmax.f32 %v2317_v16, 0.0  ;;  %v2392_v44 = vmax.f32 %v2342_v30, 0.0  ;;  %v2211_v42 = vmax.f32 %v4396_v63, %v1901_v4  ;;  %v2236_v14 = vmax.f32 %v4398_v22, %v2139_v5  ;;  %v3157_v40 = vpop.f32.mrb[177].mxu0  ;;  %v3213_v41 = vpop.f32.mrb[177].mxu1  ;;  %v5134_v22 = vld [vmem:[#allocation48_spill] sm:$0xff] }
 0x23e   :  { %2443 = vst.msk [vmem:[%s4915_s6 + $0x108] sm:$0xff] %vm2408_vm4, %v2391_v32  ;;  %v1904_v11 = vpop.f32.mrb[178].mxu0  ;;  %v2142_v13 = vpop.f32.mrb[178].mxu1  ;;  %v5135_v27 = vmax.f32 %v5133_v59, %v5134_v22  ;;  %v5150_v26 = vmax.f32 %v5148_v0, %v5149_v24  ;;  %v5153_v5 = vld [vmem:[#allocation15_spill] sm:$0xff]  ;;  %v5157_v40 = vld [vmem:[#allocation54_spill] sm:$0xff] }
 0x23f   :  { %2418 = vst.msk [vmem:[%s4915_s6 + $0x48] sm:$0xff] %vm2408_vm4, %v2367_v25  ;;  %2444 = vst.msk [vmem:[%s4915_s6 + $0x110] sm:$0xff] %vm2408_vm4, %v2392_v44  ;;  %v2261_v63 = vmax.f32 %v5132_v39, %v2211_v42  ;;  %v2212_v54 = vmax.f32 %v4400_v53, %v1904_v11  ;;  %v2237_v21 = vmax.f32 %v5136_v50, %v2142_v13  ;;  %v3158_v28 = vpop.f32.mrb[179].mxu0  ;;  %v3214_v60 = vpop.f32.mrb[179].mxu1  ;;  %v5154_v25 = vld [vmem:[#allocation53_spill] sm:$0xff]  ;;  %v5159_v50 = vld [vmem:[#allocation82_spill] sm:$0xff] }
 0x240   :  { %v2286_v55 = vmax.f32 %v5135_v27, %v2236_v14  ;;  %v5155_v44 = vmax.f32 %v5153_v5, %v5154_v25  ;;  %v5156_v14 = vld [vmem:[#allocation16_spill] sm:$0xff]  ;;  %v5160_v28 = vld [vmem:[#allocation83_spill] sm:$0xff] }
 0x241   :  { %v2318_v47 = vadd.f32 %v4461_v37, %v2261_v63  ;;  %v2262_v2 = vmax.f32 %v5139_v46, %v2212_v54  ;;  %v2287_v23 = vmax.f32 %v5142_v56, %v2237_v21  ;;  %v5158_v41 = vmax.f32 %v5156_v14, %v5157_v40  ;;  %v5161_v46 = vld [vmem:[#allocation17_spill] sm:$0xff]  ;;  %v5164_v56 = vld [vmem:[#allocation18_spill] sm:$0xff] }
 0x242   :  { %v2343_v52 = vadd.f32 %v4461_v37, %v2286_v55 }
 0x243   :  { %v2368_v15 = vmax.f32 %v2318_v47, 0.0  ;;  %v2319_v53 = vadd.f32 %v4461_v37, %v2262_v2  ;;  %v2344_v6 = vadd.f32 %v4461_v37, %v2287_v23  ;;  %v5162_v2 = vld [vmem:[#allocation55_spill] sm:$0xff]  ;;  %v5165_v23 = vld [vmem:[#allocation56_spill] sm:$0xff] }
 0x244   :  { %v2393_v34 = vmax.f32 %v2343_v52, 0.0  ;;  %v1909_v49 = vpop.f32.mrb[180].mxu0  ;;  %v2147_v12 = vpop.f32.mrb[180].mxu1  ;;  %v5163_v29 = vmax.f32 %v5161_v46, %v5162_v2 }
 0x245   :  { %2419 = vst.msk [vmem:[%s4915_s6 + $0x50] sm:$0xff] %vm2408_vm4, %v2368_v15  ;;  %v2369_v45 = vmax.f32 %v2319_v53, 0.0  ;;  %v2394_v35 = vmax.f32 %v2344_v6, 0.0  ;;  %v2213_v18 = vmax.f32 %v5143_v10, %v1909_v49  ;;  %v2238_v61 = vmax.f32 %v5144_v51, %v2147_v12  ;;  %v3161_v57 = vpop.f32.mrb[181].mxu0  ;;  %v3217_v33 = vpop.f32.mrb[181].mxu1  ;;  %v5167_v53 = vld [vmem:[#allocation84_spill] sm:$0xff] }
 0x246   :  { %2445 = vst.msk [vmem:[%s4915_s6 + $0x118] sm:$0xff] %vm2408_vm4, %v2393_v34  ;;  %v1912_v62 = vpop.f32.mrb[182].mxu0  ;;  %v2150_v9 = vpop.f32.mrb[182].mxu1  ;;  %v5166_v15 = vmax.f32 %v5164_v56, %v5165_v23  ;;  %v5168_v49 = vld [vmem:[#allocation85_spill] sm:$0xff]  ;;  %v5169_v51 = vld [vmem:[#allocation19_spill] sm:$0xff] }
 0x247   :  { %2420 = vst.msk [vmem:[%s4915_s6 + $0x58] sm:$0xff] %vm2408_vm4, %v2369_v45  ;;  %2446 = vst.msk [vmem:[%s4915_s6 + $0x120] sm:$0xff] %vm2408_vm4, %v2394_v35  ;;  %v2263_v31 = vmax.f32 %v5147_v36, %v2213_v18  ;;  %v2288_v19 = vmax.f32 %v5150_v26, %v2238_v61  ;;  %v2214_v43 = vmax.f32 %v5151_v38, %v1912_v62  ;;  %v3162_v32 = vpop.f32.mrb[183].mxu0  ;;  %v3218_v16 = vpop.f32.mrb[183].mxu1  ;;  %v5170_v61 = vld [vmem:[#allocation57_spill] sm:$0xff]  ;;  %v5172_v62 = vld [vmem:[#allocation20_spill] sm:$0xff] }
 0x248   :  { %v2239_v20 = vmax.f32 %v5152_v7, %v2150_v9  ;;  %v5171_v57 = vmax.f32 %v5169_v51, %v5170_v61  ;;  %v5173_v9 = vld [vmem:[#allocation58_spill] sm:$0xff]  ;;  %v5176_v32 = vld [vmem:[#allocation87_spill] sm:$0xff] }
 0x249   :  { %v2320_v30 = vadd.f32 %v4461_v37, %v2263_v31  ;;  %v2345_v4 = vadd.f32 %v4461_v37, %v2288_v19  ;;  %v2264_v42 = vmax.f32 %v5155_v44, %v2214_v43  ;;  %v5174_v8 = vmax.f32 %v5172_v62, %v5173_v9  ;;  %v5175_v7 = vld [vmem:[#allocation86_spill] sm:$0xff]  ;;  %v5177_v44 = vld [vmem:[#allocation21_spill] sm:$0xff] }
 0x24a   :  { %v2289_v11 = vmax.f32 %v5158_v41, %v2239_v20  ;;  %v5180_v41 = vld [vmem:[#allocation22_spill] sm:$0xff] }
 0x24b   :  { %v2370_v13 = vmax.f32 %v2320_v30, 0.0  ;;  %v2395_v39 = vmax.f32 %v2345_v4, 0.0  ;;  %v2321_v63 = vadd.f32 %v4461_v37, %v2264_v42  ;;  %v5178_v42 = vld [vmem:[#allocation59_spill] sm:$0xff] }
 0x24c   :  { %v2346_v59 = vadd.f32 %v4461_v37, %v2289_v11  ;;  %v1917_v22 = vpop.f32.mrb[184].mxu0  ;;  %v2155_v27 = vpop.f32.mrb[184].mxu1  ;;  %v5179_v14 = vmax.f32 %v5177_v44, %v5178_v42  ;;  %v5181_v11 = vld [vmem:[#allocation60_spill] sm:$0xff] }
 0x24d   :  { %2421 = vst.msk [vmem:[%s4915_s6 + $0x60] sm:$0xff] %vm2408_vm4, %v2370_v13  ;;  %2447 = vst.msk [vmem:[%s4915_s6 + $0x128] sm:$0xff] %vm2408_vm4, %v2395_v39  ;;  %v2371_v55 = vmax.f32 %v2321_v63, 0.0  ;;  %v2215_v21 = vmax.f32 %v5159_v50, %v1917_v22  ;;  %v2240_v60 = vmax.f32 %v5160_v28, %v2155_v27  ;;  %v3165_v47 = vpop.f32.mrb[185].mxu0  ;;  %v3221_v52 = vpop.f32.mrb[185].mxu1  ;;  %v5182_v13 = vmax.f32 %v5180_v41, %v5181_v11  ;;  %v5183_v63 = vld [vmem:[#allocation88_spill] sm:$0xff] }
 0x24e   :  { %v2396_v54 = vmax.f32 %v2346_v59, 0.0  ;;  %v1920_v58 = vpop.f32.mrb[186].mxu0  ;;  %v2158_v17 = vpop.f32.mrb[186].mxu1  ;;  %v5184_v22 = vld [vmem:[#allocation89_spill] sm:$0xff]  ;;  %v5185_v28 = vld [vmem:[#allocation23_spill] sm:$0xff] }
 0x24f   :  { %2422 = vst.msk [vmem:[%s4915_s6 + $0x68] sm:$0xff] %vm2408_vm4, %v2371_v55  ;;  %v2265_v48 = vmax.f32 %v5163_v29, %v2215_v21  ;;  %v2290_v34 = vmax.f32 %v5166_v15, %v2240_v60  ;;  %v2216_v6 = vmax.f32 %v5167_v53, %v1920_v58  ;;  %v2241_v12 = vmax.f32 %v5168_v49, %v2158_v17  ;;  %v3166_v45 = vpop.f32.mrb[187].mxu0  ;;  %v3222_v35 = vpop.f32.mrb[187].mxu1  ;;  %v5186_v60 = vld [vmem:[#allocation61_spill] sm:$0xff]  ;;  %v5188_v58 = vld [vmem:[#allocation24_spill] sm:$0xff]  ;;  %v5189_v17 = vld [vmem:[#allocation62_spill] sm:$0xff] }
 0x250   :  { %2448 = vst.msk [vmem:[%s4915_s6 + $0x130] sm:$0xff] %vm2408_vm4, %v2396_v54  ;;  %v5187_v47 = vmax.f32 %v5185_v28, %v5186_v60  ;;  %v5190_v46 = vmax.f32 %v5188_v58, %v5189_v17  ;;  %v5191_v49 = vld [vmem:[#allocation90_spill] sm:$0xff]  ;;  %v5192_v45 = vld [vmem:[#allocation91_spill] sm:$0xff] }
 0x251   :  { %v2322_v10 = vadd.f32 %v4461_v37, %v2265_v48  ;;  %v2347_v18 = vadd.f32 %v4461_v37, %v2290_v34  ;;  %v2266_v33 = vmax.f32 %v5171_v57, %v2216_v6  ;;  %v2291_v1 = vmax.f32 %v5174_v8, %v2241_v12  ;;  %v5193_v57 = vld [vmem:[#allocation25_spill] sm:$0xff]  ;;  %v5196_v8 = vld [vmem:[#allocation26_spill] sm:$0xff] }
 0x253   :  { %v2372_v36 = vmax.f32 %v2322_v10, 0.0  ;;  %v2397_v31 = vmax.f32 %v2347_v18, 0.0  ;;  %v2323_v0 = vadd.f32 %v4461_v37, %v2266_v33  ;;  %v2348_v24 = vadd.f32 %v4461_v37, %v2291_v1  ;;  %v5194_v33 = vld [vmem:[#allocation63_spill] sm:$0xff]  ;;  %v5197_v1 = vld [vmem:[#allocation64_spill] sm:$0xff] }
 0x254   :  { %v1925_v26 = vpop.f32.mrb[188].mxu0  ;;  %v2163_v19 = vpop.f32.mrb[188].mxu1  ;;  %v5195_v62 = vmax.f32 %v5193_v57, %v5194_v33 }
 0x255   :  { %2423 = vst.msk [vmem:[%s4915_s6 + $0x70] sm:$0xff] %vm2408_vm4, %v2372_v36  ;;  %2449 = vst.msk [vmem:[%s4915_s6 + $0x138] sm:$0xff] %vm2408_vm4, %v2397_v31  ;;  %v2373_v38 = vmax.f32 %v2323_v0, 0.0  ;;  %v2398_v43 = vmax.f32 %v2348_v24, 0.0  ;;  %v2217_v20 = vmax.f32 %v5175_v7, %v1925_v26  ;;  %v2242_v16 = vmax.f32 %v5176_v32, %v2163_v19  ;;  %v3169_v30 = vpop.f32.mrb[189].mxu0  ;;  %v3225_v4 = vpop.f32.mrb[189].mxu1 }
 0x256   :  { %v1928_v5 = vpop.f32.mrb[190].mxu0  ;;  %v2166_v25 = vpop.f32.mrb[190].mxu1  ;;  %v5198_v36 = vmax.f32 %v5196_v8, %v5197_v1  ;;  %v5199_v0 = vld [vmem:[#allocation92_spill] sm:$0xff]  ;;  %v5200_v26 = vld [vmem:[#allocation93_spill] sm:$0xff]  ;;  %v5201_v32 = vld [vmem:[#allocation27_spill] sm:$0xff] }
 0x257   :  { %2424 = vst.msk [vmem:[%s4915_s6 + $0x78] sm:$0xff] %vm2408_vm4, %v2373_v38  ;;  %2450 = vst.msk [vmem:[%s4915_s6 + $0x140] sm:$0xff] %vm2408_vm4, %v2398_v43  ;;  %v2267_v40 = vmax.f32 %v5179_v14, %v2217_v20  ;;  %v2292_v39 = vmax.f32 %v5182_v13, %v2242_v16  ;;  %v2218_v59 = vmax.f32 %v5183_v63, %v1928_v5  ;;  %v3170_v55 = vpop.f32.mrb[191].mxu0  ;;  %v3226_v54 = vpop.f32.mrb[191].mxu1  ;;  %v5202_v16 = vld [vmem:[#allocation65_spill] sm:$0xff]  ;;  %v5204_v5 = vld [vmem:[#allocation28_spill] sm:$0xff] }
 0x258   :  { %v2243_v27 = vmax.f32 %v5184_v22, %v2166_v25  ;;  %v5203_v30 = vmax.f32 %v5201_v32, %v5202_v16  ;;  %v5205_v25 = vld [vmem:[#allocation66_spill] sm:$0xff]  ;;  %v5208_v55 = vld [vmem:[#allocation95_spill] sm:$0xff] }
 0x259   :  { %v2324_v50 = vadd.f32 %v4461_v37, %v2267_v40  ;;  %v2349_v21 = vadd.f32 %v4461_v37, %v2292_v39  ;;  %v2268_v52 = vmax.f32 %v5187_v47, %v2218_v59  ;;  %v5206_v44 = vmax.f32 %v5204_v5, %v5205_v25  ;;  %v5207_v22 = vld [vmem:[#allocation94_spill] sm:$0xff]  ;;  %v5209_v47 = vld [vmem:[#allocation29_spill] sm:$0xff] }
 0x25a   :  { %v2293_v2 = vmax.f32 %v5190_v46, %v2243_v27  ;;  %v5212_v46 = vld [vmem:[#allocation30_spill] sm:$0xff] }
 0x25b   :  { %v2374_v29 = vmax.f32 %v2324_v50, 0.0  ;;  %v2399_v48 = vmax.f32 %v2349_v21, 0.0  ;;  %v2325_v56 = vadd.f32 %v4461_v37, %v2268_v52  ;;  %v5210_v52 = vld [vmem:[#allocation67_spill] sm:$0xff] }
 0x25c   :  { %v2350_v23 = vadd.f32 %v4461_v37, %v2293_v2  ;;  %v1933_v15 = vpop.f32.mrb[192].mxu0  ;;  %v2171_v34 = vpop.f32.mrb[192].mxu1  ;;  %v5211_v58 = vmax.f32 %v5209_v47, %v5210_v52  ;;  %v5213_v2 = vld [vmem:[#allocation68_spill] sm:$0xff] }
 0x25d   :  { %2425 = vst.msk [vmem:[%s4915_s6 + $0x80] sm:$0xff] %vm2408_vm4, %v2374_v29  ;;  %2451 = vst.msk [vmem:[%s4915_s6 + $0x148] sm:$0xff] %vm2408_vm4, %v2399_v48  ;;  %v2375_v53 = vmax.f32 %v2325_v56, 0.0  ;;  %v2219_v12 = vmax.f32 %v5191_v49, %v1933_v15  ;;  %v2244_v35 = vmax.f32 %v5192_v45, %v2171_v34  ;;  %v3173_v10 = vpop.f32.mrb[193].mxu0  ;;  %v3229_v18 = vpop.f32.mrb[193].mxu1  ;;  %v5214_v29 = vmax.f32 %v5212_v46, %v5213_v2  ;;  %v5215_v56 = vld [vmem:[#allocation96_spill] sm:$0xff] }
 0x25e   :  { %v2400_v6 = vmax.f32 %v2350_v23, 0.0  ;;  %v1936_v51 = vpop.f32.mrb[194].mxu0  ;;  %v2174_v61 = vpop.f32.mrb[194].mxu1  ;;  %v5216_v15 = vld [vmem:[#allocation97_spill] sm:$0xff]  ;;  %v5217_v45 = vld [vmem:[#allocation31_spill] sm:$0xff] }
 0x25f   :  { %2426 = vst.msk [vmem:[%s4915_s6 + $0x88] sm:$0xff] %vm2408_vm4, %v2375_v53  ;;  %v2269_v9 = vmax.f32 %v5195_v62, %v2219_v12  ;;  %v2294_v31 = vmax.f32 %v5198_v36, %v2244_v35  ;;  %v2220_v24 = vmax.f32 %v5199_v0, %v1936_v51  ;;  %v2245_v19 = vmax.f32 %v5200_v26, %v2174_v61  ;;  %v3174_v38 = vpop.f32.mrb[195].mxu0  ;;  %v3230_v43 = vpop.f32.mrb[195].mxu1  ;;  %v5218_v35 = vld [vmem:[#allocation69_spill] sm:$0xff]  ;;  %v5220_v51 = vld [vmem:[#allocation32_spill] sm:$0xff]  ;;  %v5221_v61 = vld [vmem:[#allocation70_spill] sm:$0xff] }
 0x260   :  { %2452 = vst.msk [vmem:[%s4915_s6 + $0x150] sm:$0xff] %vm2408_vm4, %v2400_v6  ;;  %v5219_v10 = vmax.f32 %v5217_v45, %v5218_v35  ;;  %v5222_v57 = vmax.f32 %v5220_v51, %v5221_v61  ;;  %v5223_v26 = vld [vmem:[#allocation98_spill] sm:$0xff]  ;;  %v5224_v38 = vld [vmem:[#allocation99_spill] sm:$0xff]  ;;  %v5240_v35 = vld [vmem:[#allocation37_spill] sm:$0xff] }
 0x261   :  { %v2326_v7 = vadd.f32 %v4461_v37, %v2269_v9  ;;  %v2351_v20 = vadd.f32 %v4461_v37, %v2294_v31  ;;  %v2270_v4 = vmax.f32 %v5203_v30, %v2220_v24  ;;  %v2295_v42 = vmax.f32 %v5206_v44, %v2245_v19  ;;  %v5225_v30 = vld [vmem:[#allocation33_spill] sm:$0xff]  ;;  %v5228_v44 = vld [vmem:[#allocation34_spill] sm:$0xff]  ;;  %v5244_v61 = vld [vmem:[#allocation76_spill] sm:$0xff] }
 0x262   :  { %v5243_v51 = vld [vmem:[#allocation38_spill] sm:$0xff] }
 0x263   :  { %v2376_v14 = vmax.f32 %v2326_v7, 0.0  ;;  %v2401_v40 = vmax.f32 %v2351_v20, 0.0  ;;  %v2327_v41 = vadd.f32 %v4461_v37, %v2270_v4  ;;  %v2352_v11 = vadd.f32 %v4461_v37, %v2295_v42  ;;  %v5226_v4 = vld [vmem:[#allocation71_spill] sm:$0xff]  ;;  %v5229_v42 = vld [vmem:[#allocation72_spill] sm:$0xff] }
 0x264   :  { %v1941_v13 = vpop.f32.mrb[196].mxu0  ;;  %v2179_v39 = vpop.f32.mrb[196].mxu1  ;;  %v5227_v5 = vmax.f32 %v5225_v30, %v5226_v4 }
 0x265   :  { %2427 = vst.msk [vmem:[%s4915_s6 + $0x90] sm:$0xff] %vm2408_vm4, %v2376_v14  ;;  %2453 = vst.msk [vmem:[%s4915_s6 + $0x158] sm:$0xff] %vm2408_vm4, %v2401_v40  ;;  %v2377_v63 = vmax.f32 %v2327_v41, 0.0  ;;  %v2402_v59 = vmax.f32 %v2352_v11, 0.0  ;;  %v2221_v27 = vmax.f32 %v5207_v22, %v1941_v13  ;;  %v2246_v54 = vmax.f32 %v5208_v55, %v2179_v39  ;;  %v3177_v50 = vpop.f32.mrb[197].mxu0  ;;  %v3233_v21 = vpop.f32.mrb[197].mxu1 }
 0x266   :  { %v1944_v28 = vpop.f32.mrb[198].mxu0  ;;  %v2182_v60 = vpop.f32.mrb[198].mxu1  ;;  %v5230_v14 = vmax.f32 %v5228_v44, %v5229_v42  ;;  %v5231_v41 = vld [vmem:[#allocation100_spill] sm:$0xff]  ;;  %v5232_v13 = vld [vmem:[#allocation101_spill] sm:$0xff]  ;;  %v5233_v55 = vld [vmem:[#allocation35_spill] sm:$0xff] }
 0x267   :  { %2428 = vst.msk [vmem:[%s4915_s6 + $0x98] sm:$0xff] %vm2408_vm4, %v2377_v63  ;;  %2454 = vst.msk [vmem:[%s4915_s6 + $0x160] sm:$0xff] %vm2408_vm4, %v2402_v59  ;;  %v2271_v17 = vmax.f32 %v5211_v58, %v2221_v27  ;;  %v2296_v48 = vmax.f32 %v5214_v29, %v2246_v54  ;;  %v2222_v23 = vmax.f32 %v5215_v56, %v1944_v28  ;;  %v3178_v53 = vpop.f32.mrb[199].mxu0  ;;  %v3234_v6 = vpop.f32.mrb[199].mxu1  ;;  %v5234_v54 = vld [vmem:[#allocation73_spill] sm:$0xff]  ;;  %v5236_v28 = vld [vmem:[#allocation36_spill] sm:$0xff] }
 0x268   :  { %v2247_v34 = vmax.f32 %v5216_v15, %v2182_v60  ;;  %v5235_v50 = vmax.f32 %v5233_v55, %v5234_v54  ;;  %v5237_v60 = vld [vmem:[#allocation74_spill] sm:$0xff] }
 0x269   :  { %v2328_v49 = vadd.f32 %v4461_v37, %v2271_v17  ;;  %v2353_v12 = vadd.f32 %v4461_v37, %v2296_v48  ;;  %v2272_v18 = vmax.f32 %v5219_v10, %v2222_v23  ;;  %v5238_v47 = vmax.f32 %v5236_v28, %v5237_v60  ;;  %v5241_v10 = vld [vmem:[#allocation75_spill] sm:$0xff] }
 0x26a   :  { %v2297_v33 = vmax.f32 %v5222_v57, %v2247_v34  ;;  %v5239_v34 = vld [vmem:[#allocation102_spill] sm:$0xff]  ;;  %v5245_v57 = vmax.f32 %v5243_v51, %v5244_v61 }
 0x26b   :  { %v2378_v62 = vmax.f32 %v2328_v49, 0.0  ;;  %v2403_v9 = vmax.f32 %v2353_v12, 0.0  ;;  %v2329_v8 = vadd.f32 %v4461_v37, %v2272_v18  ;;  %v5242_v18 = vmax.f32 %v5240_v35, %v5241_v10 }
 0x26c   :  { %v2354_v1 = vadd.f32 %v4461_v37, %v2297_v33  ;;  %v1949_v36 = vpop.f32.mrb[200].mxu0  ;;  %v2187_v31 = vpop.f32.mrb[200].mxu1 }
 0x26d   :  { %2429 = vst.msk [vmem:[%s4915_s6 + $0xa0] sm:$0xff] %vm2408_vm4, %v2378_v62  ;;  %2455 = vst.msk [vmem:[%s4915_s6 + $0x168] sm:$0xff] %vm2408_vm4, %v2403_v9  ;;  %v2379_v0 = vmax.f32 %v2329_v8, 0.0  ;;  %v2223_v19 = vmax.f32 %v5223_v26, %v1949_v36  ;;  %v2248_v43 = vmax.f32 %v5224_v38, %v2187_v31  ;;  %v3181_v7 = vpop.f32.mrb[201].mxu0  ;;  %v3237_v20 = vpop.f32.mrb[201].mxu1 }
 0x26e   :  { %v2404_v24 = vmax.f32 %v2354_v1, 0.0  ;;  %v1952_v32 = vpop.f32.mrb[202].mxu0  ;;  %v2190_v16 = vpop.f32.mrb[202].mxu1 }
 0x26f   :  { %2430 = vst.msk [vmem:[%s4915_s6 + $0xa8] sm:$0xff] %vm2408_vm4, %v2379_v0  ;;  %v2273_v25 = vmax.f32 %v5227_v5, %v2223_v19  ;;  %v2298_v40 = vmax.f32 %v5230_v14, %v2248_v43  ;;  %v2224_v11 = vmax.f32 %v5231_v41, %v1952_v32  ;;  %v2249_v39 = vmax.f32 %v5232_v13, %v2190_v16  ;;  %v3182_v63 = vpop.f32.mrb[203].mxu0  ;;  %v3238_v59 = vpop.f32.mrb[203].mxu1 }
 0x270   :  { %2456 = vst.msk [vmem:[%s4915_s6 + $0x170] sm:$0xff] %vm2408_vm4, %v2404_v24 }
 0x271   :  { %v2330_v22 = vadd.f32 %v4461_v37, %v2273_v25  ;;  %v2355_v27 = vadd.f32 %v4461_v37, %v2298_v40  ;;  %v2274_v21 = vmax.f32 %v5235_v50, %v2224_v11  ;;  %v2299_v52 = vmax.f32 %v5238_v47, %v2249_v39 }
 0x273   :  { %v2380_v58 = vmax.f32 %v2330_v22, 0.0  ;;  %v2405_v17 = vmax.f32 %v2355_v27, 0.0  ;;  %v2331_v46 = vadd.f32 %v4461_v37, %v2274_v21  ;;  %v2356_v2 = vadd.f32 %v4461_v37, %v2299_v52 }
 0x274   :  { %v1957_v29 = vpop.f32.mrb[204].mxu0  ;;  %v2195_v48 = vpop.f32.mrb[204].mxu1 }
 0x275   :  { %2431 = vst.msk [vmem:[%s4915_s6 + $0xb0] sm:$0xff] %vm2408_vm4, %v2380_v58  ;;  %2457 = vst.msk [vmem:[%s4915_s6 + $0x178] sm:$0xff] %vm2408_vm4, %v2405_v17  ;;  %v2381_v56 = vmax.f32 %v2331_v46, 0.0  ;;  %v2406_v23 = vmax.f32 %v2356_v2, 0.0  ;;  %v2225_v15 = vmax.f32 %v4452_v3, %v1957_v29  ;;  %v2250_v53 = vmax.f32 %v5239_v34, %v2195_v48  ;;  %v3185_v6 = vpop.f32.mrb[205].mxu0  ;;  %v3241_v49 = vpop.f32.mrb[205].mxu1 }
 0x276   :  { %v1960_v12 = vpop.f32.mrb[206].mxu0  ;;  %v2198_v45 = vpop.f32.mrb[206].mxu1 }
 0x277   :  { %2432 = vst.msk [vmem:[%s4915_s6 + $0xb8] sm:$0xff] %vm2408_vm4, %v2381_v56  ;;  %2458 = vst.msk [vmem:[%s4915_s6 + $0x180] sm:$0xff] %vm2408_vm4, %v2406_v23  ;;  %v2275_v3 = vmax.f32 %v5242_v18, %v2225_v15  ;;  %v2300_v33 = vmax.f32 %v5245_v57, %v2250_v53  ;;  %v3186_v62 = vpop.f32.mrb[207].mxu0  ;;  %v3242_v9 = vpop.f32.mrb[207].mxu1 }
 0x279   :  { %v2332_v8 = vadd.f32 %v4461_v37, %v2275_v3  ;;  %v2357_v1 = vadd.f32 %v4461_v37, %v2300_v33 }
 0x27b   :  { %v2382_v36 = vmax.f32 %v2332_v8, 0.0  ;;  %v2407_v31 = vmax.f32 %v2357_v1, 0.0 }
 0x27d   :  { %2434 = vst.msk [vmem:[%s4915_s6 + $0xc0] sm:$0xf] %vm2433_vm5, %v2382_v36  ;;  %2459 = vst.msk [vmem:[%s4915_s6 + $0x188] sm:$0xf] %vm2433_vm5, %v2407_v31 }

// kernel: lenet_forward.3
= control target key start
LH: loop header
LB: loop body
LE: loop exit
PB: predicated region body
PF: predicated region fallthrough
CT: control target
= control target key end

     0   :  { %v3672_v1 = vmov 0   ;;  %vm145_vm0 = vcmask 179200   ;;  %s4755_s0 = inlined_call_operand.vmem [shape: bf16[2,25,150], index: 0, kind: input, shape index: {}]   ;;  %s4756_s1 = inlined_call_operand.vmem [shape: bf16[2,25,150], index: 1, kind: input, shape index: {}]   ;;  %s4757_s2 = inlined_call_operand.vmem [shape: bf16[2,25,150], index: 2, kind: input, shape index: {}]   ;;  %s4758_s3 = inlined_call_operand.vmem [shape: bf16[2,25,150], index: 3, kind: input, shape index: {}]   ;;  %s4759_s4 = inlined_call_operand.vmem [shape: bf16[150,16], index: 4, kind: input, shape index: {}]   ;;  %s4760_s5 = inlined_call_operand.vmem [shape: f32[1,1,16], index: 5, kind: input, shape index: {}]   ;;  %s4761_s6 = inlined_call_operand.vmem [shape: f32[25,16,128], index: 6, kind: input, shape index: {}]   ;;  %s4762_s7 = inlined_call_operand.vmem [shape: f32[1,128], index: 7, kind: input, shape index: {}]   ;;  %s4763_s8 = inlined_call_operand.vmem [shape: f32[128,128], index: 8, kind: input, shape index: {}]   ;;  %s4764_s9 = inlined_call_operand.vmem [shape: f32[1,128], index: 9, kind: input, shape index: {}]   ;;  %s4765_s10 = inlined_call_operand.vmem [shape: f32[128,128], index: 10, kind: input, shape index: {}]   ;;  %s4766_s11 = inlined_call_operand.vmem [shape: f32[1,128], index: 11, kind: input, shape index: {}]   ;;  %s4767_s12 = inlined_call_operand.hbm [shape: f32[2,128], index: 12, kind: output, shape index: {}]  }
   0x1   :  { %v3745_v0 = vld [vmem:[%s4759_s4] sm:$0xff]   ;;  %156 = vmatprep.subr.bf16.mxu0 %v3672_v1  ;;  %229 = vmatprep.subr.bf16.mxu1 %v3672_v1  ;;  %v3754_v2 = vld [vmem:[%s4759_s4 + $0x8] sm:$0xff]   ;;  %v3763_v3 = vld [vmem:[%s4759_s4 + $0x10] sm:$0xff]  }
   0x2   :  { %157 = vmatpush1.bf16.msra.mxu0 %v3745_v0  ;;  %230 = vmatpush1.bf16.msra.mxu1 %v3745_v0  ;;  %v3772_v4 = vld [vmem:[%s4759_s4 + $0x18] sm:$0xff]   ;;  %v3602_v5 = vld [vmem:[%s4755_s0 + $0x4] ss:$8 sps:$4 sm:$0xff]   ;;  %v3807_v9 = vld [vmem:[%s4759_s4 + $0x30] sm:$0xff]  }
   0x3   :  { %158 = vmatprep.subr.bf16.mxu0 %v3672_v1  ;;  %231 = vmatprep.subr.bf16.mxu1 %v3672_v1  ;;  %v3605_v6 = vld [vmem:[%s4755_s0 + $0x24] ss:$8 sps:$4 sm:$0xff]   ;;  %v3816_v10 = vld [vmem:[%s4759_s4 + $0x38] sm:$0xff]  }
   0x4   :  { %2987 = vmatprep.mubr.msk.bf16.mxu0 %vm145_vm0, %v3602_v5  ;;  %v3788_v7 = vld [vmem:[%s4759_s4 + $0x20] sm:$0xff]   ;;  %2993 = vmatprep.mubr.msk.bf16.mxu1 %vm145_vm0, %v3605_v6  ;;  %v3798_v8 = vld [vmem:[%s4759_s4 + $0x28] sm:$0xff]  }
   0x6   :  { %159 = vmatpush1.bf16.msra.mxu0 %v3754_v2  ;;  %232 = vmatpush1.bf16.msra.mxu1 %v3754_v2 }
   0x7   :  { %160 = vmatprep.subr.bf16.mxu0 %v3672_v1  ;;  %233 = vmatprep.subr.bf16.mxu1 %v3672_v1 }
   0xa   :  { %161 = vmatpush1.bf16.msra.mxu0 %v3763_v3  ;;  %234 = vmatpush1.bf16.msra.mxu1 %v3763_v3 }
   0xb   :  { %162 = vmatprep.subr.bf16.mxu0 %v3672_v1  ;;  %235 = vmatprep.subr.bf16.mxu1 %v3672_v1 }
   0xe   :  { %163 = vmatpush1.bf16.msra.mxu0 %v3772_v4  ;;  %236 = vmatpush1.bf16.msra.mxu1 %v3772_v4 }
   0xf   :  { %164 = vmatprep.subr.bf16.mxu0 %v3672_v1  ;;  %237 = vmatprep.subr.bf16.mxu1 %v3672_v1 }
  0x12   :  { %165 = vmatpush1.bf16.msra.mxu0 %v3788_v7  ;;  %238 = vmatpush1.bf16.msra.mxu1 %v3788_v7 }
  0x13   :  { %166 = vmatprep.subr.bf16.mxu0 %v3672_v1  ;;  %239 = vmatprep.subr.bf16.mxu1 %v3672_v1 }
  0x16   :  { %167 = vmatpush1.bf16.msra.mxu0 %v3798_v8  ;;  %240 = vmatpush1.bf16.msra.mxu1 %v3798_v8 }
  0x17   :  { %168 = vmatprep.subr.bf16.mxu0 %v3672_v1  ;;  %241 = vmatprep.subr.bf16.mxu1 %v3672_v1 }
  0x1a   :  { %169 = vmatpush1.bf16.msra.mxu0 %v3807_v9  ;;  %242 = vmatpush1.bf16.msra.mxu1 %v3807_v9 }
  0x1b   :  { %170 = vmatprep.subr.bf16.mxu0 %v3672_v1  ;;  %243 = vmatprep.subr.bf16.mxu1 %v3672_v1 }
  0x1c   :  { %17 = vsyncpa [#allocation3], 0  ;;  %v3825_v11 = vld [vmem:[%s4759_s4 + $0x40] sm:$0xff]   ;;  %v3599_v12 = vld [vmem:[%s4759_s4 + $0x48] ss:$0 sps:$4 sm:$0x77]  }
  0x1d   :  { %vm152_vm1 = vcmask 1042432   ;;  %v3600_v14 = vld [vmem:[%s4755_s0] ss:$8 sps:$4 sm:$0xff]   ;;  %v3606_v16 = vld [vmem:[%s4755_s0 + $0x14] ss:$8 sps:$4 sm:$0x1f]  }
  0x1e   :  { %171 = vmatpush1.bf16.msra.mxu0 %v3816_v10  ;;  %244 = vmatpush1.bf16.msra.mxu1 %v3816_v10  ;;  %v3836_v13 = vsel %vm152_vm1, %v3599_v12, 0  ;;  %v3603_v15 = vld [vmem:[%s4755_s0 + $0x20] ss:$8 sps:$4 sm:$0xff]   ;;  %v3609_v17 = vld [vmem:[%s4755_s0 + $0x34] ss:$8 sps:$4 sm:$0x1f]  }
  0x1f   :  { %172 = vmatprep.subr.bf16.mxu0 %v3672_v1  ;;  %245 = vmatprep.subr.bf16.mxu1 %v3672_v1  ;;  %v3608_v18 = vld [vmem:[%s4755_s0 + $0x10] ss:$8 sps:$4 sm:$0x1f]   ;;  %v3614_v20 = vld [vmem:[%s4756_s1 + $0x4] ss:$8 sps:$4 sm:$0xff]   ;;  %v3673_v47 = vmov 0.0|0.0  }
  0x20   :  { %v3611_v19 = vld [vmem:[%s4755_s0 + $0x30] ss:$8 sps:$4 sm:$0x1f]   ;;  %v3617_v21 = vld [vmem:[%s4756_s1 + $0x24] ss:$8 sps:$4 sm:$0xff]   ;;  %vm3674_vm2 = vmmov 0  }
  0x21   :  { %v3612_v22 = vld [vmem:[%s4756_s1] ss:$8 sps:$4 sm:$0xff]   ;;  %v3618_v24 = vld [vmem:[%s4756_s1 + $0x14] ss:$8 sps:$4 sm:$0x1f]   ;;  %v3675_v59 = vmov 0.0  }
  0x22   :  { %173 = vmatpush1.bf16.msra.mxu0 %v3825_v11  ;;  %246 = vmatpush1.bf16.msra.mxu1 %v3825_v11  ;;  %v3615_v23 = vld [vmem:[%s4756_s1 + $0x20] ss:$8 sps:$4 sm:$0xff]   ;;  %v3620_v25 = vld [vmem:[%s4756_s1 + $0x34] ss:$8 sps:$4 sm:$0x1f]   ;;  %vm795_vm3 = vcmask 1041409  }
  0x23   :  { %174 = vmatprep.subr.bf16.mxu0 %v3672_v1  ;;  %247 = vmatprep.subr.bf16.mxu1 %v3672_v1  ;;  %v3622_v26 = vld [vmem:[%s4756_s1 + $0x10] ss:$8 sps:$4 sm:$0x1f]   ;;  %v3626_v28 = vld [vmem:[%s4757_s2 + $0x4] ss:$8 sps:$4 sm:$0xff]   ;;  %vm797_vm4 = vcmask 130048  }
  0x24   :  { %v3623_v27 = vld [vmem:[%s4756_s1 + $0x30] ss:$8 sps:$4 sm:$0x1f]   ;;  %v3629_v29 = vld [vmem:[%s4757_s2 + $0x24] ss:$8 sps:$4 sm:$0xff]   ;;  %s3676_s23 = smov [#allocation2]  }
  0x25   :  { %v3624_v30 = vld [vmem:[%s4757_s2] ss:$8 sps:$4 sm:$0xff]   ;;  %v3630_v32 = vld [vmem:[%s4757_s2 + $0x14] ss:$8 sps:$4 sm:$0x1f]   ;;  %s2965_s0 = sshll.u32 %s3676_s23, 4  ;;  %s2966_s0 = int_to_ptr.vmem [resolvable:$true] %s2965_s0 }
  0x26   :  { %175 = vmatpush1.bf16.msra.mxu0 %v3836_v13  ;;  %248 = vmatpush1.bf16.msra.mxu1 %v3836_v13  ;;  %v3627_v31 = vld [vmem:[%s4757_s2 + $0x20] ss:$8 sps:$4 sm:$0xff]   ;;  %v3633_v33 = vld [vmem:[%s4757_s2 + $0x34] ss:$8 sps:$4 sm:$0x1f]   ;;  %p3653_p1 = scmp.lt.s32.totalorder %s2966_s0, %s2966_s0 }
  0x27   :  { %310 = vmatprep.subr.bf16.mxu0 %v3672_v1  ;;  %383 = vmatprep.subr.bf16.mxu1 %v3672_v1  ;;  %v3632_v34 = vld [vmem:[%s4757_s2 + $0x10] ss:$8 sps:$4 sm:$0x1f]   ;;  %v3638_v36 = vld [vmem:[%s4758_s3 + $0x4] ss:$8 sps:$4 sm:$0xff]  }
  0x28   :  { %v3635_v35 = vld [vmem:[%s4757_s2 + $0x30] ss:$8 sps:$4 sm:$0x1f]   ;;  %v3641_v37 = vld [vmem:[%s4758_s3 + $0x24] ss:$8 sps:$4 sm:$0xff]  }
  0x29   :  { %189 = vmatmul.mubr.bf16.vlgmr.msra.gmra.mrb[0].mxu0 %v3600_v14  ;;  %262 = vmatmul.mubr.bf16.vlgmr.msra.gmra.mrb[0].mxu1 %v3603_v15  ;;  %v3636_v38 = vld [vmem:[%s4758_s3] ss:$8 sps:$4 sm:$0xff]   ;;  %v3642_v40 = vld [vmem:[%s4758_s3 + $0x14] ss:$8 sps:$4 sm:$0x1f]  }
  0x2a   :  { %311 = vmatpush1.bf16.msra.mxu0 %v3745_v0  ;;  %384 = vmatpush1.bf16.msra.mxu1 %v3745_v0  ;;  %v3639_v39 = vld [vmem:[%s4758_s3 + $0x20] ss:$8 sps:$4 sm:$0xff]   ;;  %v3644_v41 = vld [vmem:[%s4758_s3 + $0x34] ss:$8 sps:$4 sm:$0x1f]  }
  0x2b   :  { %312 = vmatprep.subr.bf16.mxu0 %v3672_v1  ;;  %385 = vmatprep.subr.bf16.mxu1 %v3672_v1  ;;  %v3646_v42 = vld [vmem:[%s4758_s3 + $0x10] ss:$8 sps:$4 sm:$0x1f]   ;;  %v787_v46 = vld [vmem:[%s4761_s6] sm:$0xff]  ;;  %v788_v49 = vld [vmem:[%s4761_s6 + $0x8] sm:$0xff] }
  0x2c   :  { %2988 = vmatprep.mubr.msk.bf16.mxu0 %vm145_vm0, %v3606_v16  ;;  %2994 = vmatprep.mubr.msk.bf16.mxu1 %vm145_vm0, %v3609_v17  ;;  %v3647_v43 = vld [vmem:[%s4758_s3 + $0x30] ss:$8 sps:$4 sm:$0x1f]   ;;  %v3466_v50 = vpack.c.bf16 %v788_v49, %v787_v46  ;;  %v4142_v46 = vld [vmem:[%s4760_s5] ss:$0 sm:$0xff]  ;;  %v4147_v49 = vld [vmem:[%s4761_s6 + $0x28] sm:$0xff] }
  0x2d   :  { %v3032_v44 = vld [vmem:[%s4761_s6 + $0x10] sm:$0xff]  ;;  %v3033_v45 = vld [vmem:[%s4761_s6 + $0x18] sm:$0xff] }
  0x2e   :  { %313 = vmatpush1.bf16.msra.mxu0 %v3754_v2  ;;  %386 = vmatpush1.bf16.msra.mxu1 %v3754_v2  ;;  %v3463_v48 = vpack.c.bf16 %v3033_v45, %v3032_v44  ;;  %v4137_v44 = vld [vmem:[%s4761_s6 + $0x20] sm:$0xff] }
  0x2f   :  { %314 = vmatprep.subr.bf16.mxu0 %v3672_v1  ;;  %387 = vmatprep.subr.bf16.mxu1 %v3672_v1 }
  0x31   :  { %197 = vmatmul.mubr.bf16.gmra.mrb[4].mxu0 %v3608_v18  ;;  %270 = vmatmul.mubr.bf16.gmra.mrb[4].mxu1 %v3611_v19 }
  0x32   :  { %315 = vmatpush1.bf16.msra.mxu0 %v3763_v3  ;;  %388 = vmatpush1.bf16.msra.mxu1 %v3763_v3 }
  0x33   :  { %316 = vmatprep.subr.bf16.mxu0 %v3672_v1  ;;  %389 = vmatprep.subr.bf16.mxu1 %v3672_v1 }
  0x34   :  { %2999 = vmatprep.mubr.msk.bf16.mxu0 %vm145_vm0, %v3614_v20  ;;  %3005 = vmatprep.mubr.msk.bf16.mxu1 %vm145_vm0, %v3617_v21 }
  0x36   :  { %317 = vmatpush1.bf16.msra.mxu0 %v3772_v4  ;;  %390 = vmatpush1.bf16.msra.mxu1 %v3772_v4 }
  0x37   :  { %318 = vmatprep.subr.bf16.mxu0 %v3672_v1  ;;  %391 = vmatprep.subr.bf16.mxu1 %v3672_v1 }
  0x3a   :  { %319 = vmatpush1.bf16.msra.mxu0 %v3788_v7  ;;  %392 = vmatpush1.bf16.msra.mxu1 %v3788_v7 }
  0x3b   :  { %320 = vmatprep.subr.bf16.mxu0 %v3672_v1  ;;  %393 = vmatprep.subr.bf16.mxu1 %v3672_v1 }
  0x3e   :  { %321 = vmatpush1.bf16.msra.mxu0 %v3798_v8  ;;  %394 = vmatpush1.bf16.msra.mxu1 %v3798_v8 }
  0x3f   :  { %322 = vmatprep.subr.bf16.mxu0 %v3672_v1  ;;  %395 = vmatprep.subr.bf16.mxu1 %v3672_v1 }
  0x42   :  { %323 = vmatpush1.bf16.msra.mxu0 %v3807_v9  ;;  %396 = vmatpush1.bf16.msra.mxu1 %v3807_v9 }
  0x43   :  { %324 = vmatprep.subr.bf16.mxu0 %v3672_v1  ;;  %397 = vmatprep.subr.bf16.mxu1 %v3672_v1 }
  0x46   :  { %325 = vmatpush1.bf16.msra.mxu0 %v3816_v10  ;;  %398 = vmatpush1.bf16.msra.mxu1 %v3816_v10 }
  0x47   :  { %326 = vmatprep.subr.bf16.mxu0 %v3672_v1  ;;  %399 = vmatprep.subr.bf16.mxu1 %v3672_v1 }
  0x4a   :  { %327 = vmatpush1.bf16.msra.mxu0 %v3825_v11  ;;  %400 = vmatpush1.bf16.msra.mxu1 %v3825_v11 }
  0x4b   :  { %328 = vmatprep.subr.bf16.mxu0 %v3672_v1  ;;  %401 = vmatprep.subr.bf16.mxu1 %v3672_v1 }
  0x4e   :  { %329 = vmatpush1.bf16.msra.mxu0 %v3836_v13  ;;  %402 = vmatpush1.bf16.msra.mxu1 %v3836_v13 }
  0x4f   :  { %472 = vmatprep.subr.bf16.mxu0 %v3672_v1  ;;  %545 = vmatprep.subr.bf16.mxu1 %v3672_v1 }
  0x51   :  { %343 = vmatmul.mubr.bf16.vlgmr.msra.gmra.mrb[8].mxu0 %v3612_v22  ;;  %416 = vmatmul.mubr.bf16.vlgmr.msra.gmra.mrb[8].mxu1 %v3615_v23 }
  0x52   :  { %473 = vmatpush1.bf16.msra.mxu0 %v3745_v0  ;;  %546 = vmatpush1.bf16.msra.mxu1 %v3745_v0 }
  0x53   :  { %474 = vmatprep.subr.bf16.mxu0 %v3672_v1  ;;  %547 = vmatprep.subr.bf16.mxu1 %v3672_v1 }
  0x54   :  { %3000 = vmatprep.mubr.msk.bf16.mxu0 %vm145_vm0, %v3618_v24  ;;  %3006 = vmatprep.mubr.msk.bf16.mxu1 %vm145_vm0, %v3620_v25 }
  0x56   :  { %475 = vmatpush1.bf16.msra.mxu0 %v3754_v2  ;;  %548 = vmatpush1.bf16.msra.mxu1 %v3754_v2 }
  0x57   :  { %476 = vmatprep.subr.bf16.mxu0 %v3672_v1  ;;  %549 = vmatprep.subr.bf16.mxu1 %v3672_v1 }
  0x59   :  { %351 = vmatmul.mubr.bf16.gmra.mrb[12].mxu0 %v3622_v26  ;;  %424 = vmatmul.mubr.bf16.gmra.mrb[12].mxu1 %v3623_v27 }
  0x5a   :  { %477 = vmatpush1.bf16.msra.mxu0 %v3763_v3  ;;  %550 = vmatpush1.bf16.msra.mxu1 %v3763_v3 }
  0x5b   :  { %478 = vmatprep.subr.bf16.mxu0 %v3672_v1  ;;  %551 = vmatprep.subr.bf16.mxu1 %v3672_v1 }
  0x5c   :  { %3011 = vmatprep.mubr.msk.bf16.mxu0 %vm145_vm0, %v3626_v28  ;;  %3017 = vmatprep.mubr.msk.bf16.mxu1 %vm145_vm0, %v3629_v29 }
  0x5e   :  { %479 = vmatpush1.bf16.msra.mxu0 %v3772_v4  ;;  %552 = vmatpush1.bf16.msra.mxu1 %v3772_v4 }
  0x5f   :  { %480 = vmatprep.subr.bf16.mxu0 %v3672_v1  ;;  %553 = vmatprep.subr.bf16.mxu1 %v3672_v1 }
  0x62   :  { %481 = vmatpush1.bf16.msra.mxu0 %v3788_v7  ;;  %554 = vmatpush1.bf16.msra.mxu1 %v3788_v7 }
  0x63   :  { %482 = vmatprep.subr.bf16.mxu0 %v3672_v1  ;;  %555 = vmatprep.subr.bf16.mxu1 %v3672_v1 }
  0x66   :  { %483 = vmatpush1.bf16.msra.mxu0 %v3798_v8  ;;  %556 = vmatpush1.bf16.msra.mxu1 %v3798_v8 }
  0x67   :  { %484 = vmatprep.subr.bf16.mxu0 %v3672_v1  ;;  %557 = vmatprep.subr.bf16.mxu1 %v3672_v1 }
  0x6a   :  { %485 = vmatpush1.bf16.msra.mxu0 %v3807_v9  ;;  %558 = vmatpush1.bf16.msra.mxu1 %v3807_v9 }
  0x6b   :  { %486 = vmatprep.subr.bf16.mxu0 %v3672_v1  ;;  %559 = vmatprep.subr.bf16.mxu1 %v3672_v1 }
  0x6e   :  { %487 = vmatpush1.bf16.msra.mxu0 %v3816_v10  ;;  %560 = vmatpush1.bf16.msra.mxu1 %v3816_v10 }
  0x6f   :  { %488 = vmatprep.subr.bf16.mxu0 %v3672_v1  ;;  %561 = vmatprep.subr.bf16.mxu1 %v3672_v1 }
  0x72   :  { %489 = vmatpush1.bf16.msra.mxu0 %v3825_v11  ;;  %562 = vmatpush1.bf16.msra.mxu1 %v3825_v11 }
  0x73   :  { %490 = vmatprep.subr.bf16.mxu0 %v3672_v1  ;;  %563 = vmatprep.subr.bf16.mxu1 %v3672_v1 }
  0x76   :  { %491 = vmatpush1.bf16.msra.mxu0 %v3836_v13  ;;  %564 = vmatpush1.bf16.msra.mxu1 %v3836_v13 }
  0x77   :  { %626 = vmatprep.subr.bf16.mxu0 %v3672_v1  ;;  %699 = vmatprep.subr.bf16.mxu1 %v3672_v1 }
  0x79   :  { %505 = vmatmul.mubr.bf16.vlgmr.msra.gmra.mrb[16].mxu0 %v3624_v30  ;;  %578 = vmatmul.mubr.bf16.vlgmr.msra.gmra.mrb[16].mxu1 %v3627_v31 }
  0x7a   :  { %627 = vmatpush1.bf16.msra.mxu0 %v3745_v0  ;;  %700 = vmatpush1.bf16.msra.mxu1 %v3745_v0 }
  0x7b   :  { %628 = vmatprep.subr.bf16.mxu0 %v3672_v1  ;;  %701 = vmatprep.subr.bf16.mxu1 %v3672_v1 }
  0x7c   :  { %3012 = vmatprep.mubr.msk.bf16.mxu0 %vm145_vm0, %v3630_v32  ;;  %3018 = vmatprep.mubr.msk.bf16.mxu1 %vm145_vm0, %v3633_v33 }
  0x7e   :  { %629 = vmatpush1.bf16.msra.mxu0 %v3754_v2  ;;  %702 = vmatpush1.bf16.msra.mxu1 %v3754_v2 }
  0x7f   :  { %630 = vmatprep.subr.bf16.mxu0 %v3672_v1  ;;  %703 = vmatprep.subr.bf16.mxu1 %v3672_v1 }
  0x81   :  { %513 = vmatmul.mubr.bf16.gmra.mrb[20].mxu0 %v3632_v34  ;;  %586 = vmatmul.mubr.bf16.gmra.mrb[20].mxu1 %v3635_v35 }
  0x82   :  { %631 = vmatpush1.bf16.msra.mxu0 %v3763_v3  ;;  %704 = vmatpush1.bf16.msra.mxu1 %v3763_v3 }
  0x83   :  { %632 = vmatprep.subr.bf16.mxu0 %v3672_v1  ;;  %705 = vmatprep.subr.bf16.mxu1 %v3672_v1 }
  0x84   :  { %3023 = vmatprep.mubr.msk.bf16.mxu0 %vm145_vm0, %v3638_v36  ;;  %3029 = vmatprep.mubr.msk.bf16.mxu1 %vm145_vm0, %v3641_v37 }
  0x86   :  { %633 = vmatpush1.bf16.msra.mxu0 %v3772_v4  ;;  %706 = vmatpush1.bf16.msra.mxu1 %v3772_v4 }
  0x87   :  { %634 = vmatprep.subr.bf16.mxu0 %v3672_v1  ;;  %707 = vmatprep.subr.bf16.mxu1 %v3672_v1 }
  0x8a   :  { %635 = vmatpush1.bf16.msra.mxu0 %v3788_v7  ;;  %708 = vmatpush1.bf16.msra.mxu1 %v3788_v7 }
  0x8b   :  { %636 = vmatprep.subr.bf16.mxu0 %v3672_v1  ;;  %709 = vmatprep.subr.bf16.mxu1 %v3672_v1 }
  0x8e   :  { %637 = vmatpush1.bf16.msra.mxu0 %v3798_v8  ;;  %710 = vmatpush1.bf16.msra.mxu1 %v3798_v8 }
  0x8f   :  { %638 = vmatprep.subr.bf16.mxu0 %v3672_v1  ;;  %711 = vmatprep.subr.bf16.mxu1 %v3672_v1 }
  0x92   :  { %639 = vmatpush1.bf16.msra.mxu0 %v3807_v9  ;;  %712 = vmatpush1.bf16.msra.mxu1 %v3807_v9 }
  0x93   :  { %640 = vmatprep.subr.bf16.mxu0 %v3672_v1  ;;  %713 = vmatprep.subr.bf16.mxu1 %v3672_v1 }
  0x96   :  { %641 = vmatpush1.bf16.msra.mxu0 %v3816_v10  ;;  %714 = vmatpush1.bf16.msra.mxu1 %v3816_v10 }
  0x97   :  { %642 = vmatprep.subr.bf16.mxu0 %v3672_v1  ;;  %715 = vmatprep.subr.bf16.mxu1 %v3672_v1 }
  0x9a   :  { %643 = vmatpush1.bf16.msra.mxu0 %v3825_v11  ;;  %716 = vmatpush1.bf16.msra.mxu1 %v3825_v11 }
  0x9b   :  { %644 = vmatprep.subr.bf16.mxu0 %v3672_v1  ;;  %717 = vmatprep.subr.bf16.mxu1 %v3672_v1 }
  0x9e   :  { %645 = vmatpush1.bf16.msra.mxu0 %v3836_v13  ;;  %718 = vmatpush1.bf16.msra.mxu1 %v3836_v13 }
  0x9f   :  { %3462 = vmatprep.subr.bf16.mxu0 %v3673_v47  ;;  %3465 = vmatprep.subr.bf16.mxu1 %v3673_v47 }
  0xa1   :  { %659 = vmatmul.mubr.bf16.vlgmr.msra.gmra.mrb[24].mxu0 %v3636_v38  ;;  %732 = vmatmul.mubr.bf16.vlgmr.msra.gmra.mrb[24].mxu1 %v3639_v39 }
  0xa2   :  { %3024 = vmatprep.mubr.msk.bf16.mxu0 %vm145_vm0, %v3642_v40  ;;  %3030 = vmatprep.mubr.msk.bf16.mxu1 %vm145_vm0, %v3644_v41 }
  0xa3   :  { %3464 = vmatpush3.bf16.msra.mxu0 %v3463_v48  ;;  %3467 = vmatpush3.bf16.msra.mxu1 %v3466_v50  ;;  %v4152_v50 = vld [vmem:[%s4761_s6 + $0x30] sm:$0xff] }
  0xa4   :  { %3468 = vmatprep.subr.bf16.mxu0 %v3673_v47  ;;  %3471 = vmatprep.subr.bf16.mxu1 %v3673_v47 }
  0xa9   :  { %667 = vmatmul.mubr.bf16.gmra.mrb[28].mxu0 %v3646_v42  ;;  %740 = vmatmul.mubr.bf16.gmra.mrb[28].mxu1 %v3647_v43 }
  0xaa   :  { %3221 = vmatprep.mubr.msk.f32.mxu0 %vm3674_vm2, %v3675_v59  ;;  %3228 = vmatprep.mubr.msk.f32.mxu1 %vm3674_vm2, %v3675_v59 }
  0xfc   :  { %v4080_v51 = vpop.f32.mrb[0].mxu0  ;;  %v4082_v52 = vpop.f32.mrb[0].mxu1 }
  0xfd   :  { %v192_v53 = vpop.f32.mrb[1].mxu0  ;;  %v265_v54 = vpop.f32.mrb[1].mxu1 }
  0xfe   :  { %v4084_v55 = vpop.f32.mrb[2].mxu0  ;;  %v4086_v56 = vpop.f32.mrb[2].mxu1 }
  0xff   :  { %v195_v57 = vpop.f32.mrb[3].mxu0  ;;  %v268_v58 = vpop.f32.mrb[3].mxu1 }
 0x100   :  { %v4162_v58 = vld [vmem:[%s4761_s6 + $0x40] sm:$0xff] }
 0x104   :  { %v4092_v60 = vpop.f32.mrb[4].mxu0  ;;  %v4094_v61 = vpop.f32.mrb[4].mxu1 }
 0x105   :  { %v200_v62 = vpop.f32.mrb[5].mxu0  ;;  %v273_v63 = vpop.f32.mrb[5].mxu1 }
 0x106   :  { %v4096_v0 = vpop.f32.mrb[6].mxu0  ;;  %v4098_v1 = vpop.f32.mrb[6].mxu1  ;;  %v4167_v62 = vld [vmem:[%s4761_s6 + $0x48] sm:$0xff]  ;;  %v4172_v63 = vld [vmem:[%s4761_s6 + $0x50] sm:$0xff] }
 0x107   :  { %v203_v2 = vpop.f32.mrb[7].mxu0  ;;  %v276_v3 = vpop.f32.mrb[7].mxu1 }
 0x108   :  { %v4177_v2 = vld [vmem:[%s4761_s6 + $0x58] sm:$0xff] }
 0x124   :  { %v344_v4 = vpop.f32.mrb[8].mxu0  ;;  %v417_v5 = vpop.f32.mrb[8].mxu1 }
 0x125   :  { %v432_v6 = vmax.f32 %v4080_v51, %v344_v4  ;;  %v436_v7 = vmax.f32 %v4082_v52, %v417_v5  ;;  %v346_v8 = vpop.f32.mrb[9].mxu0  ;;  %v419_v9 = vpop.f32.mrb[9].mxu1  ;;  %v4157_v51 = vld [vmem:[%s4761_s6 + $0x38] sm:$0xff]  ;;  %v4182_v5 = vld [vmem:[%s4761_s6 + $0x60] sm:$0xff] }
 0x126   :  { %v4102_v10 = vpop.f32.mrb[10].mxu0  ;;  %v4104_v11 = vpop.f32.mrb[10].mxu1  ;;  %v4187_v8 = vld [vmem:[%s4761_s6 + $0x68] sm:$0xff]  ;;  %v4192_v9 = vld [vmem:[%s4761_s6 + $0x70] sm:$0xff] }
 0x127   :  { %v433_v12 = vmax.f32 %v4084_v55, %v4102_v10  ;;  %v437_v13 = vmax.f32 %v4086_v56, %v4104_v11  ;;  %v349_v14 = vpop.f32.mrb[11].mxu0  ;;  %v422_v15 = vpop.f32.mrb[11].mxu1  ;;  %v3475_v55 = vpack.c.bf16 %v4167_v62, %v4162_v58  ;;  %v3478_v56 = vpack.c.bf16 %v4177_v2, %v4172_v63 }
 0x128   :  { %v3481_v10 = vpack.c.bf16 %v4187_v8, %v4182_v5 }
 0x12c   :  { %v4110_v16 = vpop.f32.mrb[12].mxu0  ;;  %v4112_v17 = vpop.f32.mrb[12].mxu1 }
 0x12d   :  { %v434_v18 = vmax.f32 %v4092_v60, %v4110_v16  ;;  %v438_v19 = vmax.f32 %v4094_v61, %v4112_v17  ;;  %v354_v20 = vpop.f32.mrb[13].mxu0  ;;  %v427_v21 = vpop.f32.mrb[13].mxu1 }
 0x12e   :  { %v4118_v22 = vpop.f32.mrb[14].mxu0  ;;  %v4120_v23 = vpop.f32.mrb[14].mxu1 }
 0x12f   :  { %v435_v24 = vmax.f32 %v4096_v0, %v4118_v22  ;;  %v439_v25 = vmax.f32 %v4098_v1, %v4120_v23  ;;  %v357_v26 = vpop.f32.mrb[15].mxu0  ;;  %v430_v27 = vpop.f32.mrb[15].mxu1 }
 0x14c   :  { %v506_v28 = vpop.f32.mrb[16].mxu0  ;;  %v579_v29 = vpop.f32.mrb[16].mxu1 }
 0x14d   :  { %v508_v30 = vpop.f32.mrb[17].mxu0  ;;  %v581_v31 = vpop.f32.mrb[17].mxu1 }
 0x14e   :  { %v509_v32 = vpop.f32.mrb[18].mxu0  ;;  %v582_v33 = vpop.f32.mrb[18].mxu1  ;;  %v4207_v30 = vld [vmem:[%s4761_s6 + $0x88] sm:$0xff]  ;;  %v4216_v31 = vld [vmem:[%s4761_s6 + $0x90] sm:$0xff] }
 0x14f   :  { %v511_v34 = vpop.f32.mrb[19].mxu0  ;;  %v584_v35 = vpop.f32.mrb[19].mxu1 }
 0x154   :  { %v4126_v36 = vpop.f32.mrb[20].mxu0  ;;  %v4128_v37 = vpop.f32.mrb[20].mxu1 }
 0x155   :  { %v516_v38 = vpop.f32.mrb[21].mxu0  ;;  %v589_v39 = vpop.f32.mrb[21].mxu1 }
 0x156   :  { %v4130_v40 = vpop.f32.mrb[22].mxu0  ;;  %v4132_v41 = vpop.f32.mrb[22].mxu1 }
 0x157   :  { %v519_v42 = vpop.f32.mrb[23].mxu0  ;;  %v592_v43 = vpop.f32.mrb[23].mxu1 }
 0x158   :  { %v4239_v42 = vld [vmem:[%s4761_s6 + $0xa8] sm:$0xff]  ;;  %v4244_v43 = vld [vmem:[%s4761_s6 + $0xb0] sm:$0xff] }
 0x174   :  { %v660_v45 = vpop.f32.mrb[24].mxu0  ;;  %v733_v48 = vpop.f32.mrb[24].mxu1 }
 0x175   :  { %v748_v52 = vmax.f32 %v506_v28, %v660_v45  ;;  %v752_v53 = vmax.f32 %v579_v29, %v733_v48  ;;  %v662_v54 = vpop.f32.mrb[25].mxu0  ;;  %v735_v57 = vpop.f32.mrb[25].mxu1  ;;  %v4197_v28 = vld [vmem:[%s4761_s6 + $0x78] sm:$0xff]  ;;  %v4202_v29 = vld [vmem:[%s4761_s6 + $0x80] sm:$0xff] }
 0x176   :  { %v663_v3 = vpop.f32.mrb[26].mxu0  ;;  %v736_v4 = vpop.f32.mrb[26].mxu1  ;;  %v3484_v11 = vpack.c.bf16 %v4197_v28, %v4192_v9 }
 0x177   :  { %v756_v14 = vmax.f32 %v432_v6, %v748_v52  ;;  %v760_v15 = vmax.f32 %v436_v7, %v752_v53  ;;  %v749_v20 = vmax.f32 %v509_v32, %v663_v3  ;;  %v753_v21 = vmax.f32 %v582_v33, %v736_v4  ;;  %v665_v26 = vpop.f32.mrb[27].mxu0  ;;  %v738_v27 = vpop.f32.mrb[27].mxu1  ;;  %v4221_v32 = vld [vmem:[%s4761_s6 + $0x98] sm:$0xff]  ;;  %v4226_v33 = vld [vmem:[%s4761_s6 + $0xa0] sm:$0xff] }
 0x178   :  { %v3469_v6 = vpack.c.bf16 %v4147_v49, %v4137_v44  ;;  %v3472_v7 = vpack.c.bf16 %v4157_v51, %v4152_v50  ;;  %v4249_v44 = vld [vmem:[%s4761_s6 + $0xb8] sm:$0xff]  ;;  %v3487_v51 = vpack.c.bf16 %v4207_v30, %v4202_v29  ;;  %v3490_v52 = vpack.c.bf16 %v4221_v32, %v4216_v31  ;;  %v3066_v29 = vld [vmem:[%s4761_s6 + $0xc0] sm:$0xff]  ;;  %v3067_v30 = vld [vmem:[%s4761_s6 + $0xc8] sm:$0xff] }
 0x179   :  { %v771_v34 = vadd.f32 %v4142_v46, %v756_v14  ;;  %v775_v35 = vadd.f32 %v4142_v46, %v760_v15  ;;  %v757_v38 = vmax.f32 %v433_v12, %v749_v20  ;;  %v761_v39 = vmax.f32 %v437_v13, %v753_v21  ;;  %v3069_v32 = vld [vmem:[%s4761_s6 + $0xd0] sm:$0xff] }
 0x17a   :  { %v3493_v53 = vpack.c.bf16 %v4239_v42, %v4226_v33  ;;  %v3496_v54 = vpack.c.bf16 %v4249_v44, %v4244_v43  ;;  %v3073_v33 = vld [vmem:[%s4761_s6 + $0xe8] sm:$0xff]  ;;  %v3075_v43 = vld [vmem:[%s4761_s6 + $0xf0] sm:$0xff]  ;;  %v3076_v44 = vld [vmem:[%s4761_s6 + $0xf8] sm:$0xff] }
 0x17b   :  { %v4259_v12 = vmax.f32 %v771_v34, 0.0  ;;  %v4261_v13 = vmax.f32 %v775_v35, 0.0  ;;  %v772_v45 = vadd.f32 %v4142_v46, %v757_v38  ;;  %v776_v48 = vadd.f32 %v4142_v46, %v761_v39 }
 0x17c   :  { %v668_v49 = vpop.f32.mrb[28].mxu0  ;;  %v741_v50 = vpop.f32.mrb[28].mxu1 }
 0x17d   :  { %v4273_v57 = vmax.f32 %v772_v45, 0.0  ;;  %v4275_v3 = vmax.f32 %v776_v48, 0.0  ;;  %v750_v4 = vmax.f32 %v4126_v36, %v668_v49  ;;  %v754_v14 = vmax.f32 %v4128_v37, %v741_v50  ;;  %v670_v15 = vpop.f32.mrb[29].mxu0  ;;  %v743_v20 = vpop.f32.mrb[29].mxu1 }
 0x17e   :  { %v671_v21 = vpop.f32.mrb[30].mxu0  ;;  %v744_v26 = vpop.f32.mrb[30].mxu1  ;;  %v794_v27 = vrot.slane %v4259_v12, 1  ;;  %v870_v34 = vrot.slane %v4261_v13, 7  ;;  %v947_v35 = vrot.slane %v4259_v12, 2  ;;  %v948_v38 = vrot.slane %v4261_v13, 1 }
 0x17f   :  { %v758_v39 = vmax.f32 %v434_v18, %v750_v4  ;;  %v762_v36 = vmax.f32 %v438_v19, %v754_v14  ;;  %v751_v37 = vmax.f32 %v4130_v40, %v671_v21  ;;  %v755_v45 = vmax.f32 %v4132_v41, %v744_v26  ;;  %v746_v48 = vpop.f32.mrb[31].mxu1  ;;  %v673_v49 = vpop.f32.mrb[31].mxu0 }
 0x180   :  { %v796_v50 = vsel %vm795_vm3, %v4261_v13, %v794_v27  ;;  %v871_v15 = vsel %vm795_vm3, %v870_v34, %v4259_v12  ;;  %v949_v20 = vsel %vm795_vm3, %v948_v38, %v947_v35  ;;  %v1026_v60 = vrot.slane %v4259_v12, 3 }
 0x181   :  { %v773_v16 = vadd.f32 %v4142_v46, %v758_v39  ;;  %v777_v61 = vadd.f32 %v4142_v46, %v762_v36  ;;  %v759_v17 = vmax.f32 %v435_v24, %v751_v37  ;;  %v763_v18 = vmax.f32 %v439_v25, %v755_v45  ;;  %3222 = vmatmul.mubr.msk.f32.vlgmr.msra.gmra.mrb[32].mxu0 %vm797_vm4, %v796_v50 }
 0x182   :  { %3229 = vmatmul.mubr.msk.f32.vlgmr.msra.gmra.mrb[32].mxu1 %vm797_vm4, %v871_v15  ;;  %3470 = vmatpush3.bf16.msra.mxu0 %v3469_v6  ;;  %v1027_v19 = vrot.slane %v4261_v13, 2  ;;  %v1105_v40 = vrot.slane %v4259_v12, 4  ;;  %v1106_v41 = vrot.slane %v4261_v13, 3  ;;  %v1184_v4 = vrot.slane %v4259_v12, 5 }
 0x183   :  { %v4311_v14 = vmax.f32 %v773_v16, 0.0  ;;  %v4313_v0 = vmax.f32 %v777_v61, 0.0  ;;  %v4316_v1 = vadd.f32 %v4142_v46, %v759_v17  ;;  %v778_v22 = vadd.f32 %v4142_v46, %v763_v18  ;;  %3473 = vmatpush3.bf16.msra.mxu1 %v3472_v7  ;;  %3235 = vmatprep.mubr.msk.f32.mxu0 %vm3674_vm2, %v3675_v59 }
 0x184   :  { %3242 = vmatprep.mubr.msk.f32.mxu1 %vm3674_vm2, %v3675_v59  ;;  %3474 = vmatprep.subr.bf16.mxu0 %v3673_v47  ;;  %v1028_v23 = vsel %vm795_vm3, %v1027_v19, %v1026_v60  ;;  %v1107_v24 = vsel %vm795_vm3, %v1106_v41, %v1105_v40  ;;  %v1185_v25 = vrot.slane %v4261_v13, 4  ;;  %v1263_v6 = vrot.slane %v4259_v12, 6 }
 0x185   :  { %v782_v21 = vmax.f32 %v4316_v1, 0.0  ;;  %v786_v46 = vmax.f32 %v778_v22, 0.0  ;;  %3236 = vmatmul.mubr.msk.f32.vlgmr.msra.gmra.mrb[34].mxu0 %vm797_vm4, %v949_v20  ;;  %3477 = vmatprep.subr.bf16.mxu1 %v3673_v47  ;;  %v1264_v7 = vrot.slane %v4261_v13, 5  ;;  %v1342_v26 = vrot.slane %v4259_v12, 7  ;;  %v3072_v1 = vld [vmem:[%s4761_s6 + $0xe0] sm:$0xff] }
 0x186   :  { %3243 = vmatmul.mubr.msk.f32.vlgmr.msra.gmra.mrb[34].mxu1 %vm797_vm4, %v1028_v23  ;;  %3476 = vmatpush3.bf16.msra.mxu0 %v3475_v55  ;;  %v1186_v27 = vsel %vm795_vm3, %v1185_v25, %v1184_v4  ;;  %v1343_v34 = vrot.slane %v4261_v13, 6  ;;  %v1423_v35 = vrot.slane %v4275_v3, 7  ;;  %v1501_v38 = vrot.slane %v4273_v57, 1 }
 0x187   :  { %v4341_v39 = vrot.slane %v786_v46, 7  ;;  %3479 = vmatpush3.bf16.msra.mxu1 %v3478_v56  ;;  %3249 = vmatprep.mubr.msk.f32.mxu0 %vm3674_vm2, %v3675_v59  ;;  %v1265_v58 = vsel %vm795_vm3, %v1264_v7, %v1263_v6  ;;  %v1579_v62 = vrot.slane %v4273_v57, 2  ;;  %v1580_v55 = vrot.slane %v4275_v3, 1 }
 0x188   :  { %3256 = vmatprep.mubr.msk.f32.mxu1 %vm3674_vm2, %v3675_v59  ;;  %3480 = vmatprep.subr.bf16.mxu0 %v3673_v47  ;;  %v1344_v12 = vsel %vm795_vm3, %v1343_v34, %v1342_v26  ;;  %v1424_v63 = vsel %vm795_vm3, %v1423_v35, %v4273_v57  ;;  %v1502_v2 = vsel %vm795_vm3, %v4275_v3, %v1501_v38  ;;  %v1658_v56 = vrot.slane %v4273_v57, 3  ;;  %v3079_v34 = vld [vmem:[%s4761_s6 + $0x108] sm:$0xff]  ;;  %v3081_v35 = vld [vmem:[%s4761_s6 + $0x110] sm:$0xff]  ;;  %v3082_v38 = vld [vmem:[%s4761_s6 + $0x118] sm:$0xff] }
 0x189   :  { %3250 = vmatmul.mubr.msk.f32.vlgmr.msra.gmra.mrb[36].mxu0 %vm797_vm4, %v1107_v24  ;;  %3483 = vmatprep.subr.bf16.mxu1 %v3673_v47  ;;  %v4363_v13 = vsel %vm795_vm3, %v1580_v55, %v1579_v62  ;;  %v1659_v36 = vrot.slane %v4275_v3, 2  ;;  %v1737_v37 = vrot.slane %v4273_v57, 4  ;;  %v1738_v45 = vrot.slane %v4275_v3, 3  ;;  %v3084_v62 = vld [vmem:[%s4761_s6 + $0x120] sm:$0xff]  ;;  %v3085_v55 = vld [vmem:[%s4761_s6 + $0x128] sm:$0xff] }
 0x18a   :  { %3257 = vmatmul.mubr.msk.f32.vlgmr.msra.gmra.mrb[36].mxu1 %vm797_vm4, %v1186_v27  ;;  %3482 = vmatpush3.bf16.msra.mxu0 %v3481_v10  ;;  %v1816_v48 = vrot.slane %v4273_v57, 5  ;;  %v1817_v49 = vrot.slane %v4275_v3, 4  ;;  %v1895_v50 = vrot.slane %v4273_v57, 6  ;;  %v1896_v15 = vrot.slane %v4275_v3, 5 }
 0x18b   :  { %3485 = vmatpush3.bf16.msra.mxu1 %v3484_v11  ;;  %3263 = vmatprep.mubr.msk.f32.mxu0 %vm3674_vm2, %v3675_v59  ;;  %v1660_v20 = vsel %vm795_vm3, %v1659_v36, %v1658_v56  ;;  %v4383_v5 = vsel %vm795_vm3, %v1738_v45, %v1737_v37  ;;  %v1974_v8 = vrot.slane %v4273_v57, 7  ;;  %v1975_v10 = vrot.slane %v4275_v3, 6  ;;  %v3091_v36 = vld [vmem:[%s4761_s6 + $0x148] sm:$0xff]  ;;  %v3093_v37 = vld [vmem:[%s4761_s6 + $0x150] sm:$0xff]  ;;  %v3094_v45 = vld [vmem:[%s4761_s6 + $0x158] sm:$0xff] }
 0x18c   :  { %3270 = vmatprep.mubr.msk.f32.mxu1 %vm3674_vm2, %v3675_v59  ;;  %3486 = vmatprep.subr.bf16.mxu0 %v3673_v47  ;;  %v4391_v9 = vsel %vm795_vm3, %v1817_v49, %v1816_v48  ;;  %v4394_v28 = vsel %vm795_vm3, %v1896_v15, %v1895_v50  ;;  %v2055_v11 = vrot.slane %v4313_v0, 7  ;;  %v2133_v60 = vrot.slane %v4311_v14, 1  ;;  %v3096_v50 = vld [vmem:[%s4761_s6 + $0x160] sm:$0xff]  ;;  %v3097_v15 = vld [vmem:[%s4761_s6 + $0x168] sm:$0xff] }
 0x18d   :  { %3264 = vmatmul.mubr.msk.f32.vlgmr.msra.gmra.mrb[38].mxu0 %vm797_vm4, %v1265_v58  ;;  %3489 = vmatprep.subr.bf16.mxu1 %v3673_v47  ;;  %v4401_v57 = vsel %vm795_vm3, %v1975_v10, %v1974_v8  ;;  %v2211_v3 = vrot.slane %v4311_v14, 2  ;;  %v2212_v16 = vrot.slane %v4313_v0, 1  ;;  %v2290_v61 = vrot.slane %v4311_v14, 3 }
 0x18e   :  { %3271 = vmatmul.mubr.msk.f32.vlgmr.msra.gmra.mrb[38].mxu1 %vm797_vm4, %v1344_v12  ;;  %3488 = vmatpush3.bf16.msra.mxu0 %v3487_v51  ;;  %v4412_v17 = vsel %vm795_vm3, %v2055_v11, %v4311_v14  ;;  %v4416_v18 = vsel %vm795_vm3, %v4313_v0, %v2133_v60  ;;  %v2291_v19 = vrot.slane %v4313_v0, 2  ;;  %v2369_v40 = vrot.slane %v4311_v14, 4  ;;  %v3087_v12 = vld [vmem:[%s4761_s6 + $0x130] sm:$0xff]  ;;  %v2771_v60 = vld [vmem:[%s4763_s8] sm:$0xff] }
 0x18f   :  { %3491 = vmatpush3.bf16.msra.mxu1 %v3490_v52  ;;  %3277 = vmatprep.mubr.msk.f32.mxu0 %vm3674_vm2, %v3675_v59  ;;  %v4432_v51 = vsel %vm795_vm3, %v2212_v16, %v2211_v3  ;;  %v2370_v41 = vrot.slane %v4313_v0, 3  ;;  %v2448_v4 = vrot.slane %v4311_v14, 5  ;;  %v2449_v31 = vrot.slane %v4313_v0, 4  ;;  %v3070_v52 = vld [vmem:[%s4761_s6 + $0xd8] sm:$0xff]  ;;  %v2773_v16 = vld [vmem:[%s4763_s8 + $0x10] sm:$0xff] }
 0x190   :  { %3284 = vmatprep.mubr.msk.f32.mxu1 %vm3674_vm2, %v3675_v59  ;;  %3492 = vmatprep.subr.bf16.mxu0 %v3673_v47  ;;  %v4447_v22 = vsel %vm795_vm3, %v2291_v19, %v2290_v61  ;;  %v2527_v23 = vrot.slane %v4311_v14, 6  ;;  %v2528_v24 = vrot.slane %v4313_v0, 5  ;;  %v2606_v25 = vrot.slane %v4311_v14, 7 }
 0x191   :  { %3278 = vmatmul.mubr.msk.f32.vlgmr.msra.gmra.mrb[40].mxu0 %vm797_vm4, %v1424_v63  ;;  %3495 = vmatprep.subr.bf16.mxu1 %v3673_v47  ;;  %v4455_v6 = vsel %vm795_vm3, %v2370_v41, %v2369_v40  ;;  %v4458_v46 = vsel %vm795_vm3, %v2449_v31, %v2448_v4  ;;  %v2607_v7 = vrot.slane %v4313_v0, 6  ;;  %v4465_v26 = vsel %vm795_vm3, %v4341_v39, %v782_v21  ;;  %v3078_v21 = vld [vmem:[%s4761_s6 + $0x100] sm:$0xff]  ;;  %v3088_v63 = vld [vmem:[%s4761_s6 + $0x138] sm:$0xff]  ;;  %v2777_v40 = vld [vmem:[%s4763_s8 + $0x30] sm:$0xff] }
 0x192   :  { %3285 = vmatmul.mubr.msk.f32.vlgmr.msra.gmra.mrb[40].mxu1 %vm797_vm4, %v1502_v2  ;;  %3494 = vmatpush3.bf16.msra.mxu0 %v3493_v53  ;;  %v3499_v14 = vpack.c.bf16 %v3067_v30, %v3066_v29  ;;  %v4472_v27 = vsel %vm795_vm3, %v2528_v24, %v2527_v23  ;;  %v3502_v0 = vpack.c.bf16 %v3070_v52, %v3069_v32  ;;  %v2778_v29 = vld [vmem:[%s4763_s8 + $0x38] sm:$0xff]  ;;  %v2780_v41 = vld [vmem:[%s4763_s8 + $0x48] sm:$0xff]  ;;  %v2781_v31 = vld [vmem:[%s4763_s8 + $0x50] sm:$0xff] }
 0x193   :  { %3497 = vmatpush3.bf16.msra.mxu1 %v3496_v54  ;;  %3291 = vmatprep.mubr.msk.f32.mxu0 %vm3674_vm2, %v3675_v59  ;;  %v4486_v42 = vsel %vm795_vm3, %v2607_v7, %v2606_v25  ;;  %v3505_v53 = vpack.c.bf16 %v3073_v33, %v3072_v1  ;;  %v3508_v54 = vpack.c.bf16 %v3076_v44, %v3075_v43  ;;  %v2782_v32 = vld [vmem:[%s4763_s8 + $0x58] sm:$0xff]  ;;  %v2784_v23 = vld [vmem:[%s4763_s8 + $0x68] sm:$0xff]  ;;  %v2785_v24 = vld [vmem:[%s4763_s8 + $0x70] sm:$0xff] }
 0x194   :  { %3298 = vmatprep.mubr.msk.f32.mxu1 %vm3674_vm2, %v3675_v59  ;;  %3498 = vmatprep.subr.bf16.mxu0 %v3673_v47  ;;  %v3511_v39 = vpack.c.bf16 %v3079_v34, %v3078_v21  ;;  %v3514_v58 = vpack.c.bf16 %v3082_v38, %v3081_v35  ;;  %v3517_v2 = vpack.c.bf16 %v3085_v55, %v3084_v62  ;;  %v2866_v7 = vld [vmem:[%s4765_s10 + $0x8] sm:$0xff]  ;;  %v2869_v33 = vld [vmem:[%s4765_s10 + $0x20] sm:$0xff]  ;;  %v2871_v44 = vld [vmem:[%s4765_s10 + $0x30] sm:$0xff] }
 0x195   :  { %3292 = vmatmul.mubr.msk.f32.vlgmr.msra.gmra.mrb[42].mxu0 %vm797_vm4, %v4363_v13  ;;  %3501 = vmatprep.subr.bf16.mxu1 %v3673_v47  ;;  %v3520_v56 = vpack.c.bf16 %v3088_v63, %v3087_v12  ;;  %v3090_v13 = vld [vmem:[%s4761_s6 + $0x140] sm:$0xff]  ;;  %v3526_v49 = vpack.c.bf16 %v3094_v45, %v3093_v37  ;;  %v3529_v8 = vpack.c.bf16 %v3097_v15, %v3096_v50  ;;  %v2874_v34 = vld [vmem:[%s4765_s10 + $0x48] sm:$0xff]  ;;  %v2875_v38 = vld [vmem:[%s4765_s10 + $0x50] sm:$0xff] }
 0x196   :  { %3299 = vmatmul.mubr.msk.f32.vlgmr.msra.gmra.mrb[42].mxu1 %vm797_vm4, %v1660_v20  ;;  %3500 = vmatpush3.bf16.msra.mxu0 %v3499_v14  ;;  %v3523_v48 = vpack.c.bf16 %v3091_v36, %v3090_v13  ;;  %v3099_v20 = vld [vmem:[%s4761_s6 + $0x170] sm:$0xff]  ;;  %v3547_v30 = vpack.c.bf16 %v2778_v29, %v2777_v40  ;;  %v3553_v52 = vpack.c.bf16 %v2782_v32, %v2781_v31  ;;  %v2873_v21 = vld [vmem:[%s4765_s10 + $0x40] sm:$0xff]  ;;  %v2878_v55 = vld [vmem:[%s4765_s10 + $0x68] sm:$0xff] }
 0x197   :  { %3503 = vmatpush3.bf16.msra.mxu1 %v3502_v0  ;;  %3305 = vmatprep.mubr.msk.f32.mxu0 %vm3674_vm2, %v3675_v59  ;;  %v2868_v0 = vld [vmem:[%s4765_s10 + $0x18] sm:$0xff]  ;;  %v3574_v35 = vpack.c.bf16 %v2874_v34, %v2873_v21  ;;  %v2877_v62 = vld [vmem:[%s4765_s10 + $0x60] sm:$0xff] }
 0x198   :  { %3312 = vmatprep.mubr.msk.f32.mxu1 %vm3674_vm2, %v3675_v59  ;;  %3504 = vmatprep.subr.bf16.mxu0 %v3673_v47  ;;  %v3580_v12 = vpack.c.bf16 %v2878_v55, %v2877_v62 }
 0x199   :  { %3306 = vmatmul.mubr.msk.f32.vlgmr.msra.gmra.mrb[44].mxu0 %vm797_vm4, %v4383_v5  ;;  %3507 = vmatprep.subr.bf16.mxu1 %v3673_v47  ;;  %v3100_v5 = vld [vmem:[%s4761_s6 + $0x178] sm:$0xff] }
 0x19a   :  { %3313 = vmatmul.mubr.msk.f32.vlgmr.msra.gmra.mrb[44].mxu1 %vm797_vm4, %v4391_v9  ;;  %3506 = vmatpush3.bf16.msra.mxu0 %v3505_v53  ;;  %v3532_v10 = vpack.c.bf16 %v3100_v5, %v3099_v20  ;;  %v3102_v9 = vld [vmem:[%s4761_s6 + $0x180] sm:$0xff]  ;;  %v2872_v53 = vld [vmem:[%s4765_s10 + $0x38] sm:$0xff] }
 0x19b   :  { %3509 = vmatpush3.bf16.msra.mxu1 %v3508_v54  ;;  %3319 = vmatprep.mubr.msk.f32.mxu0 %vm3674_vm2, %v3675_v59  ;;  %v3571_v54 = vpack.c.bf16 %v2872_v53, %v2871_v44 }
 0x19c   :  { %3326 = vmatprep.mubr.msk.f32.mxu1 %vm3674_vm2, %v3675_v59  ;;  %3510 = vmatprep.subr.bf16.mxu0 %v3673_v47 }
 0x19d   :  { %3320 = vmatmul.mubr.msk.f32.vlgmr.msra.gmra.mrb[46].mxu0 %vm797_vm4, %v4394_v28  ;;  %3513 = vmatprep.subr.bf16.mxu1 %v3673_v47  ;;  %v3103_v28 = vld [vmem:[%s4761_s6 + $0x188] sm:$0xff] }
 0x19e   :  { %3327 = vmatmul.mubr.msk.f32.vlgmr.msra.gmra.mrb[46].mxu1 %vm797_vm4, %v4401_v57  ;;  %3512 = vmatpush3.bf16.msra.mxu0 %v3511_v39  ;;  %v3535_v11 = vpack.c.bf16 %v3103_v28, %v3102_v9  ;;  %v2772_v57 = vld [vmem:[%s4763_s8 + $0x8] sm:$0xff]  ;;  %v2876_v39 = vld [vmem:[%s4765_s10 + $0x58] sm:$0xff] }
 0x19f   :  { %3515 = vmatpush3.bf16.msra.mxu1 %v3514_v58  ;;  %3333 = vmatprep.mubr.msk.f32.mxu0 %vm3674_vm2, %v3675_v59  ;;  %v3538_v3 = vpack.c.bf16 %v2772_v57, %v2771_v60  ;;  %v3577_v58 = vpack.c.bf16 %v2876_v39, %v2875_v38 }
 0x1a0   :  { %3340 = vmatprep.mubr.msk.f32.mxu1 %vm3674_vm2, %v3675_v59  ;;  %3516 = vmatprep.subr.bf16.mxu0 %v3673_v47 }
 0x1a1   :  { %3334 = vmatmul.mubr.msk.f32.vlgmr.msra.gmra.mrb[48].mxu0 %vm797_vm4, %v4412_v17  ;;  %3519 = vmatprep.subr.bf16.mxu1 %v3673_v47  ;;  %v2775_v17 = vld [vmem:[%s4763_s8 + $0x20] sm:$0xff] }
 0x1a2   :  { %3341 = vmatmul.mubr.msk.f32.vlgmr.msra.gmra.mrb[48].mxu1 %vm797_vm4, %v4416_v18  ;;  %3518 = vmatpush3.bf16.msra.mxu0 %v3517_v2  ;;  %v2776_v18 = vld [vmem:[%s4763_s8 + $0x28] sm:$0xff] }
 0x1a3   :  { %3521 = vmatpush3.bf16.msra.mxu1 %v3520_v56  ;;  %3347 = vmatprep.mubr.msk.f32.mxu0 %vm3674_vm2, %v3675_v59  ;;  %v3544_v19 = vpack.c.bf16 %v2776_v18, %v2775_v17 }
 0x1a4   :  { %3354 = vmatprep.mubr.msk.f32.mxu1 %vm3674_vm2, %v3675_v59  ;;  %3522 = vmatprep.subr.bf16.mxu0 %v3673_v47 }
 0x1a5   :  { %3348 = vmatmul.mubr.msk.f32.vlgmr.msra.gmra.mrb[50].mxu0 %vm797_vm4, %v4432_v51  ;;  %3525 = vmatprep.subr.bf16.mxu1 %v3673_v47  ;;  %v2779_v51 = vld [vmem:[%s4763_s8 + $0x40] sm:$0xff] }
 0x1a6   :  { %3355 = vmatmul.mubr.msk.f32.vlgmr.msra.gmra.mrb[50].mxu1 %vm797_vm4, %v4447_v22  ;;  %3524 = vmatpush3.bf16.msra.mxu0 %v3523_v48  ;;  %v3550_v4 = vpack.c.bf16 %v2780_v41, %v2779_v51  ;;  %v2783_v22 = vld [vmem:[%s4763_s8 + $0x60] sm:$0xff] }
 0x1a7   :  { %3527 = vmatpush3.bf16.msra.mxu1 %v3526_v49  ;;  %3361 = vmatprep.mubr.msk.f32.mxu0 %vm3674_vm2, %v3675_v59  ;;  %v3556_v25 = vpack.c.bf16 %v2784_v23, %v2783_v22 }
 0x1a8   :  { %3368 = vmatprep.mubr.msk.f32.mxu1 %vm3674_vm2, %v3675_v59  ;;  %3528 = vmatprep.subr.bf16.mxu0 %v3673_v47 }
 0x1a9   :  { %3362 = vmatmul.mubr.msk.f32.vlgmr.msra.gmra.mrb[52].mxu0 %vm797_vm4, %v4455_v6  ;;  %3531 = vmatprep.subr.bf16.mxu1 %v3673_v47  ;;  %v2786_v6 = vld [vmem:[%s4763_s8 + $0x78] sm:$0xff] }
 0x1aa   :  { %3369 = vmatmul.mubr.msk.f32.vlgmr.msra.gmra.mrb[52].mxu1 %vm797_vm4, %v4458_v46  ;;  %3530 = vmatpush3.bf16.msra.mxu0 %v3529_v8  ;;  %v2865_v46 = vld [vmem:[%s4765_s10] sm:$0xff]  ;;  %v3559_v14 = vpack.c.bf16 %v2786_v6, %v2785_v24 }
 0x1ab   :  { %3533 = vmatpush3.bf16.msra.mxu1 %v3532_v10  ;;  %3375 = vmatprep.mubr.msk.f32.mxu0 %vm3674_vm2, %v3675_v59 }
 0x1ac   :  { %3382 = vmatprep.mubr.msk.f32.mxu1 %vm3674_vm2, %v3675_v59  ;;  %3534 = vmatprep.subr.bf16.mxu0 %v3673_v47 }
 0x1ad   :  { %3376 = vmatmul.mubr.msk.f32.vlgmr.msra.gmra.mrb[54].mxu0 %vm797_vm4, %v4472_v27  ;;  %3537 = vmatprep.subr.bf16.mxu1 %v3673_v47  ;;  %v3562_v27 = vpack.c.bf16 %v2866_v7, %v2865_v46 }
 0x1ae   :  { %3383 = vmatmul.mubr.msk.f32.vlgmr.msra.gmra.mrb[54].mxu1 %vm797_vm4, %v4486_v42  ;;  %3536 = vmatpush3.bf16.msra.mxu0 %v3535_v11  ;;  %v2870_v42 = vld [vmem:[%s4765_s10 + $0x28] sm:$0xff] }
 0x1af   :  { %3389 = vmatprep.mubr.msk.f32.mxu0 %vm3674_vm2, %v3675_v59  ;;  %3424 = vmatprep.mubr.msk.f32.mxu1 %vm3674_vm2, %v3675_v59  ;;  %v3568_v43 = vpack.c.bf16 %v2870_v42, %v2869_v33 }
 0x1b0   :  { %3561 = vmatprep.subr.bf16.mxu0 %v3673_v47  ;;  %3539 = vmatpush3.bf16.msra.mxu1 %v3538_v3 }
 0x1b1   :  { %3390 = vmatmul.mubr.msk.f32.vlgmr.msra.gmra.mrb[56].mxu0 %vm797_vm4, %v4465_v26  ;;  %3540 = vmatprep.subr.bf16.mxu1 %v3673_v47  ;;  %v2867_v26 = vld [vmem:[%s4765_s10 + $0x10] sm:$0xff] }
 0x1b2   :  { %3459 = vmatprep.mubr.msk.f32.mxu0 %vm3674_vm2, %v3675_v59  ;;  %v2774_v59 = vld [vmem:[%s4763_s8 + $0x18] sm:$0xff]  ;;  %3563 = vmatpush3.bf16.msra.mxu0 %v3562_v27  ;;  %v3565_v1 = vpack.c.bf16 %v2868_v0, %v2867_v26 }
 0x1b3   :  { %v3541_v61 = vpack.c.bf16 %v2774_v59, %v2773_v16  ;;  %3564 = vmatprep.subr.bf16.mxu0 %v3673_v47 }
 0x1b5   :  { %3542 = vmatpush3.bf16.msra.mxu1 %v3541_v61 }
 0x1b6   :  { %3543 = vmatprep.subr.bf16.mxu1 %v3673_v47  ;;  %3566 = vmatpush3.bf16.msra.mxu0 %v3565_v1 }
 0x1b7   :  { %3567 = vmatprep.subr.bf16.mxu0 %v3673_v47 }
 0x1b9   :  { %3545 = vmatpush3.bf16.msra.mxu1 %v3544_v19 }
 0x1ba   :  { %3546 = vmatprep.subr.bf16.mxu1 %v3673_v47  ;;  %3569 = vmatpush3.bf16.msra.mxu0 %v3568_v43 }
 0x1bb   :  { %3570 = vmatprep.subr.bf16.mxu0 %v3673_v47 }
 0x1bd   :  { %3548 = vmatpush3.bf16.msra.mxu1 %v3547_v30 }
 0x1be   :  { %3549 = vmatprep.subr.bf16.mxu1 %v3673_v47  ;;  %3572 = vmatpush3.bf16.msra.mxu0 %v3571_v54 }
 0x1bf   :  { %3573 = vmatprep.subr.bf16.mxu0 %v3673_v47 }
 0x1c1   :  { %3551 = vmatpush3.bf16.msra.mxu1 %v3550_v4 }
 0x1c2   :  { %3552 = vmatprep.subr.bf16.mxu1 %v3673_v47  ;;  %3575 = vmatpush3.bf16.msra.mxu0 %v3574_v35 }
 0x1c3   :  { %3576 = vmatprep.subr.bf16.mxu0 %v3673_v47 }
 0x1c5   :  { %3554 = vmatpush3.bf16.msra.mxu1 %v3553_v52 }
 0x1c6   :  { %3555 = vmatprep.subr.bf16.mxu1 %v3673_v47  ;;  %3578 = vmatpush3.bf16.msra.mxu0 %v3577_v58 }
 0x1c7   :  { %3579 = vmatprep.subr.bf16.mxu0 %v3673_v47 }
 0x1c9   :  { %3557 = vmatpush3.bf16.msra.mxu1 %v3556_v25 }
 0x1ca   :  { %3558 = vmatprep.subr.bf16.mxu1 %v3673_v47  ;;  %3581 = vmatpush3.bf16.msra.mxu0 %v3580_v12 }
 0x1cb   :  { %3582 = vmatprep.subr.bf16.mxu0 %v3673_v47 }
 0x1cd   :  { %3560 = vmatpush3.bf16.msra.mxu1 %v3559_v14 }
 0x254   :  { %v866_v63 = vpop.f32.mrb[32].mxu0 }
 0x255   :  { %v940_v2 = vpop.f32.mrb[32].mxu1  ;;  %v3223_v56 = vpop.f32.mrb[33].mxu0 }
 0x256   :  { %v941_v13 = vadd.f32 %v940_v2, %v866_v63  ;;  %v3230_v36 = vpop.f32.mrb[33].mxu1 }
 0x258   :  { %v1018_v37 = vpop.f32.mrb[34].mxu0 }
 0x259   :  { %v1022_v45 = vadd.f32 %v1018_v37, %v941_v13  ;;  %v1097_v48 = vpop.f32.mrb[34].mxu1  ;;  %v3237_v49 = vpop.f32.mrb[35].mxu0 }
 0x25a   :  { %v3244_v50 = vpop.f32.mrb[35].mxu1  ;;  %v3105_v49 = vld [vmem:[%s4762_s7] ss:$0 sm:$0xff] }
 0x25b   :  { %v1101_v15 = vadd.f32 %v1097_v48, %v1022_v45 }
 0x25c   :  { %v1176_v20 = vpop.f32.mrb[36].mxu0 }
 0x25d   :  { %v1180_v5 = vadd.f32 %v1176_v20, %v1101_v15  ;;  %v1255_v8 = vpop.f32.mrb[36].mxu1  ;;  %v3251_v10 = vpop.f32.mrb[37].mxu0 }
 0x25e   :  { %v3258_v9 = vpop.f32.mrb[37].mxu1  ;;  %v2880_v10 = vld [vmem:[%s4765_s10 + $0x78] sm:$0xff] }
 0x25f   :  { %v1259_v28 = vadd.f32 %v1255_v8, %v1180_v5  ;;  %v2879_v8 = vld [vmem:[%s4765_s10 + $0x70] sm:$0xff]  ;;  %s3648_s10 = scalar_lea.vmem %s2966_s0, 32 }
 0x260   :  { %v1334_v11 = vpop.f32.mrb[38].mxu0  ;;  %v3583_v9 = vpack.c.bf16 %v2880_v10, %v2879_v8  ;;  %p3649_p0 = scmp.ne.s32.totalorder %s2966_s0, %s3648_s10  ;;  %p3654_p2 = scmp.lt.s32.totalorder %s3648_s10, %s3648_s10 }
 0x261   :  { %v1338_v60 = vadd.f32 %v1334_v11, %v1259_v28  ;;  %v1413_v47 = vpop.f32.mrb[38].mxu1  ;;  %v3265_v57 = vpop.f32.mrb[39].mxu0  ;;  %v3106_v28 = vld [vmem:[%s4764_s9] ss:$0 sm:$0xff] }
 0x262   :  { %v3272_v3 = vpop.f32.mrb[39].mxu1  ;;  %3584 = vmatpush3.bf16.msra.mxu0 %v3583_v9  ;;  %p3655_p3 = por %p3654_p2, %p3653_p1 }
 0x263   :  { %v1417_v16 = vadd.f32 %v1413_v47, %v1338_v60  ;;  %v3107_v3 = vld [vmem:[%s4766_s11] ss:$0 sm:$0xff] }
 0x264   :  { %v1493_v59 = vpop.f32.mrb[40].mxu0  ;;  %p3656_p4 = pnand %p3655_p3, %p3649_p0 }
 0x265   :  { %v1497_v61 = vadd.f32 %v1493_v59, %v1417_v16  ;;  %v1571_v17 = vpop.f32.mrb[40].mxu1  ;;  %v3279_v18 = vpop.f32.mrb[41].mxu0 }
 0x266   :  { %v3286_v19 = vpop.f32.mrb[41].mxu1 }
 0x267   :  { %v1575_v40 = vadd.f32 %v1571_v17, %v1497_v61 }
 0x268   :  { %v1650_v29 = vpop.f32.mrb[42].mxu0 }
 0x269   :  { %v1654_v30 = vadd.f32 %v1650_v29, %v1575_v40  ;;  %v1729_v51 = vpop.f32.mrb[42].mxu1  ;;  %v3293_v41 = vpop.f32.mrb[43].mxu0 }
 0x26a   :  { %v3300_v4 = vpop.f32.mrb[43].mxu1 }
 0x26b   :  { %v1733_v31 = vadd.f32 %v1729_v51, %v1654_v30 }
 0x26c   :  { %v1808_v32 = vpop.f32.mrb[44].mxu0 }
 0x26d   :  { %v1812_v52 = vadd.f32 %v1808_v32, %v1733_v31  ;;  %v1887_v22 = vpop.f32.mrb[44].mxu1  ;;  %v3307_v23 = vpop.f32.mrb[45].mxu0 }
 0x26e   :  { %v3314_v24 = vpop.f32.mrb[45].mxu1 }
 0x26f   :  { %v1891_v25 = vadd.f32 %v1887_v22, %v1812_v52 }
 0x270   :  { %v1966_v6 = vpop.f32.mrb[46].mxu0 }
 0x271   :  { %v1970_v46 = vadd.f32 %v1966_v6, %v1891_v25  ;;  %v2045_v7 = vpop.f32.mrb[46].mxu1  ;;  %v3321_v26 = vpop.f32.mrb[47].mxu0 }
 0x272   :  { %v3328_v14 = vpop.f32.mrb[47].mxu1 }
 0x273   :  { %v2049_v27 = vadd.f32 %v2045_v7, %v1970_v46 }
 0x274   :  { %v2125_v0 = vpop.f32.mrb[48].mxu0 }
 0x275   :  { %v2129_v1 = vadd.f32 %v2125_v0, %v2049_v27  ;;  %v2203_v33 = vpop.f32.mrb[48].mxu1  ;;  %v3335_v42 = vpop.f32.mrb[49].mxu0 }
 0x276   :  { %v3342_v43 = vpop.f32.mrb[49].mxu1 }
 0x277   :  { %v2207_v44 = vadd.f32 %v2203_v33, %v2129_v1 }
 0x278   :  { %v2282_v53 = vpop.f32.mrb[50].mxu0 }
 0x279   :  { %v2286_v54 = vadd.f32 %v2282_v53, %v2207_v44  ;;  %v2361_v21 = vpop.f32.mrb[50].mxu1  ;;  %v3349_v34 = vpop.f32.mrb[51].mxu0 }
 0x27a   :  { %v3356_v35 = vpop.f32.mrb[51].mxu1 }
 0x27b   :  { %v2365_v38 = vadd.f32 %v2361_v21, %v2286_v54 }
 0x27c   :  { %v2440_v39 = vpop.f32.mrb[52].mxu0 }
 0x27d   :  { %v2444_v58 = vadd.f32 %v2440_v39, %v2365_v38  ;;  %v2519_v62 = vpop.f32.mrb[52].mxu1  ;;  %v3363_v55 = vpop.f32.mrb[53].mxu0 }
 0x27e   :  { %v3370_v12 = vpop.f32.mrb[53].mxu1 }
 0x27f   :  { %v2523_v63 = vadd.f32 %v2519_v62, %v2444_v58 }
 0x280   :  { %v2598_v2 = vpop.f32.mrb[54].mxu0 }
 0x281   :  { %v2602_v56 = vadd.f32 %v2598_v2, %v2523_v63  ;;  %v2677_v13 = vpop.f32.mrb[54].mxu1  ;;  %v3377_v36 = vpop.f32.mrb[55].mxu0 }
 0x282   :  { %v3384_v37 = vpop.f32.mrb[55].mxu1 }
 0x283   :  { %v2681_v45 = vadd.f32 %v2677_v13, %v2602_v56 }
 0x284   :  { %v2757_v48 = vpop.f32.mrb[56].mxu0 }
 0x285   :  { %v2761_v50 = vadd.f32 %v2757_v48, %v2681_v45  ;;  %v3391_v15 = vpop.f32.mrb[57].mxu0 }
 0x287   :  { %v2769_v20 = vadd.f32 %v3105_v49, %v2761_v50 }
 0x289   :  { %v2770_v5 = vmax.f32 %v2769_v20, 0.0 }
 0x28b   :  { %3425 = vmatmul.mubr.f32.vlgmr.msra.gmra.mrb[56].mxu1 %v2770_v5 }
 0x35e   :  { %v2860_v11 = vpop.f32.mrb[56].mxu1 }
 0x35f   :  { %v2861_v60 = vadd.f32 %v3106_v28, %v2860_v11  ;;  %v3426_v47 = vpop.f32.mrb[57].mxu1 }
 0x361   :  { %v2864_v57 = vmax.f32 %v2861_v60, 0.0 }
 0x363   :  { %3460 = vmatmul.mubr.f32.vlgmr.msra.gmra.mrb[58].mxu0 %v2864_v57 }
 0x436   :  { %v2954_v16 = vpop.f32.mrb[58].mxu0 }
 0x437   :  { %v2955_v59 = vadd.f32 %v3107_v3, %v2954_v16  ;;  %v3461_v61 = vpop.f32.mrb[59].mxu0 }
 0x439   :  { %2958 = vst [vmem:[#allocation2] sm:$0x3] %v2955_v59 }
 0x43a   :  { %3659 = shalt.err (!%p3656_p4)
}
 0x43b   :  { %s3660_s25 = scalar_lea.hbm %s4767_s12, 32 }
 0x43c   :  { %p3661_p5 = scmp.ne.s32.totalorder %s4767_s12, %s3660_s25  ;;  %p3664_p6 = scmp.lt.u32.totalorder %s3660_s25, %s4767_s12 }
 0x43e   :  { %p3666_p7 = pnand %p3664_p6, %p3661_p5 }
 0x440   :  { %3669 = shalt.err (!%p3666_p7)
}
 0x441   :  { %2968 = dma.vmem_to_hbm [thread:$0]  %s2966_s0, 32, %s4767_s12, [#allocation3]  }
 0x442   :  { %3670 = dma.done.wait [#allocation3], 32  }
 0x443   :  { %3671 = vsyncadd [#allocation3], 4294967264 }
 0x444   :  { %2972 = vsyncpa [#allocation3], 1 }

</bundles_post_ra>
